<compile_context>
chip_gen: v7x
topology: tpu7x:2x2x1
jax: 0.10.0
libtpu: 0.0.40
codegen_flags: <defaults>
</compile_context>

<pallas_src>
import jax
import jax.numpy as jnp
from jax import lax
from jax.experimental import pallas as pl
from jax.experimental.pallas import tpu as pltpu

VMEM_SPEC = pl.BlockSpec(memory_space=pltpu.MemorySpace.VMEM)


# ----------------------------- Pallas kernels ------------------------------

def _gru_cell(gi, gh, h, H):
    """PyTorch GRU cell math with gates stacked [r | z | n] on the last axis."""
    r = jax.nn.sigmoid(gi[:, 0:H] + gh[:, 0:H])
    z = jax.nn.sigmoid(gi[:, H:2 * H] + gh[:, H:2 * H])
    n = jnp.tanh(gi[:, 2 * H:3 * H] + r * gh[:, 2 * H:3 * H])
    return (1.0 - z) * n + z * h


def _bigru_layer_kernel(x_ref, h0f_ref, h0b_ref,
                        wih_f_ref, whh_f_ref, bih_f_ref, bhh_f_ref,
                        wih_b_ref, whh_b_ref, bih_b_ref, bhh_b_ref,
                        o_ref, hNf_ref, hNb_ref):
    """Fused bidirectional GRU layer over the whole sequence (kept in VMEM).

    x: (S, B, I)   h0f/h0b: (B, H)
    wih: (I, 3H)   whh: (H, 3H)   bih/bhh: (1, 3H)   gate order [r | z | n]
    o: (S, B, 2H)  [fwd | bwd]    hNf/hNb: (B, H)
    """
    S, B, I = x_ref.shape
    H = h0f_ref.shape[-1]

    # Hoisted input-to-hidden projections: one wide matmul per direction.
    x_flat = x_ref[...].reshape(S * B, I)
    gif = jnp.dot(x_flat, wih_f_ref[...],
                  preferred_element_type=jnp.float32) + bih_f_ref[...]   # (S*B, 3H)
    gib = jnp.dot(x_flat, wih_b_ref[...],
                  preferred_element_type=jnp.float32) + bih_b_ref[...]   # (S*B, 3H)

    whh_f = whh_f_ref[...]
    bhh_f = bhh_f_ref[...]
    whh_b = whh_b_ref[...]
    bhh_b = bhh_b_ref[...]

    hf = h0f_ref[...]
    hb = h0b_ref[...]
    # Fully unrolled time loop (S is small & static): static indices, h in vregs,
    # forward and backward directions interleaved for MXU/VPU overlap.
    for t in range(S):
        tb = S - 1 - t
        gh_f = jnp.dot(hf, whh_f, preferred_element_type=jnp.float32) + bhh_f
        gh_b = jnp.dot(hb, whh_b, preferred_element_type=jnp.float32) + bhh_b
        hf = _gru_cell(gif[t * B:(t + 1) * B, :], gh_f, hf, H)
        hb = _gru_cell(gib[tb * B:(tb + 1) * B, :], gh_b, hb, H)
        o_ref[t, :, 0:H] = hf
        o_ref[tb, :, H:2 * H] = hb

    hNf_ref[...] = hf
    hNb_ref[...] = hb


def _decode_kernel(enc_ref, dec0_ref, dh0_ref, t_oh_ref, embed_ref,
                   attn_w_ref, attn_b_ref,
                   wih_e_ref, wih_c_ref, whh_ref, bih_ref, bhh_ref,
                   out_w_ref, out_b_ref,
                   loss_ref, lastwords_ref):
    """Whole decode phase: attention (once) + T decoder GRU steps, all VMEM-resident.

    enc: (S, B, 2H)  dec0: (B, H)  dh0: (B, H)  t_oh: (T, B, V) one-hot targets
    embed: (V, E)    attn_w: (2H, H)  attn_b: (1, H)
    wih_e: (E, 3H)   wih_c: (2H, 3H)  whh: (H, 3H)  bih/bhh: (1, 3H)
    out_w: (H, V)    out_b: (1, V)
    loss: (1, 1)     lastwords: (B, T)
    """
    S, B, K = enc_ref.shape
    H = dh0_ref.shape[-1]
    V = out_w_ref.shape[-1]
    E = embed_ref.shape[-1]
    T = lastwords_ref.shape[-1]

    # --- attention (loop-invariant: reference conditions on the constant decoder_out) ---
    enc = enc_ref[...]                                                  # (S, B, 2H)
    proj = jnp.dot(enc.reshape(S * B, K), attn_w_ref[...],
                   preferred_element_type=jnp.float32) + attn_b_ref[...]
    proj = proj.reshape(S, B, H)
    dec0 = dec0_ref[...]                                                # (B, H)
    e = jnp.sum(proj * dec0[None, :, :], axis=-1)                       # (S, B)
    eT = e.T                                                            # (B, S)
    m = jnp.max(eT, axis=1, keepdims=True)
    p = jnp.exp(eT - m)
    a = p * pl.reciprocal(jnp.sum(p, axis=1, keepdims=True), approx=True)
    context = jnp.sum(a.T[:, :, None] * enc, axis=0)                    # (B, 2H)

    # Loop-invariant part of the decoder input projection (context never changes).
    gi_c = jnp.dot(context, wih_c_ref[...],
                   preferred_element_type=jnp.float32) + bih_ref[...]   # (B, 3H)

    embed = embed_ref[...]
    wih_e = wih_e_ref[...]
    whh = whh_ref[...]
    bhh = bhh_ref[...]
    out_w = out_w_ref[...]
    out_b = out_b_ref[...]

    vocab_ids = lax.broadcasted_iota(jnp.int32, (B, V), 1)

    # lastword starts as token id 1 for every batch row.
    emb = jnp.broadcast_to(embed[1:2, :], (B, E))
    dh = dh0_ref[...]
    loss = jnp.zeros((1, 1), jnp.float32)

    for di in range(T):                       # fully unrolled, static indices
        # decoder GRU step (input = [embedding | context])
        gi = jnp.dot(emb, wih_e, preferred_element_type=jnp.float32) + gi_c
        gh = jnp.dot(dh, whh, preferred_element_type=jnp.float32) + bhh
        dh = _gru_cell(gi, gh, dh, H)

        # output projection
        dout = jnp.dot(dh, out_w, preferred_element_type=jnp.float32) + out_b  # (B, V)

        # TODO(synk): localloss.hybrid() is an undefined external criterion;
        # using mean softmax cross-entropy against t[:, di] as a deterministic stand-in.
        mx = jnp.max(dout, axis=1, keepdims=True)
        ex = jnp.exp(dout - mx)
        lse = mx + jnp.log(jnp.sum(ex, axis=1, keepdims=True))
        logp = dout - lse
        t_oh = t_oh_ref[di]                                             # (B, V)
        picked = jnp.sum(logp * t_oh, axis=1, keepdims=True)            # (B, 1)
        loss = loss - jnp.sum(picked, axis=0, keepdims=True) / B

        # greedy argmax (first maximal index, like torch.max) and next embedding
        is_max = dout >= mx
        idx = jnp.min(jnp.where(is_max, vocab_ids, V), axis=1, keepdims=True)  # (B, 1)
        onehot = (vocab_ids == idx).astype(jnp.float32)                        # (B, V)
        emb = jnp.dot(onehot, embed, preferred_element_type=jnp.float32)       # (B, E)
        lastwords_ref[:, di:di + 1] = idx.astype(jnp.float32)

    loss_ref[...] = loss


# ----------------------------- wrappers ------------------------------------

def bigru_layer(x, h0f, h0b, lay):
    S, B, _ = x.shape
    H = h0f.shape[-1]
    return pl.pallas_call(
        _bigru_layer_kernel,
        out_shape=(jax.ShapeDtypeStruct((S, B, 2 * H), jnp.float32),
                   jax.ShapeDtypeStruct((B, H), jnp.float32),
                   jax.ShapeDtypeStruct((B, H), jnp.float32)),
        in_specs=[VMEM_SPEC] * 11,
        out_specs=(VMEM_SPEC, VMEM_SPEC, VMEM_SPEC),
    )(x, h0f, h0b,
      lay["f_wih"], lay["f_whh"], lay["f_bih"], lay["f_bhh"],
      lay["b_wih"], lay["b_whh"], lay["b_bih"], lay["b_bhh"])


def encoder_forward(params, x_tokens, h0):
    # x_tokens: (B, S) int -> (S, B) -> embed -> (S, B, E)
    xt = x_tokens.T
    inp = jnp.take(params["embed"], xt, axis=0)
    hN_list = []
    for l, lay in enumerate(params["enc_layers"]):
        inp, hf, hb = bigru_layer(inp, h0[2 * l], h0[2 * l + 1], lay)
        hN_list += [hf, hb]
    hN = jnp.stack(hN_list, axis=0)                    # (2L, B, H)
    return inp, hN


def decode_all(params, enc_out, dec0, dh0, t_onehot):
    S, B, _ = enc_out.shape
    T = t_onehot.shape[0]
    loss, lastwords_bt = pl.pallas_call(
        _decode_kernel,
        out_shape=(jax.ShapeDtypeStruct((1, 1), jnp.float32),
                   jax.ShapeDtypeStruct((B, T), jnp.float32)),
        in_specs=[VMEM_SPEC] * 14,
        out_specs=(VMEM_SPEC, VMEM_SPEC),
    )(enc_out, dec0, dh0, t_onehot, params["embed"],
      params["attn_w"], params["attn_b"],
      params["dec_wih_e"], params["dec_wih_c"], params["dec_whh"],
      params["dec_bih"], params["dec_bhh"],
      params["out_w"], params["out_b"])
    return loss[0, 0], lastwords_bt.T                  # (T, B)


def s2s_forward(params, x, t, h0, decoder_out):
    B, T = t.shape
    enc_out, h = encoder_forward(params, x, h0)
    dh0 = h[0] + h[1]                                  # (B, H)
    V = params["out_w"].shape[-1]
    t_onehot = jax.nn.one_hot(t.T, V, dtype=jnp.float32)   # (T, B, V)
    loss, lastwords = decode_all(params, enc_out, decoder_out[0], dh0, t_onehot)
    return loss, loss / T, lastwords


# ----------------------------- parameter init ------------------------------

def init_params(key, V, E, H, L):
    scale = 0.1
    keys = iter(jax.random.split(key, 64))

    def rnd(shape):
        return scale * jax.random.normal(next(keys), shape, dtype=jnp.float32)

    embed = rnd((V, E)).at[0].set(0.0)                 # padding_idx=0

    enc_layers = []
    in_dim = E
    for _ in range(L):
        lay = {}
        for d in ("f", "b"):
            # gates stacked [r | z | n] along the output dim
            lay[f"{d}_wih"] = rnd((in_dim, 3 * H))
            lay[f"{d}_whh"] = rnd((H, 3 * H))
            lay[f"{d}_bih"] = rnd((1, 3 * H))
            lay[f"{d}_bhh"] = rnd((1, 3 * H))
        enc_layers.append(lay)
        in_dim = 2 * H

    params = {
        "embed": embed,
        "enc_layers": enc_layers,
        "attn_w": rnd((2 * H, H)),
        "attn_b": rnd((1, H)),
        # decoder input projection split into [embedding rows | context rows]
        "dec_wih_e": rnd((E, 3 * H)),
        "dec_wih_c": rnd((2 * H, 3 * H)),
        "dec_whh": rnd((H, 3 * H)),
        "dec_bih": rnd((1, 3 * H)),
        "dec_bhh": rnd((1, 3 * H)),
        "out_w": rnd((H, V)),
        "out_b": rnd((1, V)),
    }
    return params


# ----------------------------- main -----------------------------------------

if __name__ == "__main__":
    B, S, T = 2, 8, 4        # batch, encoder seq len, decoder steps
    E, H, V, L = 16, 32, 64, 1

    key = jax.random.PRNGKey(0)
    kp, kx, kt, kh, kd = jax.random.split(key, 5)

    params = init_params(kp, V, E, H, L)
    x = jax.random.randint(kx, (B, S), 1, V, dtype=jnp.int32)
    t = jax.random.randint(kt, (B, T), 1, V, dtype=jnp.int32)
    # encoder.init_hidden / decoder_out use torch.randn in the reference;
    # initialized deterministically here instead.
    h0 = jax.random.normal(kh, (2 * L, B, H), dtype=jnp.float32)
    decoder_out = jax.random.normal(kd, (1, B, H), dtype=jnp.float32)

    fwd = jax.jit(s2s_forward)
    loss, avg_loss, lastwords = fwd(params, x, t, h0, decoder_out)
    jax.block_until_ready((loss, avg_loss, lastwords))
    assert lastwords.shape == (T, B)
    print("KERNEL_OK")
</pallas_src>

<mosaic_0001>
module attributes {stable_mosaic.version = 11 : i64} {
  func.func @_decode_kernel(%arg0: memref<8x2x64xf32, #tpu.memory_space<vmem>>, %arg1: memref<2x32xf32, #tpu.memory_space<vmem>>, %arg2: memref<2x32xf32, #tpu.memory_space<vmem>>, %arg3: memref<4x2x64xf32, #tpu.memory_space<vmem>>, %arg4: memref<64x16xf32, #tpu.memory_space<vmem>>, %arg5: memref<64x32xf32, #tpu.memory_space<vmem>>, %arg6: memref<1x32xf32, #tpu.memory_space<vmem>>, %arg7: memref<16x96xf32, #tpu.memory_space<vmem>>, %arg8: memref<64x96xf32, #tpu.memory_space<vmem>>, %arg9: memref<32x96xf32, #tpu.memory_space<vmem>>, %arg10: memref<1x96xf32, #tpu.memory_space<vmem>>, %arg11: memref<1x96xf32, #tpu.memory_space<vmem>>, %arg12: memref<32x64xf32, #tpu.memory_space<vmem>>, %arg13: memref<1x64xf32, #tpu.memory_space<vmem>>, %arg14: memref<1x1xf32, #tpu.memory_space<vmem>>, %arg15: memref<2x4xf32, #tpu.memory_space<vmem>>) attributes {dimension_semantics = [], scalar_prefetch = 0 : i64, scratch_operands = 0 : i64, tpu.core_type = #tpu.core_type<tc>} {
    %c0 = arith.constant 0 : index
    %c0_0 = arith.constant 0 : index
    %c0_1 = arith.constant 0 : index
    %0 = vector.load %arg0[%c0, %c0_0, %c0_1] : memref<8x2x64xf32, #tpu.memory_space<vmem>>, vector<8x2x64xf32>
    %1 = vector.shape_cast %0 : vector<8x2x64xf32> to vector<16x64xf32>
    %c0_2 = arith.constant 0 : index
    %c0_3 = arith.constant 0 : index
    %2 = vector.load %arg5[%c0_2, %c0_3] : memref<64x32xf32, #tpu.memory_space<vmem>>, vector<64x32xf32>
    %cst = arith.constant dense<0.000000e+00> : vector<16x32xf32>
    %3 = tpu.matmul %1, %2, %cst {dimension_numbers = #tpu.dot_dimension_numbers<[1], [0], [0], [1], [0, 0, 1, 1], [], []>} : vector<16x64xf32>, vector<64x32xf32>, vector<16x32xf32> -> vector<16x32xf32>
    %c0_4 = arith.constant 0 : index
    %c0_5 = arith.constant 0 : index
    %4 = vector.load %arg6[%c0_4, %c0_5] : memref<1x32xf32, #tpu.memory_space<vmem>>, vector<1x32xf32>
    %5 = vector.broadcast %4 : vector<1x32xf32> to vector<16x32xf32>
    %6 = arith.addf %3, %5 : vector<16x32xf32>
    %7 = vector.shape_cast %6 : vector<16x32xf32> to vector<8x2x32xf32>
    %c0_6 = arith.constant 0 : index
    %c0_7 = arith.constant 0 : index
    %8 = vector.load %arg1[%c0_6, %c0_7] : memref<2x32xf32, #tpu.memory_space<vmem>>, vector<2x32xf32>
    %9 = vector.shape_cast %8 : vector<2x32xf32> to vector<1x2x32xf32>
    %10 = vector.broadcast %9 : vector<1x2x32xf32> to vector<8x2x32xf32>
    %11 = arith.mulf %7, %10 : vector<8x2x32xf32>
    %cst_8 = arith.constant dense<0.000000e+00> : vector<8x2xf32>
    %12 = vector.multi_reduction <add>, %11, %cst_8 [2] : vector<8x2x32xf32> to vector<8x2xf32>
    %13 = tpu.transpose %12, [1, 0] : vector<8x2xf32> -> vector<2x8xf32>
    %cst_9 = arith.constant dense<0xFF800000> : vector<2xf32>
    %14 = vector.multi_reduction <maximumf>, %13, %cst_9 [1] : vector<2x8xf32> to vector<2xf32>
    %15 = vector.shape_cast %14 : vector<2xf32> to vector<2x1xf32>
    %16 = vector.broadcast %15 : vector<2x1xf32> to vector<2x8xf32>
    %17 = arith.subf %13, %16 : vector<2x8xf32>
    %18 = math.exp %17 : vector<2x8xf32>
    %cst_10 = arith.constant dense<0.000000e+00> : vector<2xf32>
    %19 = vector.multi_reduction <add>, %18, %cst_10 [1] : vector<2x8xf32> to vector<2xf32>
    %20 = vector.shape_cast %19 : vector<2xf32> to vector<2x1xf32>
    %21 = tpu.reciprocal %20 {approx = true} : vector<2x1xf32> -> vector<2x1xf32>
    %22 = vector.broadcast %21 : vector<2x1xf32> to vector<2x8xf32>
    %23 = arith.mulf %18, %22 : vector<2x8xf32>
    %24 = tpu.transpose %23, [1, 0] : vector<2x8xf32> -> vector<8x2xf32>
    %25 = vector.shape_cast %24 : vector<8x2xf32> to vector<8x2x1xf32>
    %26 = vector.broadcast %25 : vector<8x2x1xf32> to vector<8x2x64xf32>
    %27 = arith.mulf %26, %0 : vector<8x2x64xf32>
    %cst_11 = arith.constant dense<0.000000e+00> : vector<2x64xf32>
    %28 = vector.multi_reduction <add>, %27, %cst_11 [0] : vector<8x2x64xf32> to vector<2x64xf32>
    %c0_12 = arith.constant 0 : index
    %c0_13 = arith.constant 0 : index
    %29 = vector.load %arg8[%c0_12, %c0_13] : memref<64x96xf32, #tpu.memory_space<vmem>>, vector<64x96xf32>
    %cst_14 = arith.constant dense<0.000000e+00> : vector<2x96xf32>
    %30 = tpu.matmul %28, %29, %cst_14 {dimension_numbers = #tpu.dot_dimension_numbers<[1], [0], [0], [1], [0, 0, 1, 1], [], []>} : vector<2x64xf32>, vector<64x96xf32>, vector<2x96xf32> -> vector<2x96xf32>
    %c0_15 = arith.constant 0 : index
    %c0_16 = arith.constant 0 : index
    %31 = vector.load %arg10[%c0_15, %c0_16] : memref<1x96xf32, #tpu.memory_space<vmem>>, vector<1x96xf32>
    %32 = vector.broadcast %31 : vector<1x96xf32> to vector<2x96xf32>
    %33 = arith.addf %30, %32 : vector<2x96xf32>
    %c0_17 = arith.constant 0 : index
    %c0_18 = arith.constant 0 : index
    %34 = vector.load %arg4[%c0_17, %c0_18] : memref<64x16xf32, #tpu.memory_space<vmem>>, vector<64x16xf32>
    %c0_19 = arith.constant 0 : index
    %c0_20 = arith.constant 0 : index
    %35 = vector.load %arg7[%c0_19, %c0_20] : memref<16x96xf32, #tpu.memory_space<vmem>>, vector<16x96xf32>
    %c0_21 = arith.constant 0 : index
    %c0_22 = arith.constant 0 : index
    %36 = vector.load %arg9[%c0_21, %c0_22] : memref<32x96xf32, #tpu.memory_space<vmem>>, vector<32x96xf32>
    %c0_23 = arith.constant 0 : index
    %c0_24 = arith.constant 0 : index
    %37 = vector.load %arg11[%c0_23, %c0_24] : memref<1x96xf32, #tpu.memory_space<vmem>>, vector<1x96xf32>
    %c0_25 = arith.constant 0 : index
    %c0_26 = arith.constant 0 : index
    %38 = vector.load %arg12[%c0_25, %c0_26] : memref<32x64xf32, #tpu.memory_space<vmem>>, vector<32x64xf32>
    %c0_27 = arith.constant 0 : index
    %c0_28 = arith.constant 0 : index
    %39 = vector.load %arg13[%c0_27, %c0_28] : memref<1x64xf32, #tpu.memory_space<vmem>>, vector<1x64xf32>
    %40 = tpu.iota {dimensions = array<i32: 1>} : vector<2x64xi32>
    %41 = vector.extract_strided_slice %34 {offsets = [1, 0], sizes = [1, 16], strides = [1, 1]} : vector<64x16xf32> to vector<1x16xf32>
    %42 = vector.shape_cast %41 : vector<1x16xf32> to vector<1x16xf32>
    %43 = vector.broadcast %42 : vector<1x16xf32> to vector<2x16xf32>
    %c0_29 = arith.constant 0 : index
    %c0_30 = arith.constant 0 : index
    %44 = vector.load %arg2[%c0_29, %c0_30] : memref<2x32xf32, #tpu.memory_space<vmem>>, vector<2x32xf32>
    %cst_31 = arith.constant 0.000000e+00 : f32
    %45 = vector.broadcast %cst_31 : f32 to vector<1x1xf32>
    %cst_32 = arith.constant dense<0.000000e+00> : vector<2x96xf32>
    %46 = tpu.matmul %43, %35, %cst_32 {dimension_numbers = #tpu.dot_dimension_numbers<[1], [0], [0], [1], [0, 0, 1, 1], [], []>} : vector<2x16xf32>, vector<16x96xf32>, vector<2x96xf32> -> vector<2x96xf32>
    %47 = arith.addf %46, %33 : vector<2x96xf32>
    %cst_33 = arith.constant dense<0.000000e+00> : vector<2x96xf32>
    %48 = tpu.matmul %44, %36, %cst_33 {dimension_numbers = #tpu.dot_dimension_numbers<[1], [0], [0], [1], [0, 0, 1, 1], [], []>} : vector<2x32xf32>, vector<32x96xf32>, vector<2x96xf32> -> vector<2x96xf32>
    %49 = vector.broadcast %37 : vector<1x96xf32> to vector<2x96xf32>
    %50 = arith.addf %48, %49 : vector<2x96xf32>
    %51 = vector.extract_strided_slice %47 {offsets = [0, 0], sizes = [2, 32], strides = [1, 1]} : vector<2x96xf32> to vector<2x32xf32>
    %52 = vector.extract_strided_slice %50 {offsets = [0, 0], sizes = [2, 32], strides = [1, 1]} : vector<2x96xf32> to vector<2x32xf32>
    %53 = arith.addf %51, %52 : vector<2x32xf32>
    %54 = arith.negf %53 : vector<2x32xf32>
    %55 = math.exp %54 : vector<2x32xf32>
    %cst_34 = arith.constant 1.000000e+00 : f32
    %56 = vector.broadcast %cst_34 : f32 to vector<2x32xf32>
    %57 = arith.addf %56, %55 : vector<2x32xf32>
    %58 = arith.divf %56, %57 : vector<2x32xf32>
    %59 = vector.extract_strided_slice %47 {offsets = [0, 32], sizes = [2, 32], strides = [1, 1]} : vector<2x96xf32> to vector<2x32xf32>
    %60 = vector.extract_strided_slice %50 {offsets = [0, 32], sizes = [2, 32], strides = [1, 1]} : vector<2x96xf32> to vector<2x32xf32>
    %61 = arith.addf %59, %60 : vector<2x32xf32>
    %62 = arith.negf %61 : vector<2x32xf32>
    %63 = math.exp %62 : vector<2x32xf32>
    %cst_35 = arith.constant 1.000000e+00 : f32
    %64 = vector.broadcast %cst_35 : f32 to vector<2x32xf32>
    %65 = arith.addf %64, %63 : vector<2x32xf32>
    %66 = arith.divf %64, %65 : vector<2x32xf32>
    %67 = vector.extract_strided_slice %47 {offsets = [0, 64], sizes = [2, 32], strides = [1, 1]} : vector<2x96xf32> to vector<2x32xf32>
    %68 = vector.extract_strided_slice %50 {offsets = [0, 64], sizes = [2, 32], strides = [1, 1]} : vector<2x96xf32> to vector<2x32xf32>
    %69 = arith.mulf %58, %68 : vector<2x32xf32>
    %70 = arith.addf %67, %69 : vector<2x32xf32>
    %71 = math.tanh %70 : vector<2x32xf32>
    %cst_36 = arith.constant 1.000000e+00 : f32
    %72 = vector.broadcast %cst_36 : f32 to vector<2x32xf32>
    %73 = arith.subf %72, %66 : vector<2x32xf32>
    %74 = arith.mulf %73, %71 : vector<2x32xf32>
    %75 = arith.mulf %66, %44 : vector<2x32xf32>
    %76 = arith.addf %74, %75 : vector<2x32xf32>
    %cst_37 = arith.constant dense<0.000000e+00> : vector<2x64xf32>
    %77 = tpu.matmul %76, %38, %cst_37 {dimension_numbers = #tpu.dot_dimension_numbers<[1], [0], [0], [1], [0, 0, 1, 1], [], []>} : vector<2x32xf32>, vector<32x64xf32>, vector<2x64xf32> -> vector<2x64xf32>
    %78 = vector.broadcast %39 : vector<1x64xf32> to vector<2x64xf32>
    %79 = arith.addf %77, %78 : vector<2x64xf32>
    %cst_38 = arith.constant dense<0xFF800000> : vector<2xf32>
    %80 = vector.multi_reduction <maximumf>, %79, %cst_38 [1] : vector<2x64xf32> to vector<2xf32>
    %81 = vector.shape_cast %80 : vector<2xf32> to vector<2x1xf32>
    %82 = vector.broadcast %81 : vector<2x1xf32> to vector<2x64xf32>
    %83 = arith.subf %79, %82 : vector<2x64xf32>
    %84 = math.exp %83 : vector<2x64xf32>
    %cst_39 = arith.constant dense<0.000000e+00> : vector<2xf32>
    %85 = vector.multi_reduction <add>, %84, %cst_39 [1] : vector<2x64xf32> to vector<2xf32>
    %86 = vector.shape_cast %85 : vector<2xf32> to vector<2x1xf32>
    %87 = math.log %86 : vector<2x1xf32>
    %88 = arith.addf %81, %87 : vector<2x1xf32>
    %89 = vector.broadcast %88 : vector<2x1xf32> to vector<2x64xf32>
    %90 = arith.subf %79, %89 : vector<2x64xf32>
    %c0_40 = arith.constant 0 : index
    %c0_41 = arith.constant 0 : index
    %c0_42 = arith.constant 0 : index
    %91 = vector.load %arg3[%c0_40, %c0_41, %c0_42] : memref<4x2x64xf32, #tpu.memory_space<vmem>>, vector<1x2x64xf32>
    %92 = vector.shape_cast %91 : vector<1x2x64xf32> to vector<2x64xf32>
    %93 = arith.mulf %90, %92 : vector<2x64xf32>
    %cst_43 = arith.constant dense<0.000000e+00> : vector<2xf32>
    %94 = vector.multi_reduction <add>, %93, %cst_43 [1] : vector<2x64xf32> to vector<2xf32>
    %95 = vector.shape_cast %94 : vector<2xf32> to vector<2x1xf32>
    %cst_44 = arith.constant dense<0.000000e+00> : vector<1xf32>
    %96 = vector.multi_reduction <add>, %95, %cst_44 [0] : vector<2x1xf32> to vector<1xf32>
    %97 = vector.shape_cast %96 : vector<1xf32> to vector<1x1xf32>
    %cst_45 = arith.constant 2.000000e+00 : f32
    %98 = vector.broadcast %cst_45 : f32 to vector<1x1xf32>
    %99 = arith.divf %97, %98 : vector<1x1xf32>
    %100 = arith.subf %45, %99 : vector<1x1xf32>
    %101 = vector.broadcast %81 : vector<2x1xf32> to vector<2x64xf32>
    %102 = arith.cmpf oge, %79, %101 : vector<2x64xf32>
    %c64_i32 = arith.constant 64 : i32
    %103 = vector.broadcast %c64_i32 : i32 to vector<2x64xi32>
    %104 = arith.select %102, %40, %103 : vector<2x64xi1>, vector<2x64xi32>
    %cst_46 = arith.constant dense<2147483647> : vector<2xi32>
    %105 = vector.multi_reduction <minsi>, %104, %cst_46 [1] : vector<2x64xi32> to vector<2xi32>
    %106 = vector.shape_cast %105 : vector<2xi32> to vector<2x1xi32>
    %107 = vector.broadcast %106 : vector<2x1xi32> to vector<2x64xi32>
    %108 = arith.cmpi eq, %40, %107 : vector<2x64xi32>
    %109 = arith.extui %108 : vector<2x64xi1> to vector<2x64xi32>
    %110 = arith.sitofp %109 : vector<2x64xi32> to vector<2x64xf32>
    %cst_47 = arith.constant dense<0.000000e+00> : vector<2x16xf32>
    %111 = tpu.matmul %110, %34, %cst_47 {dimension_numbers = #tpu.dot_dimension_numbers<[1], [0], [0], [1], [0, 0, 1, 1], [], []>} : vector<2x64xf32>, vector<64x16xf32>, vector<2x16xf32> -> vector<2x16xf32>
    %112 = arith.sitofp %106 : vector<2x1xi32> to vector<2x1xf32>
    %c0_48 = arith.constant 0 : index
    %c0_49 = arith.constant 0 : index
    %113 = vector.load %arg15[%c0_48, %c0_49] : memref<2x4xf32, #tpu.memory_space<vmem>>, vector<2x1xf32>
    tpu.vector_store %arg15[%c0_48, %c0_49], %112 {strides = array<i32>} : memref<2x4xf32, #tpu.memory_space<vmem>>, vector<2x1xf32>,
    %cst_50 = arith.constant dense<0.000000e+00> : vector<2x96xf32>
    %114 = tpu.matmul %111, %35, %cst_50 {dimension_numbers = #tpu.dot_dimension_numbers<[1], [0], [0], [1], [0, 0, 1, 1], [], []>} : vector<2x16xf32>, vector<16x96xf32>, vector<2x96xf32> -> vector<2x96xf32>
    %115 = arith.addf %114, %33 : vector<2x96xf32>
    %cst_51 = arith.constant dense<0.000000e+00> : vector<2x96xf32>
    %116 = tpu.matmul %76, %36, %cst_51 {dimension_numbers = #tpu.dot_dimension_numbers<[1], [0], [0], [1], [0, 0, 1, 1], [], []>} : vector<2x32xf32>, vector<32x96xf32>, vector<2x96xf32> -> vector<2x96xf32>
    %117 = vector.broadcast %37 : vector<1x96xf32> to vector<2x96xf32>
    %118 = arith.addf %116, %117 : vector<2x96xf32>
    %119 = vector.extract_strided_slice %115 {offsets = [0, 0], sizes = [2, 32], strides = [1, 1]} : vector<2x96xf32> to vector<2x32xf32>
    %120 = vector.extract_strided_slice %118 {offsets = [0, 0], sizes = [2, 32], strides = [1, 1]} : vector<2x96xf32> to vector<2x32xf32>
    %121 = arith.addf %119, %120 : vector<2x32xf32>
    %122 = arith.negf %121 : vector<2x32xf32>
    %123 = math.exp %122 : vector<2x32xf32>
    %cst_52 = arith.constant 1.000000e+00 : f32
    %124 = vector.broadcast %cst_52 : f32 to vector<2x32xf32>
    %125 = arith.addf %124, %123 : vector<2x32xf32>
    %126 = arith.divf %124, %125 : vector<2x32xf32>
    %127 = vector.extract_strided_slice %115 {offsets = [0, 32], sizes = [2, 32], strides = [1, 1]} : vector<2x96xf32> to vector<2x32xf32>
    %128 = vector.extract_strided_slice %118 {offsets = [0, 32], sizes = [2, 32], strides = [1, 1]} : vector<2x96xf32> to vector<2x32xf32>
    %129 = arith.addf %127, %128 : vector<2x32xf32>
    %130 = arith.negf %129 : vector<2x32xf32>
    %131 = math.exp %130 : vector<2x32xf32>
    %cst_53 = arith.constant 1.000000e+00 : f32
    %132 = vector.broadcast %cst_53 : f32 to vector<2x32xf32>
    %133 = arith.addf %132, %131 : vector<2x32xf32>
    %134 = arith.divf %132, %133 : vector<2x32xf32>
    %135 = vector.extract_strided_slice %115 {offsets = [0, 64], sizes = [2, 32], strides = [1, 1]} : vector<2x96xf32> to vector<2x32xf32>
    %136 = vector.extract_strided_slice %118 {offsets = [0, 64], sizes = [2, 32], strides = [1, 1]} : vector<2x96xf32> to vector<2x32xf32>
    %137 = arith.mulf %126, %136 : vector<2x32xf32>
    %138 = arith.addf %135, %137 : vector<2x32xf32>
    %139 = math.tanh %138 : vector<2x32xf32>
    %cst_54 = arith.constant 1.000000e+00 : f32
    %140 = vector.broadcast %cst_54 : f32 to vector<2x32xf32>
    %141 = arith.subf %140, %134 : vector<2x32xf32>
    %142 = arith.mulf %141, %139 : vector<2x32xf32>
    %143 = arith.mulf %134, %76 : vector<2x32xf32>
    %144 = arith.addf %142, %143 : vector<2x32xf32>
    %cst_55 = arith.constant dense<0.000000e+00> : vector<2x64xf32>
    %145 = tpu.matmul %144, %38, %cst_55 {dimension_numbers = #tpu.dot_dimension_numbers<[1], [0], [0], [1], [0, 0, 1, 1], [], []>} : vector<2x32xf32>, vector<32x64xf32>, vector<2x64xf32> -> vector<2x64xf32>
    %146 = vector.broadcast %39 : vector<1x64xf32> to vector<2x64xf32>
    %147 = arith.addf %145, %146 : vector<2x64xf32>
    %cst_56 = arith.constant dense<0xFF800000> : vector<2xf32>
    %148 = vector.multi_reduction <maximumf>, %147, %cst_56 [1] : vector<2x64xf32> to vector<2xf32>
    %149 = vector.shape_cast %148 : vector<2xf32> to vector<2x1xf32>
    %150 = vector.broadcast %149 : vector<2x1xf32> to vector<2x64xf32>
    %151 = arith.subf %147, %150 : vector<2x64xf32>
    %152 = math.exp %151 : vector<2x64xf32>
    %cst_57 = arith.constant dense<0.000000e+00> : vector<2xf32>
    %153 = vector.multi_reduction <add>, %152, %cst_57 [1] : vector<2x64xf32> to vector<2xf32>
    %154 = vector.shape_cast %153 : vector<2xf32> to vector<2x1xf32>
    %155 = math.log %154 : vector<2x1xf32>
    %156 = arith.addf %149, %155 : vector<2x1xf32>
    %157 = vector.broadcast %156 : vector<2x1xf32> to vector<2x64xf32>
    %158 = arith.subf %147, %157 : vector<2x64xf32>
    %c1 = arith.constant 1 : index
    %c0_58 = arith.constant 0 : index
    %c0_59 = arith.constant 0 : index
    %159 = vector.load %arg3[%c1, %c0_58, %c0_59] : memref<4x2x64xf32, #tpu.memory_space<vmem>>, vector<1x2x64xf32>
    %160 = vector.shape_cast %159 : vector<1x2x64xf32> to vector<2x64xf32>
    %161 = arith.mulf %158, %160 : vector<2x64xf32>
    %cst_60 = arith.constant dense<0.000000e+00> : vector<2xf32>
    %162 = vector.multi_reduction <add>, %161, %cst_60 [1] : vector<2x64xf32> to vector<2xf32>
    %163 = vector.shape_cast %162 : vector<2xf32> to vector<2x1xf32>
    %cst_61 = arith.constant dense<0.000000e+00> : vector<1xf32>
    %164 = vector.multi_reduction <add>, %163, %cst_61 [0] : vector<2x1xf32> to vector<1xf32>
    %165 = vector.shape_cast %164 : vector<1xf32> to vector<1x1xf32>
    %cst_62 = arith.constant 2.000000e+00 : f32
    %166 = vector.broadcast %cst_62 : f32 to vector<1x1xf32>
    %167 = arith.divf %165, %166 : vector<1x1xf32>
    %168 = arith.subf %100, %167 : vector<1x1xf32>
    %169 = vector.broadcast %149 : vector<2x1xf32> to vector<2x64xf32>
    %170 = arith.cmpf oge, %147, %169 : vector<2x64xf32>
    %c64_i32_63 = arith.constant 64 : i32
    %171 = vector.broadcast %c64_i32_63 : i32 to vector<2x64xi32>
    %172 = arith.select %170, %40, %171 : vector<2x64xi1>, vector<2x64xi32>
    %cst_64 = arith.constant dense<2147483647> : vector<2xi32>
    %173 = vector.multi_reduction <minsi>, %172, %cst_64 [1] : vector<2x64xi32> to vector<2xi32>
    %174 = vector.shape_cast %173 : vector<2xi32> to vector<2x1xi32>
    %175 = vector.broadcast %174 : vector<2x1xi32> to vector<2x64xi32>
    %176 = arith.cmpi eq, %40, %175 : vector<2x64xi32>
    %177 = arith.extui %176 : vector<2x64xi1> to vector<2x64xi32>
    %178 = arith.sitofp %177 : vector<2x64xi32> to vector<2x64xf32>
    %cst_65 = arith.constant dense<0.000000e+00> : vector<2x16xf32>
    %179 = tpu.matmul %178, %34, %cst_65 {dimension_numbers = #tpu.dot_dimension_numbers<[1], [0], [0], [1], [0, 0, 1, 1], [], []>} : vector<2x64xf32>, vector<64x16xf32>, vector<2x16xf32> -> vector<2x16xf32>
    %180 = arith.sitofp %174 : vector<2x1xi32> to vector<2x1xf32>
    %c0_66 = arith.constant 0 : index
    %c1_67 = arith.constant 1 : index
    %181 = vector.load %arg15[%c0_66, %c1_67] : memref<2x4xf32, #tpu.memory_space<vmem>>, vector<2x1xf32>
    tpu.vector_store %arg15[%c0_66, %c1_67], %180 {strides = array<i32>} : memref<2x4xf32, #tpu.memory_space<vmem>>, vector<2x1xf32>,
    %cst_68 = arith.constant dense<0.000000e+00> : vector<2x96xf32>
    %182 = tpu.matmul %179, %35, %cst_68 {dimension_numbers = #tpu.dot_dimension_numbers<[1], [0], [0], [1], [0, 0, 1, 1], [], []>} : vector<2x16xf32>, vector<16x96xf32>, vector<2x96xf32> -> vector<2x96xf32>
    %183 = arith.addf %182, %33 : vector<2x96xf32>
    %cst_69 = arith.constant dense<0.000000e+00> : vector<2x96xf32>
    %184 = tpu.matmul %144, %36, %cst_69 {dimension_numbers = #tpu.dot_dimension_numbers<[1], [0], [0], [1], [0, 0, 1, 1], [], []>} : vector<2x32xf32>, vector<32x96xf32>, vector<2x96xf32> -> vector<2x96xf32>
    %185 = vector.broadcast %37 : vector<1x96xf32> to vector<2x96xf32>
    %186 = arith.addf %184, %185 : vector<2x96xf32>
    %187 = vector.extract_strided_slice %183 {offsets = [0, 0], sizes = [2, 32], strides = [1, 1]} : vector<2x96xf32> to vector<2x32xf32>
    %188 = vector.extract_strided_slice %186 {offsets = [0, 0], sizes = [2, 32], strides = [1, 1]} : vector<2x96xf32> to vector<2x32xf32>
    %189 = arith.addf %187, %188 : vector<2x32xf32>
    %190 = arith.negf %189 : vector<2x32xf32>
    %191 = math.exp %190 : vector<2x32xf32>
    %cst_70 = arith.constant 1.000000e+00 : f32
    %192 = vector.broadcast %cst_70 : f32 to vector<2x32xf32>
    %193 = arith.addf %192, %191 : vector<2x32xf32>
    %194 = arith.divf %192, %193 : vector<2x32xf32>
    %195 = vector.extract_strided_slice %183 {offsets = [0, 32], sizes = [2, 32], strides = [1, 1]} : vector<2x96xf32> to vector<2x32xf32>
    %196 = vector.extract_strided_slice %186 {offsets = [0, 32], sizes = [2, 32], strides = [1, 1]} : vector<2x96xf32> to vector<2x32xf32>
    %197 = arith.addf %195, %196 : vector<2x32xf32>
    %198 = arith.negf %197 : vector<2x32xf32>
    %199 = math.exp %198 : vector<2x32xf32>
    %cst_71 = arith.constant 1.000000e+00 : f32
    %200 = vector.broadcast %cst_71 : f32 to vector<2x32xf32>
    %201 = arith.addf %200, %199 : vector<2x32xf32>
    %202 = arith.divf %200, %201 : vector<2x32xf32>
    %203 = vector.extract_strided_slice %183 {offsets = [0, 64], sizes = [2, 32], strides = [1, 1]} : vector<2x96xf32> to vector<2x32xf32>
    %204 = vector.extract_strided_slice %186 {offsets = [0, 64], sizes = [2, 32], strides = [1, 1]} : vector<2x96xf32> to vector<2x32xf32>
    %205 = arith.mulf %194, %204 : vector<2x32xf32>
    %206 = arith.addf %203, %205 : vector<2x32xf32>
    %207 = math.tanh %206 : vector<2x32xf32>
    %cst_72 = arith.constant 1.000000e+00 : f32
    %208 = vector.broadcast %cst_72 : f32 to vector<2x32xf32>
    %209 = arith.subf %208, %202 : vector<2x32xf32>
    %210 = arith.mulf %209, %207 : vector<2x32xf32>
    %211 = arith.mulf %202, %144 : vector<2x32xf32>
    %212 = arith.addf %210, %211 : vector<2x32xf32>
    %cst_73 = arith.constant dense<0.000000e+00> : vector<2x64xf32>
    %213 = tpu.matmul %212, %38, %cst_73 {dimension_numbers = #tpu.dot_dimension_numbers<[1], [0], [0], [1], [0, 0, 1, 1], [], []>} : vector<2x32xf32>, vector<32x64xf32>, vector<2x64xf32> -> vector<2x64xf32>
    %214 = vector.broadcast %39 : vector<1x64xf32> to vector<2x64xf32>
    %215 = arith.addf %213, %214 : vector<2x64xf32>
    %cst_74 = arith.constant dense<0xFF800000> : vector<2xf32>
    %216 = vector.multi_reduction <maximumf>, %215, %cst_74 [1] : vector<2x64xf32> to vector<2xf32>
    %217 = vector.shape_cast %216 : vector<2xf32> to vector<2x1xf32>
    %218 = vector.broadcast %217 : vector<2x1xf32> to vector<2x64xf32>
    %219 = arith.subf %215, %218 : vector<2x64xf32>
    %220 = math.exp %219 : vector<2x64xf32>
    %cst_75 = arith.constant dense<0.000000e+00> : vector<2xf32>
    %221 = vector.multi_reduction <add>, %220, %cst_75 [1] : vector<2x64xf32> to vector<2xf32>
    %222 = vector.shape_cast %221 : vector<2xf32> to vector<2x1xf32>
    %223 = math.log %222 : vector<2x1xf32>
    %224 = arith.addf %217, %223 : vector<2x1xf32>
    %225 = vector.broadcast %224 : vector<2x1xf32> to vector<2x64xf32>
    %226 = arith.subf %215, %225 : vector<2x64xf32>
    %c2 = arith.constant 2 : index
    %c0_76 = arith.constant 0 : index
    %c0_77 = arith.constant 0 : index
    %227 = vector.load %arg3[%c2, %c0_76, %c0_77] : memref<4x2x64xf32, #tpu.memory_space<vmem>>, vector<1x2x64xf32>
    %228 = vector.shape_cast %227 : vector<1x2x64xf32> to vector<2x64xf32>
    %229 = arith.mulf %226, %228 : vector<2x64xf32>
    %cst_78 = arith.constant dense<0.000000e+00> : vector<2xf32>
    %230 = vector.multi_reduction <add>, %229, %cst_78 [1] : vector<2x64xf32> to vector<2xf32>
    %231 = vector.shape_cast %230 : vector<2xf32> to vector<2x1xf32>
    %cst_79 = arith.constant dense<0.000000e+00> : vector<1xf32>
    %232 = vector.multi_reduction <add>, %231, %cst_79 [0] : vector<2x1xf32> to vector<1xf32>
    %233 = vector.shape_cast %232 : vector<1xf32> to vector<1x1xf32>
    %cst_80 = arith.constant 2.000000e+00 : f32
    %234 = vector.broadcast %cst_80 : f32 to vector<1x1xf32>
    %235 = arith.divf %233, %234 : vector<1x1xf32>
    %236 = arith.subf %168, %235 : vector<1x1xf32>
    %237 = vector.broadcast %217 : vector<2x1xf32> to vector<2x64xf32>
    %238 = arith.cmpf oge, %215, %237 : vector<2x64xf32>
    %c64_i32_81 = arith.constant 64 : i32
    %239 = vector.broadcast %c64_i32_81 : i32 to vector<2x64xi32>
    %240 = arith.select %238, %40, %239 : vector<2x64xi1>, vector<2x64xi32>
    %cst_82 = arith.constant dense<2147483647> : vector<2xi32>
    %241 = vector.multi_reduction <minsi>, %240, %cst_82 [1] : vector<2x64xi32> to vector<2xi32>
    %242 = vector.shape_cast %241 : vector<2xi32> to vector<2x1xi32>
    %243 = vector.broadcast %242 : vector<2x1xi32> to vector<2x64xi32>
    %244 = arith.cmpi eq, %40, %243 : vector<2x64xi32>
    %245 = arith.extui %244 : vector<2x64xi1> to vector<2x64xi32>
    %246 = arith.sitofp %245 : vector<2x64xi32> to vector<2x64xf32>
    %cst_83 = arith.constant dense<0.000000e+00> : vector<2x16xf32>
    %247 = tpu.matmul %246, %34, %cst_83 {dimension_numbers = #tpu.dot_dimension_numbers<[1], [0], [0], [1], [0, 0, 1, 1], [], []>} : vector<2x64xf32>, vector<64x16xf32>, vector<2x16xf32> -> vector<2x16xf32>
    %248 = arith.sitofp %242 : vector<2x1xi32> to vector<2x1xf32>
    %c0_84 = arith.constant 0 : index
    %c2_85 = arith.constant 2 : index
    %249 = vector.load %arg15[%c0_84, %c2_85] : memref<2x4xf32, #tpu.memory_space<vmem>>, vector<2x1xf32>
    tpu.vector_store %arg15[%c0_84, %c2_85], %248 {strides = array<i32>} : memref<2x4xf32, #tpu.memory_space<vmem>>, vector<2x1xf32>,
    %cst_86 = arith.constant dense<0.000000e+00> : vector<2x96xf32>
    %250 = tpu.matmul %247, %35, %cst_86 {dimension_numbers = #tpu.dot_dimension_numbers<[1], [0], [0], [1], [0, 0, 1, 1], [], []>} : vector<2x16xf32>, vector<16x96xf32>, vector<2x96xf32> -> vector<2x96xf32>
    %251 = arith.addf %250, %33 : vector<2x96xf32>
    %cst_87 = arith.constant dense<0.000000e+00> : vector<2x96xf32>
    %252 = tpu.matmul %212, %36, %cst_87 {dimension_numbers = #tpu.dot_dimension_numbers<[1], [0], [0], [1], [0, 0, 1, 1], [], []>} : vector<2x32xf32>, vector<32x96xf32>, vector<2x96xf32> -> vector<2x96xf32>
    %253 = vector.broadcast %37 : vector<1x96xf32> to vector<2x96xf32>
    %254 = arith.addf %252, %253 : vector<2x96xf32>
    %255 = vector.extract_strided_slice %251 {offsets = [0, 0], sizes = [2, 32], strides = [1, 1]} : vector<2x96xf32> to vector<2x32xf32>
    %256 = vector.extract_strided_slice %254 {offsets = [0, 0], sizes = [2, 32], strides = [1, 1]} : vector<2x96xf32> to vector<2x32xf32>
    %257 = arith.addf %255, %256 : vector<2x32xf32>
    %258 = arith.negf %257 : vector<2x32xf32>
    %259 = math.exp %258 : vector<2x32xf32>
    %cst_88 = arith.constant 1.000000e+00 : f32
    %260 = vector.broadcast %cst_88 : f32 to vector<2x32xf32>
    %261 = arith.addf %260, %259 : vector<2x32xf32>
    %262 = arith.divf %260, %261 : vector<2x32xf32>
    %263 = vector.extract_strided_slice %251 {offsets = [0, 32], sizes = [2, 32], strides = [1, 1]} : vector<2x96xf32> to vector<2x32xf32>
    %264 = vector.extract_strided_slice %254 {offsets = [0, 32], sizes = [2, 32], strides = [1, 1]} : vector<2x96xf32> to vector<2x32xf32>
    %265 = arith.addf %263, %264 : vector<2x32xf32>
    %266 = arith.negf %265 : vector<2x32xf32>
    %267 = math.exp %266 : vector<2x32xf32>
    %cst_89 = arith.constant 1.000000e+00 : f32
    %268 = vector.broadcast %cst_89 : f32 to vector<2x32xf32>
    %269 = arith.addf %268, %267 : vector<2x32xf32>
    %270 = arith.divf %268, %269 : vector<2x32xf32>
    %271 = vector.extract_strided_slice %251 {offsets = [0, 64], sizes = [2, 32], strides = [1, 1]} : vector<2x96xf32> to vector<2x32xf32>
    %272 = vector.extract_strided_slice %254 {offsets = [0, 64], sizes = [2, 32], strides = [1, 1]} : vector<2x96xf32> to vector<2x32xf32>
    %273 = arith.mulf %262, %272 : vector<2x32xf32>
    %274 = arith.addf %271, %273 : vector<2x32xf32>
    %275 = math.tanh %274 : vector<2x32xf32>
    %cst_90 = arith.constant 1.000000e+00 : f32
    %276 = vector.broadcast %cst_90 : f32 to vector<2x32xf32>
    %277 = arith.subf %276, %270 : vector<2x32xf32>
    %278 = arith.mulf %277, %275 : vector<2x32xf32>
    %279 = arith.mulf %270, %212 : vector<2x32xf32>
    %280 = arith.addf %278, %279 : vector<2x32xf32>
    %cst_91 = arith.constant dense<0.000000e+00> : vector<2x64xf32>
    %281 = tpu.matmul %280, %38, %cst_91 {dimension_numbers = #tpu.dot_dimension_numbers<[1], [0], [0], [1], [0, 0, 1, 1], [], []>} : vector<2x32xf32>, vector<32x64xf32>, vector<2x64xf32> -> vector<2x64xf32>
    %282 = vector.broadcast %39 : vector<1x64xf32> to vector<2x64xf32>
    %283 = arith.addf %281, %282 : vector<2x64xf32>
    %cst_92 = arith.constant dense<0xFF800000> : vector<2xf32>
    %284 = vector.multi_reduction <maximumf>, %283, %cst_92 [1] : vector<2x64xf32> to vector<2xf32>
    %285 = vector.shape_cast %284 : vector<2xf32> to vector<2x1xf32>
    %286 = vector.broadcast %285 : vector<2x1xf32> to vector<2x64xf32>
    %287 = arith.subf %283, %286 : vector<2x64xf32>
    %288 = math.exp %287 : vector<2x64xf32>
    %cst_93 = arith.constant dense<0.000000e+00> : vector<2xf32>
    %289 = vector.multi_reduction <add>, %288, %cst_93 [1] : vector<2x64xf32> to vector<2xf32>
    %290 = vector.shape_cast %289 : vector<2xf32> to vector<2x1xf32>
    %291 = math.log %290 : vector<2x1xf32>
    %292 = arith.addf %285, %291 : vector<2x1xf32>
    %293 = vector.broadcast %292 : vector<2x1xf32> to vector<2x64xf32>
    %294 = arith.subf %283, %293 : vector<2x64xf32>
    %c3 = arith.constant 3 : index
    %c0_94 = arith.constant 0 : index
    %c0_95 = arith.constant 0 : index
    %295 = vector.load %arg3[%c3, %c0_94, %c0_95] : memref<4x2x64xf32, #tpu.memory_space<vmem>>, vector<1x2x64xf32>
    %296 = vector.shape_cast %295 : vector<1x2x64xf32> to vector<2x64xf32>
    %297 = arith.mulf %294, %296 : vector<2x64xf32>
    %cst_96 = arith.constant dense<0.000000e+00> : vector<2xf32>
    %298 = vector.multi_reduction <add>, %297, %cst_96 [1] : vector<2x64xf32> to vector<2xf32>
    %299 = vector.shape_cast %298 : vector<2xf32> to vector<2x1xf32>
    %cst_97 = arith.constant dense<0.000000e+00> : vector<1xf32>
    %300 = vector.multi_reduction <add>, %299, %cst_97 [0] : vector<2x1xf32> to vector<1xf32>
    %301 = vector.shape_cast %300 : vector<1xf32> to vector<1x1xf32>
    %cst_98 = arith.constant 2.000000e+00 : f32
    %302 = vector.broadcast %cst_98 : f32 to vector<1x1xf32>
    %303 = arith.divf %301, %302 : vector<1x1xf32>
    %304 = arith.subf %236, %303 : vector<1x1xf32>
    %305 = vector.broadcast %285 : vector<2x1xf32> to vector<2x64xf32>
    %306 = arith.cmpf oge, %283, %305 : vector<2x64xf32>
    %c64_i32_99 = arith.constant 64 : i32
    %307 = vector.broadcast %c64_i32_99 : i32 to vector<2x64xi32>
    %308 = arith.select %306, %40, %307 : vector<2x64xi1>, vector<2x64xi32>
    %cst_100 = arith.constant dense<2147483647> : vector<2xi32>
    %309 = vector.multi_reduction <minsi>, %308, %cst_100 [1] : vector<2x64xi32> to vector<2xi32>
    %310 = vector.shape_cast %309 : vector<2xi32> to vector<2x1xi32>
    %311 = arith.sitofp %310 : vector<2x1xi32> to vector<2x1xf32>
    %c0_101 = arith.constant 0 : index
    %c3_102 = arith.constant 3 : index
    %312 = vector.load %arg15[%c0_101, %c3_102] : memref<2x4xf32, #tpu.memory_space<vmem>>, vector<2x1xf32>
    tpu.vector_store %arg15[%c0_101, %c3_102], %311 {strides = array<i32>} : memref<2x4xf32, #tpu.memory_space<vmem>>, vector<2x1xf32>,
    %c0_103 = arith.constant 0 : index
    %c0_104 = arith.constant 0 : index
    %313 = vector.load %arg14[%c0_103, %c0_104] : memref<1x1xf32, #tpu.memory_space<vmem>>, vector<1x1xf32>
    tpu.vector_store %arg14[%c0_103, %c0_104], %304 {strides = array<i32>} : memref<1x1xf32, #tpu.memory_space<vmem>>, vector<1x1xf32>,
    return
  }
}

module attributes {stable_mosaic.version = 11 : i64} {
  func.func @_bigru_layer_kernel(%arg0: memref<8x2x16xf32, #tpu.memory_space<vmem>>, %arg1: memref<2x32xf32, #tpu.memory_space<vmem>>, %arg2: memref<2x32xf32, #tpu.memory_space<vmem>>, %arg3: memref<16x96xf32, #tpu.memory_space<vmem>>, %arg4: memref<32x96xf32, #tpu.memory_space<vmem>>, %arg5: memref<1x96xf32, #tpu.memory_space<vmem>>, %arg6: memref<1x96xf32, #tpu.memory_space<vmem>>, %arg7: memref<16x96xf32, #tpu.memory_space<vmem>>, %arg8: memref<32x96xf32, #tpu.memory_space<vmem>>, %arg9: memref<1x96xf32, #tpu.memory_space<vmem>>, %arg10: memref<1x96xf32, #tpu.memory_space<vmem>>, %arg11: memref<8x2x64xf32, #tpu.memory_space<vmem>>, %arg12: memref<2x32xf32, #tpu.memory_space<vmem>>, %arg13: memref<2x32xf32, #tpu.memory_space<vmem>>) attributes {dimension_semantics = [], scalar_prefetch = 0 : i64, scratch_operands = 0 : i64, tpu.core_type = #tpu.core_type<tc>} {
    %c0 = arith.constant 0 : index
    %c0_0 = arith.constant 0 : index
    %c0_1 = arith.constant 0 : index
    %0 = vector.load %arg0[%c0, %c0_0, %c0_1] : memref<8x2x16xf32, #tpu.memory_space<vmem>>, vector<8x2x16xf32>
    %1 = vector.shape_cast %0 : vector<8x2x16xf32> to vector<16x16xf32>
    %c0_2 = arith.constant 0 : index
    %c0_3 = arith.constant 0 : index
    %2 = vector.load %arg3[%c0_2, %c0_3] : memref<16x96xf32, #tpu.memory_space<vmem>>, vector<16x96xf32>
    %cst = arith.constant dense<0.000000e+00> : vector<16x96xf32>
    %3 = tpu.matmul %1, %2, %cst {dimension_numbers = #tpu.dot_dimension_numbers<[1], [0], [0], [1], [0, 0, 1, 1], [], []>} : vector<16x16xf32>, vector<16x96xf32>, vector<16x96xf32> -> vector<16x96xf32>
    %c0_4 = arith.constant 0 : index
    %c0_5 = arith.constant 0 : index
    %4 = vector.load %arg5[%c0_4, %c0_5] : memref<1x96xf32, #tpu.memory_space<vmem>>, vector<1x96xf32>
    %5 = vector.broadcast %4 : vector<1x96xf32> to vector<16x96xf32>
    %6 = arith.addf %3, %5 : vector<16x96xf32>
    %c0_6 = arith.constant 0 : index
    %c0_7 = arith.constant 0 : index
    %7 = vector.load %arg7[%c0_6, %c0_7] : memref<16x96xf32, #tpu.memory_space<vmem>>, vector<16x96xf32>
    %cst_8 = arith.constant dense<0.000000e+00> : vector<16x96xf32>
    %8 = tpu.matmul %1, %7, %cst_8 {dimension_numbers = #tpu.dot_dimension_numbers<[1], [0], [0], [1], [0, 0, 1, 1], [], []>} : vector<16x16xf32>, vector<16x96xf32>, vector<16x96xf32> -> vector<16x96xf32>
    %c0_9 = arith.constant 0 : index
    %c0_10 = arith.constant 0 : index
    %9 = vector.load %arg9[%c0_9, %c0_10] : memref<1x96xf32, #tpu.memory_space<vmem>>, vector<1x96xf32>
    %10 = vector.broadcast %9 : vector<1x96xf32> to vector<16x96xf32>
    %11 = arith.addf %8, %10 : vector<16x96xf32>
    %c0_11 = arith.constant 0 : index
    %c0_12 = arith.constant 0 : index
    %12 = vector.load %arg4[%c0_11, %c0_12] : memref<32x96xf32, #tpu.memory_space<vmem>>, vector<32x96xf32>
    %c0_13 = arith.constant 0 : index
    %c0_14 = arith.constant 0 : index
    %13 = vector.load %arg6[%c0_13, %c0_14] : memref<1x96xf32, #tpu.memory_space<vmem>>, vector<1x96xf32>
    %c0_15 = arith.constant 0 : index
    %c0_16 = arith.constant 0 : index
    %14 = vector.load %arg8[%c0_15, %c0_16] : memref<32x96xf32, #tpu.memory_space<vmem>>, vector<32x96xf32>
    %c0_17 = arith.constant 0 : index
    %c0_18 = arith.constant 0 : index
    %15 = vector.load %arg10[%c0_17, %c0_18] : memref<1x96xf32, #tpu.memory_space<vmem>>, vector<1x96xf32>
    %c0_19 = arith.constant 0 : index
    %c0_20 = arith.constant 0 : index
    %16 = vector.load %arg1[%c0_19, %c0_20] : memref<2x32xf32, #tpu.memory_space<vmem>>, vector<2x32xf32>
    %c0_21 = arith.constant 0 : index
    %c0_22 = arith.constant 0 : index
    %17 = vector.load %arg2[%c0_21, %c0_22] : memref<2x32xf32, #tpu.memory_space<vmem>>, vector<2x32xf32>
    %cst_23 = arith.constant dense<0.000000e+00> : vector<2x96xf32>
    %18 = tpu.matmul %16, %12, %cst_23 {dimension_numbers = #tpu.dot_dimension_numbers<[1], [0], [0], [1], [0, 0, 1, 1], [], []>} : vector<2x32xf32>, vector<32x96xf32>, vector<2x96xf32> -> vector<2x96xf32>
    %19 = vector.broadcast %13 : vector<1x96xf32> to vector<2x96xf32>
    %20 = arith.addf %18, %19 : vector<2x96xf32>
    %cst_24 = arith.constant dense<0.000000e+00> : vector<2x96xf32>
    %21 = tpu.matmul %17, %14, %cst_24 {dimension_numbers = #tpu.dot_dimension_numbers<[1], [0], [0], [1], [0, 0, 1, 1], [], []>} : vector<2x32xf32>, vector<32x96xf32>, vector<2x96xf32> -> vector<2x96xf32>
    %22 = vector.broadcast %15 : vector<1x96xf32> to vector<2x96xf32>
    %23 = arith.addf %21, %22 : vector<2x96xf32>
    %24 = vector.extract_strided_slice %6 {offsets = [0, 0], sizes = [2, 96], strides = [1, 1]} : vector<16x96xf32> to vector<2x96xf32>
    %25 = vector.extract_strided_slice %24 {offsets = [0, 0], sizes = [2, 32], strides = [1, 1]} : vector<2x96xf32> to vector<2x32xf32>
    %26 = vector.extract_strided_slice %20 {offsets = [0, 0], sizes = [2, 32], strides = [1, 1]} : vector<2x96xf32> to vector<2x32xf32>
    %27 = arith.addf %25, %26 : vector<2x32xf32>
    %28 = arith.negf %27 : vector<2x32xf32>
    %29 = math.exp %28 : vector<2x32xf32>
    %cst_25 = arith.constant 1.000000e+00 : f32
    %30 = vector.broadcast %cst_25 : f32 to vector<2x32xf32>
    %31 = arith.addf %30, %29 : vector<2x32xf32>
    %32 = arith.divf %30, %31 : vector<2x32xf32>
    %33 = vector.extract_strided_slice %24 {offsets = [0, 32], sizes = [2, 32], strides = [1, 1]} : vector<2x96xf32> to vector<2x32xf32>
    %34 = vector.extract_strided_slice %20 {offsets = [0, 32], sizes = [2, 32], strides = [1, 1]} : vector<2x96xf32> to vector<2x32xf32>
    %35 = arith.addf %33, %34 : vector<2x32xf32>
    %36 = arith.negf %35 : vector<2x32xf32>
    %37 = math.exp %36 : vector<2x32xf32>
    %cst_26 = arith.constant 1.000000e+00 : f32
    %38 = vector.broadcast %cst_26 : f32 to vector<2x32xf32>
    %39 = arith.addf %38, %37 : vector<2x32xf32>
    %40 = arith.divf %38, %39 : vector<2x32xf32>
    %41 = vector.extract_strided_slice %24 {offsets = [0, 64], sizes = [2, 32], strides = [1, 1]} : vector<2x96xf32> to vector<2x32xf32>
    %42 = vector.extract_strided_slice %20 {offsets = [0, 64], sizes = [2, 32], strides = [1, 1]} : vector<2x96xf32> to vector<2x32xf32>
    %43 = arith.mulf %32, %42 : vector<2x32xf32>
    %44 = arith.addf %41, %43 : vector<2x32xf32>
    %45 = math.tanh %44 : vector<2x32xf32>
    %cst_27 = arith.constant 1.000000e+00 : f32
    %46 = vector.broadcast %cst_27 : f32 to vector<2x32xf32>
    %47 = arith.subf %46, %40 : vector<2x32xf32>
    %48 = arith.mulf %47, %45 : vector<2x32xf32>
    %49 = arith.mulf %40, %16 : vector<2x32xf32>
    %50 = arith.addf %48, %49 : vector<2x32xf32>
    %51 = vector.extract_strided_slice %11 {offsets = [14, 0], sizes = [2, 96], strides = [1, 1]} : vector<16x96xf32> to vector<2x96xf32>
    %52 = vector.extract_strided_slice %51 {offsets = [0, 0], sizes = [2, 32], strides = [1, 1]} : vector<2x96xf32> to vector<2x32xf32>
    %53 = vector.extract_strided_slice %23 {offsets = [0, 0], sizes = [2, 32], strides = [1, 1]} : vector<2x96xf32> to vector<2x32xf32>
    %54 = arith.addf %52, %53 : vector<2x32xf32>
    %55 = arith.negf %54 : vector<2x32xf32>
    %56 = math.exp %55 : vector<2x32xf32>
    %cst_28 = arith.constant 1.000000e+00 : f32
    %57 = vector.broadcast %cst_28 : f32 to vector<2x32xf32>
    %58 = arith.addf %57, %56 : vector<2x32xf32>
    %59 = arith.divf %57, %58 : vector<2x32xf32>
    %60 = vector.extract_strided_slice %51 {offsets = [0, 32], sizes = [2, 32], strides = [1, 1]} : vector<2x96xf32> to vector<2x32xf32>
    %61 = vector.extract_strided_slice %23 {offsets = [0, 32], sizes = [2, 32], strides = [1, 1]} : vector<2x96xf32> to vector<2x32xf32>
    %62 = arith.addf %60, %61 : vector<2x32xf32>
    %63 = arith.negf %62 : vector<2x32xf32>
    %64 = math.exp %63 : vector<2x32xf32>
    %cst_29 = arith.constant 1.000000e+00 : f32
    %65 = vector.broadcast %cst_29 : f32 to vector<2x32xf32>
    %66 = arith.addf %65, %64 : vector<2x32xf32>
    %67 = arith.divf %65, %66 : vector<2x32xf32>
    %68 = vector.extract_strided_slice %51 {offsets = [0, 64], sizes = [2, 32], strides = [1, 1]} : vector<2x96xf32> to vector<2x32xf32>
    %69 = vector.extract_strided_slice %23 {offsets = [0, 64], sizes = [2, 32], strides = [1, 1]} : vector<2x96xf32> to vector<2x32xf32>
    %70 = arith.mulf %59, %69 : vector<2x32xf32>
    %71 = arith.addf %68, %70 : vector<2x32xf32>
    %72 = math.tanh %71 : vector<2x32xf32>
    %cst_30 = arith.constant 1.000000e+00 : f32
    %73 = vector.broadcast %cst_30 : f32 to vector<2x32xf32>
    %74 = arith.subf %73, %67 : vector<2x32xf32>
    %75 = arith.mulf %74, %72 : vector<2x32xf32>
    %76 = arith.mulf %67, %17 : vector<2x32xf32>
    %77 = arith.addf %75, %76 : vector<2x32xf32>
    %c0_31 = arith.constant 0 : index
    %c0_32 = arith.constant 0 : index
    %c0_33 = arith.constant 0 : index
    %78 = vector.load %arg11[%c0_31, %c0_32, %c0_33] : memref<8x2x64xf32, #tpu.memory_space<vmem>>, vector<1x2x32xf32>
    %79 = vector.shape_cast %78 : vector<1x2x32xf32> to vector<2x32xf32>
    %80 = vector.shape_cast %50 : vector<2x32xf32> to vector<1x2x32xf32>
    tpu.vector_store %arg11[%c0_31, %c0_32, %c0_33], %80 {strides = array<i32>} : memref<8x2x64xf32, #tpu.memory_space<vmem>>, vector<1x2x32xf32>,
    %c7 = arith.constant 7 : index
    %c0_34 = arith.constant 0 : index
    %c32 = arith.constant 32 : index
    %81 = vector.load %arg11[%c7, %c0_34, %c32] : memref<8x2x64xf32, #tpu.memory_space<vmem>>, vector<1x2x32xf32>
    %82 = vector.shape_cast %81 : vector<1x2x32xf32> to vector<2x32xf32>
    %83 = vector.shape_cast %77 : vector<2x32xf32> to vector<1x2x32xf32>
    tpu.vector_store %arg11[%c7, %c0_34, %c32], %83 {strides = array<i32>} : memref<8x2x64xf32, #tpu.memory_space<vmem>>, vector<1x2x32xf32>,
    %cst_35 = arith.constant dense<0.000000e+00> : vector<2x96xf32>
    %84 = tpu.matmul %50, %12, %cst_35 {dimension_numbers = #tpu.dot_dimension_numbers<[1], [0], [0], [1], [0, 0, 1, 1], [], []>} : vector<2x32xf32>, vector<32x96xf32>, vector<2x96xf32> -> vector<2x96xf32>
    %85 = vector.broadcast %13 : vector<1x96xf32> to vector<2x96xf32>
    %86 = arith.addf %84, %85 : vector<2x96xf32>
    %cst_36 = arith.constant dense<0.000000e+00> : vector<2x96xf32>
    %87 = tpu.matmul %77, %14, %cst_36 {dimension_numbers = #tpu.dot_dimension_numbers<[1], [0], [0], [1], [0, 0, 1, 1], [], []>} : vector<2x32xf32>, vector<32x96xf32>, vector<2x96xf32> -> vector<2x96xf32>
    %88 = vector.broadcast %15 : vector<1x96xf32> to vector<2x96xf32>
    %89 = arith.addf %87, %88 : vector<2x96xf32>
    %90 = vector.extract_strided_slice %6 {offsets = [2, 0], sizes = [2, 96], strides = [1, 1]} : vector<16x96xf32> to vector<2x96xf32>
    %91 = vector.extract_strided_slice %90 {offsets = [0, 0], sizes = [2, 32], strides = [1, 1]} : vector<2x96xf32> to vector<2x32xf32>
    %92 = vector.extract_strided_slice %86 {offsets = [0, 0], sizes = [2, 32], strides = [1, 1]} : vector<2x96xf32> to vector<2x32xf32>
    %93 = arith.addf %91, %92 : vector<2x32xf32>
    %94 = arith.negf %93 : vector<2x32xf32>
    %95 = math.exp %94 : vector<2x32xf32>
    %cst_37 = arith.constant 1.000000e+00 : f32
    %96 = vector.broadcast %cst_37 : f32 to vector<2x32xf32>
    %97 = arith.addf %96, %95 : vector<2x32xf32>
    %98 = arith.divf %96, %97 : vector<2x32xf32>
    %99 = vector.extract_strided_slice %90 {offsets = [0, 32], sizes = [2, 32], strides = [1, 1]} : vector<2x96xf32> to vector<2x32xf32>
    %100 = vector.extract_strided_slice %86 {offsets = [0, 32], sizes = [2, 32], strides = [1, 1]} : vector<2x96xf32> to vector<2x32xf32>
    %101 = arith.addf %99, %100 : vector<2x32xf32>
    %102 = arith.negf %101 : vector<2x32xf32>
    %103 = math.exp %102 : vector<2x32xf32>
    %cst_38 = arith.constant 1.000000e+00 : f32
    %104 = vector.broadcast %cst_38 : f32 to vector<2x32xf32>
    %105 = arith.addf %104, %103 : vector<2x32xf32>
    %106 = arith.divf %104, %105 : vector<2x32xf32>
    %107 = vector.extract_strided_slice %90 {offsets = [0, 64], sizes = [2, 32], strides = [1, 1]} : vector<2x96xf32> to vector<2x32xf32>
    %108 = vector.extract_strided_slice %86 {offsets = [0, 64], sizes = [2, 32], strides = [1, 1]} : vector<2x96xf32> to vector<2x32xf32>
    %109 = arith.mulf %98, %108 : vector<2x32xf32>
    %110 = arith.addf %107, %109 : vector<2x32xf32>
    %111 = math.tanh %110 : vector<2x32xf32>
    %cst_39 = arith.constant 1.000000e+00 : f32
    %112 = vector.broadcast %cst_39 : f32 to vector<2x32xf32>
    %113 = arith.subf %112, %106 : vector<2x32xf32>
    %114 = arith.mulf %113, %111 : vector<2x32xf32>
    %115 = arith.mulf %106, %50 : vector<2x32xf32>
    %116 = arith.addf %114, %115 : vector<2x32xf32>
    %117 = vector.extract_strided_slice %11 {offsets = [12, 0], sizes = [2, 96], strides = [1, 1]} : vector<16x96xf32> to vector<2x96xf32>
    %118 = vector.extract_strided_slice %117 {offsets = [0, 0], sizes = [2, 32], strides = [1, 1]} : vector<2x96xf32> to vector<2x32xf32>
    %119 = vector.extract_strided_slice %89 {offsets = [0, 0], sizes = [2, 32], strides = [1, 1]} : vector<2x96xf32> to vector<2x32xf32>
    %120 = arith.addf %118, %119 : vector<2x32xf32>
    %121 = arith.negf %120 : vector<2x32xf32>
    %122 = math.exp %121 : vector<2x32xf32>
    %cst_40 = arith.constant 1.000000e+00 : f32
    %123 = vector.broadcast %cst_40 : f32 to vector<2x32xf32>
    %124 = arith.addf %123, %122 : vector<2x32xf32>
    %125 = arith.divf %123, %124 : vector<2x32xf32>
    %126 = vector.extract_strided_slice %117 {offsets = [0, 32], sizes = [2, 32], strides = [1, 1]} : vector<2x96xf32> to vector<2x32xf32>
    %127 = vector.extract_strided_slice %89 {offsets = [0, 32], sizes = [2, 32], strides = [1, 1]} : vector<2x96xf32> to vector<2x32xf32>
    %128 = arith.addf %126, %127 : vector<2x32xf32>
    %129 = arith.negf %128 : vector<2x32xf32>
    %130 = math.exp %129 : vector<2x32xf32>
    %cst_41 = arith.constant 1.000000e+00 : f32
    %131 = vector.broadcast %cst_41 : f32 to vector<2x32xf32>
    %132 = arith.addf %131, %130 : vector<2x32xf32>
    %133 = arith.divf %131, %132 : vector<2x32xf32>
    %134 = vector.extract_strided_slice %117 {offsets = [0, 64], sizes = [2, 32], strides = [1, 1]} : vector<2x96xf32> to vector<2x32xf32>
    %135 = vector.extract_strided_slice %89 {offsets = [0, 64], sizes = [2, 32], strides = [1, 1]} : vector<2x96xf32> to vector<2x32xf32>
    %136 = arith.mulf %125, %135 : vector<2x32xf32>
    %137 = arith.addf %134, %136 : vector<2x32xf32>
    %138 = math.tanh %137 : vector<2x32xf32>
    %cst_42 = arith.constant 1.000000e+00 : f32
    %139 = vector.broadcast %cst_42 : f32 to vector<2x32xf32>
    %140 = arith.subf %139, %133 : vector<2x32xf32>
    %141 = arith.mulf %140, %138 : vector<2x32xf32>
    %142 = arith.mulf %133, %77 : vector<2x32xf32>
    %143 = arith.addf %141, %142 : vector<2x32xf32>
    %c1 = arith.constant 1 : index
    %c0_43 = arith.constant 0 : index
    %c0_44 = arith.constant 0 : index
    %144 = vector.load %arg11[%c1, %c0_43, %c0_44] : memref<8x2x64xf32, #tpu.memory_space<vmem>>, vector<1x2x32xf32>
    %145 = vector.shape_cast %144 : vector<1x2x32xf32> to vector<2x32xf32>
    %146 = vector.shape_cast %116 : vector<2x32xf32> to vector<1x2x32xf32>
    tpu.vector_store %arg11[%c1, %c0_43, %c0_44], %146 {strides = array<i32>} : memref<8x2x64xf32, #tpu.memory_space<vmem>>, vector<1x2x32xf32>,
    %c6 = arith.constant 6 : index
    %c0_45 = arith.constant 0 : index
    %c32_46 = arith.constant 32 : index
    %147 = vector.load %arg11[%c6, %c0_45, %c32_46] : memref<8x2x64xf32, #tpu.memory_space<vmem>>, vector<1x2x32xf32>
    %148 = vector.shape_cast %147 : vector<1x2x32xf32> to vector<2x32xf32>
    %149 = vector.shape_cast %143 : vector<2x32xf32> to vector<1x2x32xf32>
    tpu.vector_store %arg11[%c6, %c0_45, %c32_46], %149 {strides = array<i32>} : memref<8x2x64xf32, #tpu.memory_space<vmem>>, vector<1x2x32xf32>,
    %cst_47 = arith.constant dense<0.000000e+00> : vector<2x96xf32>
    %150 = tpu.matmul %116, %12, %cst_47 {dimension_numbers = #tpu.dot_dimension_numbers<[1], [0], [0], [1], [0, 0, 1, 1], [], []>} : vector<2x32xf32>, vector<32x96xf32>, vector<2x96xf32> -> vector<2x96xf32>
    %151 = vector.broadcast %13 : vector<1x96xf32> to vector<2x96xf32>
    %152 = arith.addf %150, %151 : vector<2x96xf32>
    %cst_48 = arith.constant dense<0.000000e+00> : vector<2x96xf32>
    %153 = tpu.matmul %143, %14, %cst_48 {dimension_numbers = #tpu.dot_dimension_numbers<[1], [0], [0], [1], [0, 0, 1, 1], [], []>} : vector<2x32xf32>, vector<32x96xf32>, vector<2x96xf32> -> vector<2x96xf32>
    %154 = vector.broadcast %15 : vector<1x96xf32> to vector<2x96xf32>
    %155 = arith.addf %153, %154 : vector<2x96xf32>
    %156 = vector.extract_strided_slice %6 {offsets = [4, 0], sizes = [2, 96], strides = [1, 1]} : vector<16x96xf32> to vector<2x96xf32>
    %157 = vector.extract_strided_slice %156 {offsets = [0, 0], sizes = [2, 32], strides = [1, 1]} : vector<2x96xf32> to vector<2x32xf32>
    %158 = vector.extract_strided_slice %152 {offsets = [0, 0], sizes = [2, 32], strides = [1, 1]} : vector<2x96xf32> to vector<2x32xf32>
    %159 = arith.addf %157, %158 : vector<2x32xf32>
    %160 = arith.negf %159 : vector<2x32xf32>
    %161 = math.exp %160 : vector<2x32xf32>
    %cst_49 = arith.constant 1.000000e+00 : f32
    %162 = vector.broadcast %cst_49 : f32 to vector<2x32xf32>
    %163 = arith.addf %162, %161 : vector<2x32xf32>
    %164 = arith.divf %162, %163 : vector<2x32xf32>
    %165 = vector.extract_strided_slice %156 {offsets = [0, 32], sizes = [2, 32], strides = [1, 1]} : vector<2x96xf32> to vector<2x32xf32>
    %166 = vector.extract_strided_slice %152 {offsets = [0, 32], sizes = [2, 32], strides = [1, 1]} : vector<2x96xf32> to vector<2x32xf32>
    %167 = arith.addf %165, %166 : vector<2x32xf32>
    %168 = arith.negf %167 : vector<2x32xf32>
    %169 = math.exp %168 : vector<2x32xf32>
    %cst_50 = arith.constant 1.000000e+00 : f32
    %170 = vector.broadcast %cst_50 : f32 to vector<2x32xf32>
    %171 = arith.addf %170, %169 : vector<2x32xf32>
    %172 = arith.divf %170, %171 : vector<2x32xf32>
    %173 = vector.extract_strided_slice %156 {offsets = [0, 64], sizes = [2, 32], strides = [1, 1]} : vector<2x96xf32> to vector<2x32xf32>
    %174 = vector.extract_strided_slice %152 {offsets = [0, 64], sizes = [2, 32], strides = [1, 1]} : vector<2x96xf32> to vector<2x32xf32>
    %175 = arith.mulf %164, %174 : vector<2x32xf32>
    %176 = arith.addf %173, %175 : vector<2x32xf32>
    %177 = math.tanh %176 : vector<2x32xf32>
    %cst_51 = arith.constant 1.000000e+00 : f32
    %178 = vector.broadcast %cst_51 : f32 to vector<2x32xf32>
    %179 = arith.subf %178, %172 : vector<2x32xf32>
    %180 = arith.mulf %179, %177 : vector<2x32xf32>
    %181 = arith.mulf %172, %116 : vector<2x32xf32>
    %182 = arith.addf %180, %181 : vector<2x32xf32>
    %183 = vector.extract_strided_slice %11 {offsets = [10, 0], sizes = [2, 96], strides = [1, 1]} : vector<16x96xf32> to vector<2x96xf32>
    %184 = vector.extract_strided_slice %183 {offsets = [0, 0], sizes = [2, 32], strides = [1, 1]} : vector<2x96xf32> to vector<2x32xf32>
    %185 = vector.extract_strided_slice %155 {offsets = [0, 0], sizes = [2, 32], strides = [1, 1]} : vector<2x96xf32> to vector<2x32xf32>
    %186 = arith.addf %184, %185 : vector<2x32xf32>
    %187 = arith.negf %186 : vector<2x32xf32>
    %188 = math.exp %187 : vector<2x32xf32>
    %cst_52 = arith.constant 1.000000e+00 : f32
    %189 = vector.broadcast %cst_52 : f32 to vector<2x32xf32>
    %190 = arith.addf %189, %188 : vector<2x32xf32>
    %191 = arith.divf %189, %190 : vector<2x32xf32>
    %192 = vector.extract_strided_slice %183 {offsets = [0, 32], sizes = [2, 32], strides = [1, 1]} : vector<2x96xf32> to vector<2x32xf32>
    %193 = vector.extract_strided_slice %155 {offsets = [0, 32], sizes = [2, 32], strides = [1, 1]} : vector<2x96xf32> to vector<2x32xf32>
    %194 = arith.addf %192, %193 : vector<2x32xf32>
    %195 = arith.negf %194 : vector<2x32xf32>
    %196 = math.exp %195 : vector<2x32xf32>
    %cst_53 = arith.constant 1.000000e+00 : f32
    %197 = vector.broadcast %cst_53 : f32 to vector<2x32xf32>
    %198 = arith.addf %197, %196 : vector<2x32xf32>
    %199 = arith.divf %197, %198 : vector<2x32xf32>
    %200 = vector.extract_strided_slice %183 {offsets = [0, 64], sizes = [2, 32], strides = [1, 1]} : vector<2x96xf32> to vector<2x32xf32>
    %201 = vector.extract_strided_slice %155 {offsets = [0, 64], sizes = [2, 32], strides = [1, 1]} : vector<2x96xf32> to vector<2x32xf32>
    %202 = arith.mulf %191, %201 : vector<2x32xf32>
    %203 = arith.addf %200, %202 : vector<2x32xf32>
    %204 = math.tanh %203 : vector<2x32xf32>
    %cst_54 = arith.constant 1.000000e+00 : f32
    %205 = vector.broadcast %cst_54 : f32 to vector<2x32xf32>
    %206 = arith.subf %205, %199 : vector<2x32xf32>
    %207 = arith.mulf %206, %204 : vector<2x32xf32>
    %208 = arith.mulf %199, %143 : vector<2x32xf32>
    %209 = arith.addf %207, %208 : vector<2x32xf32>
    %c2 = arith.constant 2 : index
    %c0_55 = arith.constant 0 : index
    %c0_56 = arith.constant 0 : index
    %210 = vector.load %arg11[%c2, %c0_55, %c0_56] : memref<8x2x64xf32, #tpu.memory_space<vmem>>, vector<1x2x32xf32>
    %211 = vector.shape_cast %210 : vector<1x2x32xf32> to vector<2x32xf32>
    %212 = vector.shape_cast %182 : vector<2x32xf32> to vector<1x2x32xf32>
    tpu.vector_store %arg11[%c2, %c0_55, %c0_56], %212 {strides = array<i32>} : memref<8x2x64xf32, #tpu.memory_space<vmem>>, vector<1x2x32xf32>,
    %c5 = arith.constant 5 : index
    %c0_57 = arith.constant 0 : index
    %c32_58 = arith.constant 32 : index
    %213 = vector.load %arg11[%c5, %c0_57, %c32_58] : memref<8x2x64xf32, #tpu.memory_space<vmem>>, vector<1x2x32xf32>
    %214 = vector.shape_cast %213 : vector<1x2x32xf32> to vector<2x32xf32>
    %215 = vector.shape_cast %209 : vector<2x32xf32> to vector<1x2x32xf32>
    tpu.vector_store %arg11[%c5, %c0_57, %c32_58], %215 {strides = array<i32>} : memref<8x2x64xf32, #tpu.memory_space<vmem>>, vector<1x2x32xf32>,
    %cst_59 = arith.constant dense<0.000000e+00> : vector<2x96xf32>
    %216 = tpu.matmul %182, %12, %cst_59 {dimension_numbers = #tpu.dot_dimension_numbers<[1], [0], [0], [1], [0, 0, 1, 1], [], []>} : vector<2x32xf32>, vector<32x96xf32>, vector<2x96xf32> -> vector<2x96xf32>
    %217 = vector.broadcast %13 : vector<1x96xf32> to vector<2x96xf32>
    %218 = arith.addf %216, %217 : vector<2x96xf32>
    %cst_60 = arith.constant dense<0.000000e+00> : vector<2x96xf32>
    %219 = tpu.matmul %209, %14, %cst_60 {dimension_numbers = #tpu.dot_dimension_numbers<[1], [0], [0], [1], [0, 0, 1, 1], [], []>} : vector<2x32xf32>, vector<32x96xf32>, vector<2x96xf32> -> vector<2x96xf32>
    %220 = vector.broadcast %15 : vector<1x96xf32> to vector<2x96xf32>
    %221 = arith.addf %219, %220 : vector<2x96xf32>
    %222 = vector.extract_strided_slice %6 {offsets = [6, 0], sizes = [2, 96], strides = [1, 1]} : vector<16x96xf32> to vector<2x96xf32>
    %223 = vector.extract_strided_slice %222 {offsets = [0, 0], sizes = [2, 32], strides = [1, 1]} : vector<2x96xf32> to vector<2x32xf32>
    %224 = vector.extract_strided_slice %218 {offsets = [0, 0], sizes = [2, 32], strides = [1, 1]} : vector<2x96xf32> to vector<2x32xf32>
    %225 = arith.addf %223, %224 : vector<2x32xf32>
    %226 = arith.negf %225 : vector<2x32xf32>
    %227 = math.exp %226 : vector<2x32xf32>
    %cst_61 = arith.constant 1.000000e+00 : f32
    %228 = vector.broadcast %cst_61 : f32 to vector<2x32xf32>
    %229 = arith.addf %228, %227 : vector<2x32xf32>
    %230 = arith.divf %228, %229 : vector<2x32xf32>
    %231 = vector.extract_strided_slice %222 {offsets = [0, 32], sizes = [2, 32], strides = [1, 1]} : vector<2x96xf32> to vector<2x32xf32>
    %232 = vector.extract_strided_slice %218 {offsets = [0, 32], sizes = [2, 32], strides = [1, 1]} : vector<2x96xf32> to vector<2x32xf32>
    %233 = arith.addf %231, %232 : vector<2x32xf32>
    %234 = arith.negf %233 : vector<2x32xf32>
    %235 = math.exp %234 : vector<2x32xf32>
    %cst_62 = arith.constant 1.000000e+00 : f32
    %236 = vector.broadcast %cst_62 : f32 to vector<2x32xf32>
    %237 = arith.addf %236, %235 : vector<2x32xf32>
    %238 = arith.divf %236, %237 : vector<2x32xf32>
    %239 = vector.extract_strided_slice %222 {offsets = [0, 64], sizes = [2, 32], strides = [1, 1]} : vector<2x96xf32> to vector<2x32xf32>
    %240 = vector.extract_strided_slice %218 {offsets = [0, 64], sizes = [2, 32], strides = [1, 1]} : vector<2x96xf32> to vector<2x32xf32>
    %241 = arith.mulf %230, %240 : vector<2x32xf32>
    %242 = arith.addf %239, %241 : vector<2x32xf32>
    %243 = math.tanh %242 : vector<2x32xf32>
    %cst_63 = arith.constant 1.000000e+00 : f32
    %244 = vector.broadcast %cst_63 : f32 to vector<2x32xf32>
    %245 = arith.subf %244, %238 : vector<2x32xf32>
    %246 = arith.mulf %245, %243 : vector<2x32xf32>
    %247 = arith.mulf %238, %182 : vector<2x32xf32>
    %248 = arith.addf %246, %247 : vector<2x32xf32>
    %249 = vector.extract_strided_slice %11 {offsets = [8, 0], sizes = [2, 96], strides = [1, 1]} : vector<16x96xf32> to vector<2x96xf32>
    %250 = vector.extract_strided_slice %249 {offsets = [0, 0], sizes = [2, 32], strides = [1, 1]} : vector<2x96xf32> to vector<2x32xf32>
    %251 = vector.extract_strided_slice %221 {offsets = [0, 0], sizes = [2, 32], strides = [1, 1]} : vector<2x96xf32> to vector<2x32xf32>
    %252 = arith.addf %250, %251 : vector<2x32xf32>
    %253 = arith.negf %252 : vector<2x32xf32>
    %254 = math.exp %253 : vector<2x32xf32>
    %cst_64 = arith.constant 1.000000e+00 : f32
    %255 = vector.broadcast %cst_64 : f32 to vector<2x32xf32>
    %256 = arith.addf %255, %254 : vector<2x32xf32>
    %257 = arith.divf %255, %256 : vector<2x32xf32>
    %258 = vector.extract_strided_slice %249 {offsets = [0, 32], sizes = [2, 32], strides = [1, 1]} : vector<2x96xf32> to vector<2x32xf32>
    %259 = vector.extract_strided_slice %221 {offsets = [0, 32], sizes = [2, 32], strides = [1, 1]} : vector<2x96xf32> to vector<2x32xf32>
    %260 = arith.addf %258, %259 : vector<2x32xf32>
    %261 = arith.negf %260 : vector<2x32xf32>
    %262 = math.exp %261 : vector<2x32xf32>
    %cst_65 = arith.constant 1.000000e+00 : f32
    %263 = vector.broadcast %cst_65 : f32 to vector<2x32xf32>
    %264 = arith.addf %263, %262 : vector<2x32xf32>
    %265 = arith.divf %263, %264 : vector<2x32xf32>
    %266 = vector.extract_strided_slice %249 {offsets = [0, 64], sizes = [2, 32], strides = [1, 1]} : vector<2x96xf32> to vector<2x32xf32>
    %267 = vector.extract_strided_slice %221 {offsets = [0, 64], sizes = [2, 32], strides = [1, 1]} : vector<2x96xf32> to vector<2x32xf32>
    %268 = arith.mulf %257, %267 : vector<2x32xf32>
    %269 = arith.addf %266, %268 : vector<2x32xf32>
    %270 = math.tanh %269 : vector<2x32xf32>
    %cst_66 = arith.constant 1.000000e+00 : f32
    %271 = vector.broadcast %cst_66 : f32 to vector<2x32xf32>
    %272 = arith.subf %271, %265 : vector<2x32xf32>
    %273 = arith.mulf %272, %270 : vector<2x32xf32>
    %274 = arith.mulf %265, %209 : vector<2x32xf32>
    %275 = arith.addf %273, %274 : vector<2x32xf32>
    %c3 = arith.constant 3 : index
    %c0_67 = arith.constant 0 : index
    %c0_68 = arith.constant 0 : index
    %276 = vector.load %arg11[%c3, %c0_67, %c0_68] : memref<8x2x64xf32, #tpu.memory_space<vmem>>, vector<1x2x32xf32>
    %277 = vector.shape_cast %276 : vector<1x2x32xf32> to vector<2x32xf32>
    %278 = vector.shape_cast %248 : vector<2x32xf32> to vector<1x2x32xf32>
    tpu.vector_store %arg11[%c3, %c0_67, %c0_68], %278 {strides = array<i32>} : memref<8x2x64xf32, #tpu.memory_space<vmem>>, vector<1x2x32xf32>,
    %c4 = arith.constant 4 : index
    %c0_69 = arith.constant 0 : index
    %c32_70 = arith.constant 32 : index
    %279 = vector.load %arg11[%c4, %c0_69, %c32_70] : memref<8x2x64xf32, #tpu.memory_space<vmem>>, vector<1x2x32xf32>
    %280 = vector.shape_cast %279 : vector<1x2x32xf32> to vector<2x32xf32>
    %281 = vector.shape_cast %275 : vector<2x32xf32> to vector<1x2x32xf32>
    tpu.vector_store %arg11[%c4, %c0_69, %c32_70], %281 {strides = array<i32>} : memref<8x2x64xf32, #tpu.memory_space<vmem>>, vector<1x2x32xf32>,
    %cst_71 = arith.constant dense<0.000000e+00> : vector<2x96xf32>
    %282 = tpu.matmul %248, %12, %cst_71 {dimension_numbers = #tpu.dot_dimension_numbers<[1], [0], [0], [1], [0, 0, 1, 1], [], []>} : vector<2x32xf32>, vector<32x96xf32>, vector<2x96xf32> -> vector<2x96xf32>
    %283 = vector.broadcast %13 : vector<1x96xf32> to vector<2x96xf32>
    %284 = arith.addf %282, %283 : vector<2x96xf32>
    %cst_72 = arith.constant dense<0.000000e+00> : vector<2x96xf32>
    %285 = tpu.matmul %275, %14, %cst_72 {dimension_numbers = #tpu.dot_dimension_numbers<[1], [0], [0], [1], [0, 0, 1, 1], [], []>} : vector<2x32xf32>, vector<32x96xf32>, vector<2x96xf32> -> vector<2x96xf32>
    %286 = vector.broadcast %15 : vector<1x96xf32> to vector<2x96xf32>
    %287 = arith.addf %285, %286 : vector<2x96xf32>
    %288 = vector.extract_strided_slice %6 {offsets = [8, 0], sizes = [2, 96], strides = [1, 1]} : vector<16x96xf32> to vector<2x96xf32>
    %289 = vector.extract_strided_slice %288 {offsets = [0, 0], sizes = [2, 32], strides = [1, 1]} : vector<2x96xf32> to vector<2x32xf32>
    %290 = vector.extract_strided_slice %284 {offsets = [0, 0], sizes = [2, 32], strides = [1, 1]} : vector<2x96xf32> to vector<2x32xf32>
    %291 = arith.addf %289, %290 : vector<2x32xf32>
    %292 = arith.negf %291 : vector<2x32xf32>
    %293 = math.exp %292 : vector<2x32xf32>
    %cst_73 = arith.constant 1.000000e+00 : f32
    %294 = vector.broadcast %cst_73 : f32 to vector<2x32xf32>
    %295 = arith.addf %294, %293 : vector<2x32xf32>
    %296 = arith.divf %294, %295 : vector<2x32xf32>
    %297 = vector.extract_strided_slice %288 {offsets = [0, 32], sizes = [2, 32], strides = [1, 1]} : vector<2x96xf32> to vector<2x32xf32>
    %298 = vector.extract_strided_slice %284 {offsets = [0, 32], sizes = [2, 32], strides = [1, 1]} : vector<2x96xf32> to vector<2x32xf32>
    %299 = arith.addf %297, %298 : vector<2x32xf32>
    %300 = arith.negf %299 : vector<2x32xf32>
    %301 = math.exp %300 : vector<2x32xf32>
    %cst_74 = arith.constant 1.000000e+00 : f32
    %302 = vector.broadcast %cst_74 : f32 to vector<2x32xf32>
    %303 = arith.addf %302, %301 : vector<2x32xf32>
    %304 = arith.divf %302, %303 : vector<2x32xf32>
    %305 = vector.extract_strided_slice %288 {offsets = [0, 64], sizes = [2, 32], strides = [1, 1]} : vector<2x96xf32> to vector<2x32xf32>
    %306 = vector.extract_strided_slice %284 {offsets = [0, 64], sizes = [2, 32], strides = [1, 1]} : vector<2x96xf32> to vector<2x32xf32>
    %307 = arith.mulf %296, %306 : vector<2x32xf32>
    %308 = arith.addf %305, %307 : vector<2x32xf32>
    %309 = math.tanh %308 : vector<2x32xf32>
    %cst_75 = arith.constant 1.000000e+00 : f32
    %310 = vector.broadcast %cst_75 : f32 to vector<2x32xf32>
    %311 = arith.subf %310, %304 : vector<2x32xf32>
    %312 = arith.mulf %311, %309 : vector<2x32xf32>
    %313 = arith.mulf %304, %248 : vector<2x32xf32>
    %314 = arith.addf %312, %313 : vector<2x32xf32>
    %315 = vector.extract_strided_slice %11 {offsets = [6, 0], sizes = [2, 96], strides = [1, 1]} : vector<16x96xf32> to vector<2x96xf32>
    %316 = vector.extract_strided_slice %315 {offsets = [0, 0], sizes = [2, 32], strides = [1, 1]} : vector<2x96xf32> to vector<2x32xf32>
    %317 = vector.extract_strided_slice %287 {offsets = [0, 0], sizes = [2, 32], strides = [1, 1]} : vector<2x96xf32> to vector<2x32xf32>
    %318 = arith.addf %316, %317 : vector<2x32xf32>
    %319 = arith.negf %318 : vector<2x32xf32>
    %320 = math.exp %319 : vector<2x32xf32>
    %cst_76 = arith.constant 1.000000e+00 : f32
    %321 = vector.broadcast %cst_76 : f32 to vector<2x32xf32>
    %322 = arith.addf %321, %320 : vector<2x32xf32>
    %323 = arith.divf %321, %322 : vector<2x32xf32>
    %324 = vector.extract_strided_slice %315 {offsets = [0, 32], sizes = [2, 32], strides = [1, 1]} : vector<2x96xf32> to vector<2x32xf32>
    %325 = vector.extract_strided_slice %287 {offsets = [0, 32], sizes = [2, 32], strides = [1, 1]} : vector<2x96xf32> to vector<2x32xf32>
    %326 = arith.addf %324, %325 : vector<2x32xf32>
    %327 = arith.negf %326 : vector<2x32xf32>
    %328 = math.exp %327 : vector<2x32xf32>
    %cst_77 = arith.constant 1.000000e+00 : f32
    %329 = vector.broadcast %cst_77 : f32 to vector<2x32xf32>
    %330 = arith.addf %329, %328 : vector<2x32xf32>
    %331 = arith.divf %329, %330 : vector<2x32xf32>
    %332 = vector.extract_strided_slice %315 {offsets = [0, 64], sizes = [2, 32], strides = [1, 1]} : vector<2x96xf32> to vector<2x32xf32>
    %333 = vector.extract_strided_slice %287 {offsets = [0, 64], sizes = [2, 32], strides = [1, 1]} : vector<2x96xf32> to vector<2x32xf32>
    %334 = arith.mulf %323, %333 : vector<2x32xf32>
    %335 = arith.addf %332, %334 : vector<2x32xf32>
    %336 = math.tanh %335 : vector<2x32xf32>
    %cst_78 = arith.constant 1.000000e+00 : f32
    %337 = vector.broadcast %cst_78 : f32 to vector<2x32xf32>
    %338 = arith.subf %337, %331 : vector<2x32xf32>
    %339 = arith.mulf %338, %336 : vector<2x32xf32>
    %340 = arith.mulf %331, %275 : vector<2x32xf32>
    %341 = arith.addf %339, %340 : vector<2x32xf32>
    %c4_79 = arith.constant 4 : index
    %c0_80 = arith.constant 0 : index
    %c0_81 = arith.constant 0 : index
    %342 = vector.load %arg11[%c4_79, %c0_80, %c0_81] : memref<8x2x64xf32, #tpu.memory_space<vmem>>, vector<1x2x32xf32>
    %343 = vector.shape_cast %342 : vector<1x2x32xf32> to vector<2x32xf32>
    %344 = vector.shape_cast %314 : vector<2x32xf32> to vector<1x2x32xf32>
    tpu.vector_store %arg11[%c4_79, %c0_80, %c0_81], %344 {strides = array<i32>} : memref<8x2x64xf32, #tpu.memory_space<vmem>>, vector<1x2x32xf32>,
    %c3_82 = arith.constant 3 : index
    %c0_83 = arith.constant 0 : index
    %c32_84 = arith.constant 32 : index
    %345 = vector.load %arg11[%c3_82, %c0_83, %c32_84] : memref<8x2x64xf32, #tpu.memory_space<vmem>>, vector<1x2x32xf32>
    %346 = vector.shape_cast %345 : vector<1x2x32xf32> to vector<2x32xf32>
    %347 = vector.shape_cast %341 : vector<2x32xf32> to vector<1x2x32xf32>
    tpu.vector_store %arg11[%c3_82, %c0_83, %c32_84], %347 {strides = array<i32>} : memref<8x2x64xf32, #tpu.memory_space<vmem>>, vector<1x2x32xf32>,
    %cst_85 = arith.constant dense<0.000000e+00> : vector<2x96xf32>
    %348 = tpu.matmul %314, %12, %cst_85 {dimension_numbers = #tpu.dot_dimension_numbers<[1], [0], [0], [1], [0, 0, 1, 1], [], []>} : vector<2x32xf32>, vector<32x96xf32>, vector<2x96xf32> -> vector<2x96xf32>
    %349 = vector.broadcast %13 : vector<1x96xf32> to vector<2x96xf32>
    %350 = arith.addf %348, %349 : vector<2x96xf32>
    %cst_86 = arith.constant dense<0.000000e+00> : vector<2x96xf32>
    %351 = tpu.matmul %341, %14, %cst_86 {dimension_numbers = #tpu.dot_dimension_numbers<[1], [0], [0], [1], [0, 0, 1, 1], [], []>} : vector<2x32xf32>, vector<32x96xf32>, vector<2x96xf32> -> vector<2x96xf32>
    %352 = vector.broadcast %15 : vector<1x96xf32> to vector<2x96xf32>
    %353 = arith.addf %351, %352 : vector<2x96xf32>
    %354 = vector.extract_strided_slice %6 {offsets = [10, 0], sizes = [2, 96], strides = [1, 1]} : vector<16x96xf32> to vector<2x96xf32>
    %355 = vector.extract_strided_slice %354 {offsets = [0, 0], sizes = [2, 32], strides = [1, 1]} : vector<2x96xf32> to vector<2x32xf32>
    %356 = vector.extract_strided_slice %350 {offsets = [0, 0], sizes = [2, 32], strides = [1, 1]} : vector<2x96xf32> to vector<2x32xf32>
    %357 = arith.addf %355, %356 : vector<2x32xf32>
    %358 = arith.negf %357 : vector<2x32xf32>
    %359 = math.exp %358 : vector<2x32xf32>
    %cst_87 = arith.constant 1.000000e+00 : f32
    %360 = vector.broadcast %cst_87 : f32 to vector<2x32xf32>
    %361 = arith.addf %360, %359 : vector<2x32xf32>
    %362 = arith.divf %360, %361 : vector<2x32xf32>
    %363 = vector.extract_strided_slice %354 {offsets = [0, 32], sizes = [2, 32], strides = [1, 1]} : vector<2x96xf32> to vector<2x32xf32>
    %364 = vector.extract_strided_slice %350 {offsets = [0, 32], sizes = [2, 32], strides = [1, 1]} : vector<2x96xf32> to vector<2x32xf32>
    %365 = arith.addf %363, %364 : vector<2x32xf32>
    %366 = arith.negf %365 : vector<2x32xf32>
    %367 = math.exp %366 : vector<2x32xf32>
    %cst_88 = arith.constant 1.000000e+00 : f32
    %368 = vector.broadcast %cst_88 : f32 to vector<2x32xf32>
    %369 = arith.addf %368, %367 : vector<2x32xf32>
    %370 = arith.divf %368, %369 : vector<2x32xf32>
    %371 = vector.extract_strided_slice %354 {offsets = [0, 64], sizes = [2, 32], strides = [1, 1]} : vector<2x96xf32> to vector<2x32xf32>
    %372 = vector.extract_strided_slice %350 {offsets = [0, 64], sizes = [2, 32], strides = [1, 1]} : vector<2x96xf32> to vector<2x32xf32>
    %373 = arith.mulf %362, %372 : vector<2x32xf32>
    %374 = arith.addf %371, %373 : vector<2x32xf32>
    %375 = math.tanh %374 : vector<2x32xf32>
    %cst_89 = arith.constant 1.000000e+00 : f32
    %376 = vector.broadcast %cst_89 : f32 to vector<2x32xf32>
    %377 = arith.subf %376, %370 : vector<2x32xf32>
    %378 = arith.mulf %377, %375 : vector<2x32xf32>
    %379 = arith.mulf %370, %314 : vector<2x32xf32>
    %380 = arith.addf %378, %379 : vector<2x32xf32>
    %381 = vector.extract_strided_slice %11 {offsets = [4, 0], sizes = [2, 96], strides = [1, 1]} : vector<16x96xf32> to vector<2x96xf32>
    %382 = vector.extract_strided_slice %381 {offsets = [0, 0], sizes = [2, 32], strides = [1, 1]} : vector<2x96xf32> to vector<2x32xf32>
    %383 = vector.extract_strided_slice %353 {offsets = [0, 0], sizes = [2, 32], strides = [1, 1]} : vector<2x96xf32> to vector<2x32xf32>
    %384 = arith.addf %382, %383 : vector<2x32xf32>
    %385 = arith.negf %384 : vector<2x32xf32>
    %386 = math.exp %385 : vector<2x32xf32>
    %cst_90 = arith.constant 1.000000e+00 : f32
    %387 = vector.broadcast %cst_90 : f32 to vector<2x32xf32>
    %388 = arith.addf %387, %386 : vector<2x32xf32>
    %389 = arith.divf %387, %388 : vector<2x32xf32>
    %390 = vector.extract_strided_slice %381 {offsets = [0, 32], sizes = [2, 32], strides = [1, 1]} : vector<2x96xf32> to vector<2x32xf32>
    %391 = vector.extract_strided_slice %353 {offsets = [0, 32], sizes = [2, 32], strides = [1, 1]} : vector<2x96xf32> to vector<2x32xf32>
    %392 = arith.addf %390, %391 : vector<2x32xf32>
    %393 = arith.negf %392 : vector<2x32xf32>
    %394 = math.exp %393 : vector<2x32xf32>
    %cst_91 = arith.constant 1.000000e+00 : f32
    %395 = vector.broadcast %cst_91 : f32 to vector<2x32xf32>
    %396 = arith.addf %395, %394 : vector<2x32xf32>
    %397 = arith.divf %395, %396 : vector<2x32xf32>
    %398 = vector.extract_strided_slice %381 {offsets = [0, 64], sizes = [2, 32], strides = [1, 1]} : vector<2x96xf32> to vector<2x32xf32>
    %399 = vector.extract_strided_slice %353 {offsets = [0, 64], sizes = [2, 32], strides = [1, 1]} : vector<2x96xf32> to vector<2x32xf32>
    %400 = arith.mulf %389, %399 : vector<2x32xf32>
    %401 = arith.addf %398, %400 : vector<2x32xf32>
    %402 = math.tanh %401 : vector<2x32xf32>
    %cst_92 = arith.constant 1.000000e+00 : f32
    %403 = vector.broadcast %cst_92 : f32 to vector<2x32xf32>
    %404 = arith.subf %403, %397 : vector<2x32xf32>
    %405 = arith.mulf %404, %402 : vector<2x32xf32>
    %406 = arith.mulf %397, %341 : vector<2x32xf32>
    %407 = arith.addf %405, %406 : vector<2x32xf32>
    %c5_93 = arith.constant 5 : index
    %c0_94 = arith.constant 0 : index
    %c0_95 = arith.constant 0 : index
    %408 = vector.load %arg11[%c5_93, %c0_94, %c0_95] : memref<8x2x64xf32, #tpu.memory_space<vmem>>, vector<1x2x32xf32>
    %409 = vector.shape_cast %408 : vector<1x2x32xf32> to vector<2x32xf32>
    %410 = vector.shape_cast %380 : vector<2x32xf32> to vector<1x2x32xf32>
    tpu.vector_store %arg11[%c5_93, %c0_94, %c0_95], %410 {strides = array<i32>} : memref<8x2x64xf32, #tpu.memory_space<vmem>>, vector<1x2x32xf32>,
    %c2_96 = arith.constant 2 : index
    %c0_97 = arith.constant 0 : index
    %c32_98 = arith.constant 32 : index
    %411 = vector.load %arg11[%c2_96, %c0_97, %c32_98] : memref<8x2x64xf32, #tpu.memory_space<vmem>>, vector<1x2x32xf32>
    %412 = vector.shape_cast %411 : vector<1x2x32xf32> to vector<2x32xf32>
    %413 = vector.shape_cast %407 : vector<2x32xf32> to vector<1x2x32xf32>
    tpu.vector_store %arg11[%c2_96, %c0_97, %c32_98], %413 {strides = array<i32>} : memref<8x2x64xf32, #tpu.memory_space<vmem>>, vector<1x2x32xf32>,
    %cst_99 = arith.constant dense<0.000000e+00> : vector<2x96xf32>
    %414 = tpu.matmul %380, %12, %cst_99 {dimension_numbers = #tpu.dot_dimension_numbers<[1], [0], [0], [1], [0, 0, 1, 1], [], []>} : vector<2x32xf32>, vector<32x96xf32>, vector<2x96xf32> -> vector<2x96xf32>
    %415 = vector.broadcast %13 : vector<1x96xf32> to vector<2x96xf32>
    %416 = arith.addf %414, %415 : vector<2x96xf32>
    %cst_100 = arith.constant dense<0.000000e+00> : vector<2x96xf32>
    %417 = tpu.matmul %407, %14, %cst_100 {dimension_numbers = #tpu.dot_dimension_numbers<[1], [0], [0], [1], [0, 0, 1, 1], [], []>} : vector<2x32xf32>, vector<32x96xf32>, vector<2x96xf32> -> vector<2x96xf32>
    %418 = vector.broadcast %15 : vector<1x96xf32> to vector<2x96xf32>
    %419 = arith.addf %417, %418 : vector<2x96xf32>
    %420 = vector.extract_strided_slice %6 {offsets = [12, 0], sizes = [2, 96], strides = [1, 1]} : vector<16x96xf32> to vector<2x96xf32>
    %421 = vector.extract_strided_slice %420 {offsets = [0, 0], sizes = [2, 32], strides = [1, 1]} : vector<2x96xf32> to vector<2x32xf32>
    %422 = vector.extract_strided_slice %416 {offsets = [0, 0], sizes = [2, 32], strides = [1, 1]} : vector<2x96xf32> to vector<2x32xf32>
    %423 = arith.addf %421, %422 : vector<2x32xf32>
    %424 = arith.negf %423 : vector<2x32xf32>
    %425 = math.exp %424 : vector<2x32xf32>
    %cst_101 = arith.constant 1.000000e+00 : f32
    %426 = vector.broadcast %cst_101 : f32 to vector<2x32xf32>
    %427 = arith.addf %426, %425 : vector<2x32xf32>
    %428 = arith.divf %426, %427 : vector<2x32xf32>
    %429 = vector.extract_strided_slice %420 {offsets = [0, 32], sizes = [2, 32], strides = [1, 1]} : vector<2x96xf32> to vector<2x32xf32>
    %430 = vector.extract_strided_slice %416 {offsets = [0, 32], sizes = [2, 32], strides = [1, 1]} : vector<2x96xf32> to vector<2x32xf32>
    %431 = arith.addf %429, %430 : vector<2x32xf32>
    %432 = arith.negf %431 : vector<2x32xf32>
    %433 = math.exp %432 : vector<2x32xf32>
    %cst_102 = arith.constant 1.000000e+00 : f32
    %434 = vector.broadcast %cst_102 : f32 to vector<2x32xf32>
    %435 = arith.addf %434, %433 : vector<2x32xf32>
    %436 = arith.divf %434, %435 : vector<2x32xf32>
    %437 = vector.extract_strided_slice %420 {offsets = [0, 64], sizes = [2, 32], strides = [1, 1]} : vector<2x96xf32> to vector<2x32xf32>
    %438 = vector.extract_strided_slice %416 {offsets = [0, 64], sizes = [2, 32], strides = [1, 1]} : vector<2x96xf32> to vector<2x32xf32>
    %439 = arith.mulf %428, %438 : vector<2x32xf32>
    %440 = arith.addf %437, %439 : vector<2x32xf32>
    %441 = math.tanh %440 : vector<2x32xf32>
    %cst_103 = arith.constant 1.000000e+00 : f32
    %442 = vector.broadcast %cst_103 : f32 to vector<2x32xf32>
    %443 = arith.subf %442, %436 : vector<2x32xf32>
    %444 = arith.mulf %443, %441 : vector<2x32xf32>
    %445 = arith.mulf %436, %380 : vector<2x32xf32>
    %446 = arith.addf %444, %445 : vector<2x32xf32>
    %447 = vector.extract_strided_slice %11 {offsets = [2, 0], sizes = [2, 96], strides = [1, 1]} : vector<16x96xf32> to vector<2x96xf32>
    %448 = vector.extract_strided_slice %447 {offsets = [0, 0], sizes = [2, 32], strides = [1, 1]} : vector<2x96xf32> to vector<2x32xf32>
    %449 = vector.extract_strided_slice %419 {offsets = [0, 0], sizes = [2, 32], strides = [1, 1]} : vector<2x96xf32> to vector<2x32xf32>
    %450 = arith.addf %448, %449 : vector<2x32xf32>
    %451 = arith.negf %450 : vector<2x32xf32>
    %452 = math.exp %451 : vector<2x32xf32>
    %cst_104 = arith.constant 1.000000e+00 : f32
    %453 = vector.broadcast %cst_104 : f32 to vector<2x32xf32>
    %454 = arith.addf %453, %452 : vector<2x32xf32>
    %455 = arith.divf %453, %454 : vector<2x32xf32>
    %456 = vector.extract_strided_slice %447 {offsets = [0, 32], sizes = [2, 32], strides = [1, 1]} : vector<2x96xf32> to vector<2x32xf32>
    %457 = vector.extract_strided_slice %419 {offsets = [0, 32], sizes = [2, 32], strides = [1, 1]} : vector<2x96xf32> to vector<2x32xf32>
    %458 = arith.addf %456, %457 : vector<2x32xf32>
    %459 = arith.negf %458 : vector<2x32xf32>
    %460 = math.exp %459 : vector<2x32xf32>
    %cst_105 = arith.constant 1.000000e+00 : f32
    %461 = vector.broadcast %cst_105 : f32 to vector<2x32xf32>
    %462 = arith.addf %461, %460 : vector<2x32xf32>
    %463 = arith.divf %461, %462 : vector<2x32xf32>
    %464 = vector.extract_strided_slice %447 {offsets = [0, 64], sizes = [2, 32], strides = [1, 1]} : vector<2x96xf32> to vector<2x32xf32>
    %465 = vector.extract_strided_slice %419 {offsets = [0, 64], sizes = [2, 32], strides = [1, 1]} : vector<2x96xf32> to vector<2x32xf32>
    %466 = arith.mulf %455, %465 : vector<2x32xf32>
    %467 = arith.addf %464, %466 : vector<2x32xf32>
    %468 = math.tanh %467 : vector<2x32xf32>
    %cst_106 = arith.constant 1.000000e+00 : f32
    %469 = vector.broadcast %cst_106 : f32 to vector<2x32xf32>
    %470 = arith.subf %469, %463 : vector<2x32xf32>
    %471 = arith.mulf %470, %468 : vector<2x32xf32>
    %472 = arith.mulf %463, %407 : vector<2x32xf32>
    %473 = arith.addf %471, %472 : vector<2x32xf32>
    %c6_107 = arith.constant 6 : index
    %c0_108 = arith.constant 0 : index
    %c0_109 = arith.constant 0 : index
    %474 = vector.load %arg11[%c6_107, %c0_108, %c0_109] : memref<8x2x64xf32, #tpu.memory_space<vmem>>, vector<1x2x32xf32>
    %475 = vector.shape_cast %474 : vector<1x2x32xf32> to vector<2x32xf32>
    %476 = vector.shape_cast %446 : vector<2x32xf32> to vector<1x2x32xf32>
    tpu.vector_store %arg11[%c6_107, %c0_108, %c0_109], %476 {strides = array<i32>} : memref<8x2x64xf32, #tpu.memory_space<vmem>>, vector<1x2x32xf32>,
    %c1_110 = arith.constant 1 : index
    %c0_111 = arith.constant 0 : index
    %c32_112 = arith.constant 32 : index
    %477 = vector.load %arg11[%c1_110, %c0_111, %c32_112] : memref<8x2x64xf32, #tpu.memory_space<vmem>>, vector<1x2x32xf32>
    %478 = vector.shape_cast %477 : vector<1x2x32xf32> to vector<2x32xf32>
    %479 = vector.shape_cast %473 : vector<2x32xf32> to vector<1x2x32xf32>
    tpu.vector_store %arg11[%c1_110, %c0_111, %c32_112], %479 {strides = array<i32>} : memref<8x2x64xf32, #tpu.memory_space<vmem>>, vector<1x2x32xf32>,
    %cst_113 = arith.constant dense<0.000000e+00> : vector<2x96xf32>
    %480 = tpu.matmul %446, %12, %cst_113 {dimension_numbers = #tpu.dot_dimension_numbers<[1], [0], [0], [1], [0, 0, 1, 1], [], []>} : vector<2x32xf32>, vector<32x96xf32>, vector<2x96xf32> -> vector<2x96xf32>
    %481 = vector.broadcast %13 : vector<1x96xf32> to vector<2x96xf32>
    %482 = arith.addf %480, %481 : vector<2x96xf32>
    %cst_114 = arith.constant dense<0.000000e+00> : vector<2x96xf32>
    %483 = tpu.matmul %473, %14, %cst_114 {dimension_numbers = #tpu.dot_dimension_numbers<[1], [0], [0], [1], [0, 0, 1, 1], [], []>} : vector<2x32xf32>, vector<32x96xf32>, vector<2x96xf32> -> vector<2x96xf32>
    %484 = vector.broadcast %15 : vector<1x96xf32> to vector<2x96xf32>
    %485 = arith.addf %483, %484 : vector<2x96xf32>
    %486 = vector.extract_strided_slice %6 {offsets = [14, 0], sizes = [2, 96], strides = [1, 1]} : vector<16x96xf32> to vector<2x96xf32>
    %487 = vector.extract_strided_slice %486 {offsets = [0, 0], sizes = [2, 32], strides = [1, 1]} : vector<2x96xf32> to vector<2x32xf32>
    %488 = vector.extract_strided_slice %482 {offsets = [0, 0], sizes = [2, 32], strides = [1, 1]} : vector<2x96xf32> to vector<2x32xf32>
    %489 = arith.addf %487, %488 : vector<2x32xf32>
    %490 = arith.negf %489 : vector<2x32xf32>
    %491 = math.exp %490 : vector<2x32xf32>
    %cst_115 = arith.constant 1.000000e+00 : f32
    %492 = vector.broadcast %cst_115 : f32 to vector<2x32xf32>
    %493 = arith.addf %492, %491 : vector<2x32xf32>
    %494 = arith.divf %492, %493 : vector<2x32xf32>
    %495 = vector.extract_strided_slice %486 {offsets = [0, 32], sizes = [2, 32], strides = [1, 1]} : vector<2x96xf32> to vector<2x32xf32>
    %496 = vector.extract_strided_slice %482 {offsets = [0, 32], sizes = [2, 32], strides = [1, 1]} : vector<2x96xf32> to vector<2x32xf32>
    %497 = arith.addf %495, %496 : vector<2x32xf32>
    %498 = arith.negf %497 : vector<2x32xf32>
    %499 = math.exp %498 : vector<2x32xf32>
    %cst_116 = arith.constant 1.000000e+00 : f32
    %500 = vector.broadcast %cst_116 : f32 to vector<2x32xf32>
    %501 = arith.addf %500, %499 : vector<2x32xf32>
    %502 = arith.divf %500, %501 : vector<2x32xf32>
    %503 = vector.extract_strided_slice %486 {offsets = [0, 64], sizes = [2, 32], strides = [1, 1]} : vector<2x96xf32> to vector<2x32xf32>
    %504 = vector.extract_strided_slice %482 {offsets = [0, 64], sizes = [2, 32], strides = [1, 1]} : vector<2x96xf32> to vector<2x32xf32>
    %505 = arith.mulf %494, %504 : vector<2x32xf32>
    %506 = arith.addf %503, %505 : vector<2x32xf32>
    %507 = math.tanh %506 : vector<2x32xf32>
    %cst_117 = arith.constant 1.000000e+00 : f32
    %508 = vector.broadcast %cst_117 : f32 to vector<2x32xf32>
    %509 = arith.subf %508, %502 : vector<2x32xf32>
    %510 = arith.mulf %509, %507 : vector<2x32xf32>
    %511 = arith.mulf %502, %446 : vector<2x32xf32>
    %512 = arith.addf %510, %511 : vector<2x32xf32>
    %513 = vector.extract_strided_slice %11 {offsets = [0, 0], sizes = [2, 96], strides = [1, 1]} : vector<16x96xf32> to vector<2x96xf32>
    %514 = vector.extract_strided_slice %513 {offsets = [0, 0], sizes = [2, 32], strides = [1, 1]} : vector<2x96xf32> to vector<2x32xf32>
    %515 = vector.extract_strided_slice %485 {offsets = [0, 0], sizes = [2, 32], strides = [1, 1]} : vector<2x96xf32> to vector<2x32xf32>
    %516 = arith.addf %514, %515 : vector<2x32xf32>
    %517 = arith.negf %516 : vector<2x32xf32>
    %518 = math.exp %517 : vector<2x32xf32>
    %cst_118 = arith.constant 1.000000e+00 : f32
    %519 = vector.broadcast %cst_118 : f32 to vector<2x32xf32>
    %520 = arith.addf %519, %518 : vector<2x32xf32>
    %521 = arith.divf %519, %520 : vector<2x32xf32>
    %522 = vector.extract_strided_slice %513 {offsets = [0, 32], sizes = [2, 32], strides = [1, 1]} : vector<2x96xf32> to vector<2x32xf32>
    %523 = vector.extract_strided_slice %485 {offsets = [0, 32], sizes = [2, 32], strides = [1, 1]} : vector<2x96xf32> to vector<2x32xf32>
    %524 = arith.addf %522, %523 : vector<2x32xf32>
    %525 = arith.negf %524 : vector<2x32xf32>
    %526 = math.exp %525 : vector<2x32xf32>
    %cst_119 = arith.constant 1.000000e+00 : f32
    %527 = vector.broadcast %cst_119 : f32 to vector<2x32xf32>
    %528 = arith.addf %527, %526 : vector<2x32xf32>
    %529 = arith.divf %527, %528 : vector<2x32xf32>
    %530 = vector.extract_strided_slice %513 {offsets = [0, 64], sizes = [2, 32], strides = [1, 1]} : vector<2x96xf32> to vector<2x32xf32>
    %531 = vector.extract_strided_slice %485 {offsets = [0, 64], sizes = [2, 32], strides = [1, 1]} : vector<2x96xf32> to vector<2x32xf32>
    %532 = arith.mulf %521, %531 : vector<2x32xf32>
    %533 = arith.addf %530, %532 : vector<2x32xf32>
    %534 = math.tanh %533 : vector<2x32xf32>
    %cst_120 = arith.constant 1.000000e+00 : f32
    %535 = vector.broadcast %cst_120 : f32 to vector<2x32xf32>
    %536 = arith.subf %535, %529 : vector<2x32xf32>
    %537 = arith.mulf %536, %534 : vector<2x32xf32>
    %538 = arith.mulf %529, %473 : vector<2x32xf32>
    %539 = arith.addf %537, %538 : vector<2x32xf32>
    %c7_121 = arith.constant 7 : index
    %c0_122 = arith.constant 0 : index
    %c0_123 = arith.constant 0 : index
    %540 = vector.load %arg11[%c7_121, %c0_122, %c0_123] : memref<8x2x64xf32, #tpu.memory_space<vmem>>, vector<1x2x32xf32>
    %541 = vector.shape_cast %540 : vector<1x2x32xf32> to vector<2x32xf32>
    %542 = vector.shape_cast %512 : vector<2x32xf32> to vector<1x2x32xf32>
    tpu.vector_store %arg11[%c7_121, %c0_122, %c0_123], %542 {strides = array<i32>} : memref<8x2x64xf32, #tpu.memory_space<vmem>>, vector<1x2x32xf32>,
    %c0_124 = arith.constant 0 : index
    %c0_125 = arith.constant 0 : index
    %c32_126 = arith.constant 32 : index
    %543 = vector.load %arg11[%c0_124, %c0_125, %c32_126] : memref<8x2x64xf32, #tpu.memory_space<vmem>>, vector<1x2x32xf32>
    %544 = vector.shape_cast %543 : vector<1x2x32xf32> to vector<2x32xf32>
    %545 = vector.shape_cast %539 : vector<2x32xf32> to vector<1x2x32xf32>
    tpu.vector_store %arg11[%c0_124, %c0_125, %c32_126], %545 {strides = array<i32>} : memref<8x2x64xf32, #tpu.memory_space<vmem>>, vector<1x2x32xf32>,
    %c0_127 = arith.constant 0 : index
    %c0_128 = arith.constant 0 : index
    %546 = vector.load %arg12[%c0_127, %c0_128] : memref<2x32xf32, #tpu.memory_space<vmem>>, vector<2x32xf32>
    tpu.vector_store %arg12[%c0_127, %c0_128], %512 {strides = array<i32>} : memref<2x32xf32, #tpu.memory_space<vmem>>, vector<2x32xf32>,
    %c0_129 = arith.constant 0 : index
    %c0_130 = arith.constant 0 : index
    %547 = vector.load %arg13[%c0_129, %c0_130] : memref<2x32xf32, #tpu.memory_space<vmem>>, vector<2x32xf32>
    tpu.vector_store %arg13[%c0_129, %c0_130], %539 {strides = array<i32>} : memref<2x32xf32, #tpu.memory_space<vmem>>, vector<2x32xf32>,
    return
  }
}

</mosaic_0001>

<bundles_post_ra>
// kernel: s2s_forward.3
= control target key start
LH: loop header
LB: loop body
LE: loop exit
PB: predicated region body
PF: predicated region fallthrough
CT: control target
= control target key end

     0   :  { %21 = vsyncpa [#allocation3], 0  ;;  %v87_v3 = vlaneseq  ;;  %v2613_v6 = vmov 1983009808   ;;  %s3210_s0 = inlined_call_operand.vmem [shape: f32[8,2,64], index: 0, kind: input, shape index: {}]   ;;  %s3211_s1 = inlined_call_operand.vmem [shape: f32[2,32], index: 1, kind: input, shape index: {}]   ;;  %s3212_s2 = inlined_call_operand.vmem [shape: f32[2,32], index: 2, kind: input, shape index: {}]   ;;  %s3213_s3 = inlined_call_operand.vmem [shape: f32[4,2,64], index: 3, kind: input, shape index: {}]   ;;  %s3214_s4 = inlined_call_operand.vmem [shape: f32[64,16], index: 4, kind: input, shape index: {}]   ;;  %s3215_s5 = inlined_call_operand.vmem [shape: f32[64,32], index: 5, kind: input, shape index: {}]   ;;  %s3216_s6 = inlined_call_operand.vmem [shape: f32[1,32], index: 6, kind: input, shape index: {}]   ;;  %s3217_s7 = inlined_call_operand.vmem [shape: f32[16,96], index: 7, kind: input, shape index: {}]   ;;  %s3218_s8 = inlined_call_operand.vmem [shape: f32[64,96], index: 8, kind: input, shape index: {}]   ;;  %s3219_s9 = inlined_call_operand.vmem [shape: f32[32,96], index: 9, kind: input, shape index: {}]   ;;  %s3220_s10 = inlined_call_operand.vmem [shape: f32[1,96], index: 10, kind: input, shape index: {}]   ;;  %s3221_s11 = inlined_call_operand.vmem [shape: f32[1,96], index: 11, kind: input, shape index: {}]   ;;  %s3222_s12 = inlined_call_operand.vmem [shape: f32[32,64], index: 12, kind: input, shape index: {}]   ;;  %s3223_s13 = inlined_call_operand.vmem [shape: f32[1,64], index: 13, kind: input, shape index: {}]   ;;  %s3224_s14 = inlined_call_operand.hbm [shape: f32[1,1], index: 14, kind: output, shape index: {0}]   ;;  %s3225_s15 = inlined_call_operand.hbm [shape: f32[2,4], index: 15, kind: output, shape index: {1}]  }
   0x1   :  { %v59_v0 = vld [vmem:[%s3215_s5] sm:$0xff]  ;;  %v60_v1 = vld [vmem:[%s3215_s5 + $0x8] sm:$0xff]  ;;  %v61_v2 = vld [vmem:[%s3215_s5 + $0x10] sm:$0xff]  ;;  %v85_v7 = vunpack.c.l.s4 %v2613_v6 }
   0x2   :  { %v2388_v4 = vpack.c.bf16 %v60_v1, %v59_v0  ;;  %v62_v5 = vld [vmem:[%s3215_s5 + $0x18] sm:$0xff]  ;;  %v63_v9 = vld [vmem:[%s3215_s5 + $0x20] sm:$0xff]  ;;  %v64_v10 = vld [vmem:[%s3215_s5 + $0x28] sm:$0xff]  ;;  %v2726_v12 = vshrl.u32 %v87_v3, 7 }
   0x3   :  { %v2392_v8 = vpack.c.bf16 %v62_v5, %v61_v2  ;;  %v2723_v11 = vld [vmem:[%s3210_s0] sm:$0x3]  ;;  %v2731_v13 = vld [vmem:[%s3210_s0 + $0x2] sm:$0x3]  ;;  %v2736_v14 = vld [vmem:[%s3210_s0 + $0x4] sm:$0x3]  ;;  %v86_v16 = vunpack.c.0.s8 %v85_v7  ;;  %v2396_v22 = vpack.c.bf16 %v64_v10, %v63_v9 }
   0x4   :  { %2389 = vmatprep.subr.bf16.mxu0 %v2388_v4  ;;  %v2741_v15 = vld [vmem:[%s3210_s0 + $0x6] sm:$0x3]  ;;  %v82_v17 = vcombine.low %v2723_v11, %v2731_v13  ;;  %v2750_v19 = vld [vmem:[%s3210_s0 + $0x8] sm:$0x3]  ;;  %v2755_v20 = vld [vmem:[%s3210_s0 + $0xa] sm:$0x3] }
   0x5   :  { %2391 = vmatpush3.bf16.msra.mxu0 %v2388_v4  ;;  %v83_v18 = vcombine.low %v2736_v14, %v2741_v15  ;;  %v2760_v21 = vld [vmem:[%s3210_s0 + $0xc] sm:$0x3]  ;;  %v89_v23 = vsub.s32 %v86_v16, %v2726_v12  ;;  %v2766_v24 = vld [vmem:[%s3210_s0 + $0xe] sm:$0x3] }
   0x6   :  { %2393 = vmatprep.subr.bf16.mxu0 %v2392_v8 }
   0x7   :  { %22 = vsyncpa [#allocation5], 0  ;;  %v65_v25 = vld [vmem:[%s3215_s5 + $0x30] sm:$0xff]  ;;  %v66_v26 = vld [vmem:[%s3215_s5 + $0x38] sm:$0xff]  ;;  %v90_v27 = vrot.slane %v82_v17, %v89_v23  ;;  %v97_v28 = vrot.slane %v83_v18, %v89_v23  ;;  %v99_v29 = vcombine.low %v2750_v19, %v2755_v20  ;;  %v100_v30 = vcombine.low %v2760_v21, %v2766_v24  ;;  %s2620_s20 = smov [#allocation4]  }
   0x8   :  { %vm116_vm0 = vcmask 523264   ;;  %v2400_v31 = vpack.c.bf16 %v66_v26, %v65_v25  ;;  %v2047_v36 = vld [vmem:[%s3216_s6] ss:$0 sm:$0xff]  ;;  %vm249_vm1 = vcmask 254976   ;;  %v2795_v5 = vand.u32 127, %v87_v3  ;;  %s2619_s6 = smov 96  }
   0x9   :  { %2395 = vmatpush3.bf16.msra.mxu0 %v2392_v8  ;;  %v98_v32 = vcombine.low %v90_v27, %v97_v28  ;;  %v107_v33 = vrot.slane %v99_v29, %v89_v23  ;;  %v114_v34 = vrot.slane %v100_v30, %v89_v23  ;;  %v240_v42 = vld [vmem:[%s3211_s1] sm:$0x3]  ;;  %vm316_vm2 = vcmask 1041409   ;;  %s2035_s21 = sshll.u32 %s2620_s20, 4  ;;  %s2036_s21 = int_to_ptr.vmem [resolvable:$true] %s2035_s21 }
   0xa   :  { %2397 = vmatprep.subr.bf16.mxu0 %v2396_v22  ;;  %v286_v8 = vsub.s32 %v2795_v5, %v2726_v12  ;;  %vm318_vm3 = vcmask 1042434   ;;  %vm320_vm4 = vcmask 1043459   ;;  %vm322_vm5 = vcmask 1044484   ;;  %p2570_p1 = scmp.lt.s32.totalorder %s2036_s21, %s2036_s21 }
   0xb   :  { %2193 = vmatprep.mubr.msk.f32.mxu0 %vm116_vm0, %v98_v32  ;;  %v115_v35 = vcombine.low %v107_v33, %v114_v34  ;;  %vm324_vm6 = vcmask 1045509   ;;  %vm326_vm7 = vcmask 1046534   ;;  %vm328_vm8 = vcmask 1047559  }
   0xc   :  { %vm363_vm9 = vcmask 58368   ;;  %vm2615_vm10 = vmmov 0   ;;  %vm471_vm11 = vcmask 517120   ;;  %vm600_vm12 = vcmask 130048  }
   0xd   :  { %2399 = vmatpush3.bf16.msra.mxu0 %v2396_v22  ;;  %vm680_vm13 = vcmask 261120  }
   0xe   :  { %2401 = vmatprep.subr.bf16.mxu0 %v2400_v31 }
  0x11   :  { %2403 = vmatpush3.bf16.msra.mxu0 %v2400_v31 }
  0x14   :  { %2194 = vmatmul.mubr.msk.f32.vlgmr.msra.gmra.mrb[0].mxu0 %vm116_vm0, %v115_v35 }
  0xe7   :  { %v2195_v37 = vpop.f32.mrb[0].mxu0 }
  0xe8   :  { %v193_v38 = vadd.f32 %v2195_v37, %v2047_v36  ;;  %v187_v39 = vpop.f32.mrb[1].mxu0 }
  0xe9   :  { %v188_v40 = vadd.f32 %v2047_v36, %v187_v39 }
  0xea   :  { %v222_v41 = vrot.slane %v193_v38, %v89_v23  ;;  %v215_v45 = vcombine.high %v193_v38, %v193_v38 }
  0xeb   :  { %v198_v43 = vcombine.high %v188_v40, %v188_v40  ;;  %v205_v44 = vrot.slane %v188_v40, %v89_v23 }
  0xec   :  { %v230_v46 = vcombine.high %v222_v41, %v222_v41  ;;  %v229_v56 = vrot.slane %v215_v45, %v89_v23  ;;  %v245_v58 = vmul.f32 %v240_v42, %v222_v41 }
  0xed   :  { %v241_v47 = vmul.f32 %v240_v42, %v205_v44  ;;  %v213_v48 = vcombine.high %v205_v44, %v205_v44  ;;  %v212_v49 = vrot.slane %v198_v43, %v89_v23 }
  0xee   :  { %v246_v50 = vmul.f32 %v240_v42, %v230_v46  ;;  %v231_v61 = vcombine.high %v229_v56, %v229_v56  ;;  %v262_v62 = vsel %vm249_vm1, %v245_v58, 0.0  ;;  %v247_v63 = vmul.f32 %v240_v42, %v229_v56  ;;  %v492_v58 = vld [vmem:[%s3218_s8 + $0x28] sm:$0xff] }
  0xef   :  { %v250_v51 = vsel %vm249_vm1, %v241_v47, 0.0  ;;  %v242_v52 = vmul.f32 %v240_v42, %v213_v48  ;;  %v243_v54 = vmul.f32 %v240_v42, %v212_v49  ;;  %v214_v55 = vcombine.high %v212_v49, %v212_v49  ;;  %v487_v48 = vld [vmem:[%s3218_s8] sm:$0xff]  ;;  %v488_v49 = vld [vmem:[%s3218_s8 + $0x8] sm:$0xff] }
  0xf0   :  { %251 = vadd.xlane.f32.xlu0 %v250_v51  ;;  %v265_v53 = vsel %vm249_vm1, %v246_v50, 0.0  ;;  %v248_v1 = vmul.f32 %v240_v42, %v231_v61  ;;  %v268_v2 = vsel %vm249_vm1, %v247_v63, 0.0  ;;  %v2405_v50 = vpack.c.bf16 %v488_v49, %v487_v48  ;;  %v583_v48 = vld [vmem:[%s3217_s7] sm:$0xff] }
  0xf1   :  { %266 = vadd.xlane.f32.xlu1 %v265_v53  ;;  %v253_v57 = vsel %vm249_vm1, %v242_v52, 0.0  ;;  %v256_v59 = vsel %vm249_vm1, %v243_v54, 0.0  ;;  %v244_v60 = vmul.f32 %v240_v42, %v214_v55  ;;  %v2614_v51 = vmov 0.0|0.0   ;;  %v489_v52 = vld [vmem:[%s3218_s8 + $0x10] sm:$0xff]  ;;  %v490_v53 = vld [vmem:[%s3218_s8 + $0x18] sm:$0xff] }
  0xf2   :  { %v271_v4 = vsel %vm249_vm1, %v248_v1, 0.0  ;;  %2404 = vmatprep.subr.bf16.mxu1 %v2614_v51  ;;  %2425 = vmatprep.subr.bf16.mxu0 %v2614_v51  ;;  %v2408_v54 = vpack.c.bf16 %v490_v53, %v489_v52  ;;  %v416_v55 = vsub.s32 1, %v2726_v12  ;;  %v409_v56 = vsub.s32 0, %v2726_v12  ;;  %v493_v1 = vld [vmem:[%s3218_s8 + $0x30] sm:$0xff]  ;;  %v585_v53 = vld [vmem:[%s3219_s9] sm:$0xff] }
  0xf3   :  { %v259_v0 = vsel %vm249_vm1, %v244_v60, 0.0  ;;  %2406 = vmatpush3.bf16.msra.mxu1 %v2405_v50  ;;  %v430_v63 = vsub.s32 3, %v2726_v12  ;;  %v2867_v50 = vld [vmem:[%s3214_s4] sm:$0xff]  ;;  %vm987_vm1 = vcmask 1024  }
  0xf4   :  { %254 = vadd.xlane.f32.xlu0 %v253_v57  ;;  %2407 = vmatprep.subr.bf16.mxu1 %v2614_v51  ;;  %v491_v57 = vld [vmem:[%s3218_s8 + $0x20] sm:$0xff] }
  0xf5   :  { %257 = vadd.xlane.f32.xlu1 %v256_v59  ;;  %v2411_v60 = vpack.c.bf16 %v492_v58, %v491_v57  ;;  %v587_v58 = vld [vmem:[%s3219_s9 + $0x10] sm:$0xff] }
  0xf7   :  { %2409 = vmatpush3.bf16.msra.mxu1 %v2408_v54  ;;  %v586_v54 = vld [vmem:[%s3219_s9 + $0x8] sm:$0xff] }
  0xf8   :  { %263 = vadd.xlane.f32.xlu0 %v262_v62  ;;  %2410 = vmatprep.subr.bf16.mxu1 %v2614_v51  ;;  %v2885_v57 = vpack.c.bf16 %v586_v54, %v585_v53 }
  0xf9   :  { %260 = vadd.xlane.f32.xlu1 %v259_v0  ;;  %v423_v0 = vsub.s32 2, %v2726_v12 }
  0xfb   :  { %2412 = vmatpush3.bf16.msra.mxu1 %v2411_v60 }
  0xfc   :  { %269 = vadd.xlane.f32.xlu0 %v268_v2  ;;  %v494_v2 = vld [vmem:[%s3218_s8 + $0x38] sm:$0xff]  ;;  %2413 = vmatprep.subr.bf16.mxu1 %v2614_v51 }
  0xfd   :  { %272 = vadd.xlane.f32.xlu1 %v271_v4  ;;  %v2414_v4 = vpack.c.bf16 %v494_v2, %v493_v1 }
  0xff   :  { %2415 = vmatpush3.bf16.msra.mxu1 %v2414_v4 }
 0x100   :  { %2416 = vmatprep.subr.bf16.mxu1 %v2614_v51 }
 0x17d   :  { %v252_v6 = vpop.xlane.xlu0 %251 }
 0x17e   :  { %v267_v7 = vpop.xlane.xlu1 %266  ;;  %v287_v17 = vrot.slane %v252_v6, %v286_v8 }
 0x17f   :  { %v307_v28 = vrot.slane %v267_v7, %v286_v8 }
 0x181   :  { %v255_v9 = vpop.xlane.xlu0 %254 }
 0x182   :  { %v291_v10 = vrot.slane %v255_v9, %v286_v8  ;;  %v258_v16 = vpop.xlane.xlu1 %257  ;;  %v437_v9 = vsub.s32 4, %v2726_v12 }
 0x183   :  { %v295_v18 = vrot.slane %v258_v16, %v286_v8 }
 0x184   :  { %v317_v22 = vsel %vm316_vm2, %v291_v10, %v287_v17  ;;  %v2616_v10 = vmov 0.0  }
 0x185   :  { %v264_v23 = vpop.xlane.xlu0 %263  ;;  %v319_v3 = vsel %vm318_vm3, %v295_v18, %v317_v22  ;;  %2212 = vmatprep.mubr.msk.f32.mxu1 %vm2615_vm10, %v2616_v10  ;;  %v458_v18 = vsub.s32 7, %v2726_v12  ;;  %v451_v22 = vsub.s32 6, %v2726_v12  ;;  %2241 = vmatprep.mubr.msk.f32.mxu0 %vm2615_vm10, %v2616_v10 }
 0x186   :  { %v261_v25 = vpop.xlane.xlu1 %260  ;;  %v303_v27 = vrot.slane %v264_v23, %v286_v8 }
 0x187   :  { %v299_v26 = vrot.slane %v261_v25, %v286_v8 }
 0x189   :  { %v321_v29 = vsel %vm320_vm4, %v299_v26, %v319_v3  ;;  %v270_v30 = vpop.xlane.xlu0 %269 }
 0x18a   :  { %v311_v31 = vrot.slane %v270_v30, %v286_v8  ;;  %v273_v32 = vpop.xlane.xlu1 %272  ;;  %v323_v33 = vsel %vm322_vm5, %v303_v27, %v321_v29  ;;  %vm1355_vm5 = vcmask 9224  }
 0x18b   :  { %v315_v34 = vrot.slane %v273_v32, %v286_v8  ;;  %v325_v35 = vsel %vm324_vm6, %v307_v28, %v323_v33  ;;  %v444_v8 = vsub.s32 5, %v2726_v12  ;;  %v588_v12 = vld [vmem:[%s3219_s9 + $0x18] sm:$0xff] }
 0x18c   :  { %v327_v36 = vsel %vm326_vm7, %v311_v31, %v325_v35 }
 0x18d   :  { %v329_v37 = vsel %vm328_vm8, %v315_v34, %v327_v36 }
 0x18e   :  { %331 = vxpose.xlu0.b32.start.end [1/1] (short) (narrow) %v329_v37, 8 }
 0x20e   :  { %v347_v38 = vpop.trf.xlu0 }
 0x20f   :  { %v364_v39 = vsel %vm363_vm9, %v347_v38, -inf }
 0x210   :  { %365 = vmax.xlane.f32.xlu1 %v364_v39 }
 0x29d   :  { %v366_v40 = vpop.xlane.xlu1 %365 }
 0x29e   :  { %v367_v41 = vsub.f32 %v347_v38, %v366_v40 }
 0x2a0   :  { %v368_v42 = vmul.f32 1.442695, %v367_v41 }
 0x2a2   :  { %2521 = vpow2.f32 %v368_v42 }
 0x2ac   :  { %v2522_v43 = vpop.eup %2521 }
 0x2ad   :  { %v370_v44 = vsel %vm363_vm9, %v2522_v43, 0.0  ;;  %vm1723_vm9 = vcmask 17424  }
 0x2ae   :  { %371 = vadd.xlane.f32.xlu1 %v370_v44 }
 0x33b   :  { %v372_v45 = vpop.xlane.xlu1 %371 }
 0x33c   :  { %2523 = vrcp.f32 %v372_v45 }
 0x346   :  { %v2524_v46 = vpop.eup %2523 }
 0x347   :  { %v374_v47 = vmul.f32 %v2524_v46, %v2522_v43 }
 0x349   :  { %375 = vxpose.xlu1.b32.start.end [1/1] (short) (narrow) %v374_v47, 8 }
 0x3c9   :  { %v391_v59 = vpop.trf.xlu1 }
 0x3ca   :  { %v417_v61 = vrot.slane %v391_v59, %v416_v55  ;;  %v410_v62 = vrot.slane %v391_v59, %v409_v56  ;;  %v431_v6 = vrot.slane %v391_v59, %v430_v63  ;;  %v424_v7 = vrot.slane %v391_v59, %v423_v0  ;;  %v2912_v0 = vld [vmem:[%s3221_s11] ss:$0 sm:$0xff]  ;;  %s2618_s11 = smov 32  }
 0x3cb   :  { %v445_v16 = vrot.slane %v391_v59, %v444_v8  ;;  %v438_v17 = vrot.slane %v391_v59, %v437_v9  ;;  %v459_v23 = vrot.slane %v391_v59, %v458_v18  ;;  %v452_v25 = vrot.slane %v391_v59, %v451_v22  ;;  %v599_v59 = vld [vmem:[%s3212_s2] sm:$0x3]  ;;  %s2617_s2 = smov 64  }
 0x3cc   :  { %419 = vbcast.lane.b32.xlu1 %v417_v61, 256  ;;  %412 = vbcast.lane.b32.xlu0 %v410_v62, 256  ;;  %v598_v56 = vrot.slane %v2867_v50, %v416_v55  ;;  %v2896_v55 = vpack.c.bf16 %v588_v12, %v587_v58  ;;  %v581_v12 = vld [vmem:[%s3214_s4 + $0x30] sm:$0xff] }
 0x3d0   :  { %433 = vbcast.lane.b32.xlu1 %v431_v6, 256  ;;  %426 = vbcast.lane.b32.xlu0 %v424_v7, 256  ;;  %v2050_v6 = vld [vmem:[%s3220_s10] ss:$0 sm:$0xff] }
 0x3d4   :  { %447 = vbcast.lane.b32.xlu1 %v445_v16, 256  ;;  %440 = vbcast.lane.b32.xlu0 %v438_v17, 256 }
 0x3d8   :  { %461 = vbcast.lane.b32.xlu1 %v459_v23, 256  ;;  %454 = vbcast.lane.b32.xlu0 %v452_v25, 256 }
 0x43e   :  { %v420_v26 = vpop.permute.xlu1 %419  ;;  %v413_v3 = vpop.permute.xlu0 %412 }
 0x43f   :  { %v464_v27 = vmul.f32 %v420_v26, %v2731_v13  ;;  %v463_v28 = vmul.f32 %v413_v3, %v2723_v11 }
 0x441   :  { %v473_v29 = vsel %vm471_vm11, %v464_v27, 0.0  ;;  %v472_v30 = vsel %vm471_vm11, %v463_v28, 0.0  ;;  %v590_v27 = vld [vmem:[%s3222_s12] sm:$0xff]  ;;  %v591_v28 = vld [vmem:[%s3222_s12 + $0x8] sm:$0xff] }
 0x442   :  { %v434_v31 = vpop.permute.xlu1 %433  ;;  %v427_v32 = vpop.permute.xlu0 %426  ;;  %v474_v35 = vadd.f32 %v473_v29, %v472_v30  ;;  %v592_v29 = vld [vmem:[%s3222_s12 + $0x10] sm:$0xff]  ;;  %v2932_v30 = vpack.c.bf16 %v591_v28, %v590_v27 }
 0x443   :  { %v466_v33 = vmul.f32 %v434_v31, %v2741_v15  ;;  %v465_v34 = vmul.f32 %v427_v32, %v2736_v14  ;;  %v593_v31 = vld [vmem:[%s3222_s12 + $0x18] sm:$0xff] }
 0x444   :  { %2427 = vmatpush3.bf16.msra.mxu0 %v2932_v30  ;;  %v2938_v32 = vpack.c.bf16 %v593_v31, %v592_v29 }
 0x445   :  { %v475_v36 = vsel %vm471_vm11, %v465_v34, 0.0  ;;  %v477_v13 = vsel %vm471_vm11, %v466_v33, 0.0  ;;  %2428 = vmatprep.subr.bf16.mxu0 %v2614_v51 }
 0x446   :  { %v476_v37 = vadd.f32 %v475_v36, %v474_v35  ;;  %v448_v38 = vpop.permute.xlu1 %447  ;;  %v441_v39 = vpop.permute.xlu0 %440 }
 0x447   :  { %v468_v11 = vmul.f32 %v448_v38, %v2755_v20  ;;  %v467_v40 = vmul.f32 %v441_v39, %v2750_v19  ;;  %v584_v19 = vld [vmem:[%s3217_s7 + $0x8] sm:$0xff] }
 0x448   :  { %v478_v41 = vadd.f32 %v477_v13, %v476_v37  ;;  %2430 = vmatpush3.bf16.msra.mxu0 %v2938_v32 }
 0x449   :  { %v479_v42 = vsel %vm471_vm11, %v467_v40, 0.0  ;;  %v481_v14 = vsel %vm471_vm11, %v468_v11, 0.0  ;;  %2443 = vmatprep.subr.bf16.mxu0 %v2614_v51  ;;  %v2959_v11 = vld [vmem:[%s3223_s13] ss:$0 sm:$0xff] }
 0x44a   :  { %v480_v43 = vadd.f32 %v479_v42, %v478_v41  ;;  %v462_v44 = vpop.permute.xlu1 %461  ;;  %v455_v15 = vpop.permute.xlu0 %454 }
 0x44b   :  { %v470_v45 = vmul.f32 %v462_v44, %v2766_v24  ;;  %v469_v46 = vmul.f32 %v455_v15, %v2760_v21  ;;  %v2870_v21 = vpack.c.bf16 %v584_v19, %v583_v48  ;;  %v577_v48 = vld [vmem:[%s3214_s4 + $0x10] sm:$0xff]  ;;  %v578_v19 = vld [vmem:[%s3214_s4 + $0x18] sm:$0xff] }
 0x44c   :  { %v482_v47 = vadd.f32 %v481_v14, %v480_v43 }
 0x44d   :  { %v483_v20 = vsel %vm471_vm11, %v469_v46, 0.0  ;;  %v485_v24 = vsel %vm471_vm11, %v470_v45, 0.0 }
 0x44e   :  { %v484_v49 = vadd.f32 %v483_v20, %v482_v47  ;;  %v576_v47 = vld [vmem:[%s3214_s4 + $0x8] sm:$0xff] }
 0x44f   :  { %v2982_v20 = vpack.c.bf16 %v576_v47, %v2867_v50 }
 0x450   :  { %v486_v52 = vadd.f32 %v485_v24, %v484_v49  ;;  %v2985_v49 = vpack.c.bf16 %v578_v19, %v577_v48  ;;  %v579_v24 = vld [vmem:[%s3214_s4 + $0x20] sm:$0xff] }
 0x452   :  { %2213 = vmatmul.mubr.msk.f32.vlgmr.msra.gmra.mrb[0].mxu1 %vm116_vm0, %v486_v52  ;;  %v580_v52 = vld [vmem:[%s3214_s4 + $0x28] sm:$0xff] }
 0x453   :  { %2418 = vmatpush3.bf16.msra.mxu1 %v2870_v21  ;;  %2219 = vmatprep.mubr.msk.f32.mxu1 %vm2615_vm10, %v2616_v10  ;;  %v2995_v53 = vpack.c.bf16 %v580_v52, %v579_v24 }
 0x454   :  { %2419 = vmatprep.subr.bf16.mxu1 %v2614_v51 }
 0x456   :  { %2220 = vmatmul.mubr.msk.f32.vlgmr.msra.gmra.mrb[2].mxu1 %vm600_vm12, %v598_v56 }
 0x457   :  { %2421 = vmatpush3.bf16.msra.mxu1 %v2885_v57  ;;  %2230 = vmatprep.mubr.msk.f32.mxu1 %vm2615_vm10, %v2616_v10 }
 0x458   :  { %2422 = vmatprep.subr.bf16.mxu1 %v2614_v51 }
 0x45b   :  { %2424 = vmatpush3.bf16.msra.mxu1 %v2896_v55 }
 0x45c   :  { %2431 = vmatprep.subr.bf16.mxu1 %v2614_v51 }
 0x45e   :  { %2231 = vmatmul.mubr.msk.f32.vlgmr.msra.gmra.mrb[4].mxu1 %vm680_vm13, %v599_v59 }
 0x45f   :  { %2260 = vmatprep.mubr.msk.f32.mxu1 %vm2615_vm10, %v2616_v10  ;;  %2433 = vmatpush3.bf16.msra.mxu1 %v2982_v20 }
 0x460   :  { %2434 = vmatprep.subr.bf16.mxu1 %v2614_v51 }
 0x463   :  { %2436 = vmatpush3.bf16.msra.mxu1 %v2985_v49 }
 0x464   :  { %2437 = vmatprep.subr.bf16.mxu1 %v2614_v51 }
 0x467   :  { %2439 = vmatpush3.bf16.msra.mxu1 %v2995_v53 }
 0x468   :  { %2440 = vmatprep.subr.bf16.mxu1 %v2614_v51 }
 0x525   :  { %v571_v60 = vpop.f32.mrb[0].mxu1 }
 0x526   :  { %v2214_v61 = vpop.f32.mrb[1].mxu1  ;;  %v2919_v7 = vadd.f32 %v2050_v6, %v571_v60 }
 0x529   :  { %v670_v62 = vpop.f32.mrb[2].mxu1 }
 0x52a   :  { %v2221_v63 = vpop.f32.mrb[3].mxu1  ;;  %v671_v8 = vadd.f32 %v670_v62, %v2919_v7 }
 0x531   :  { %v750_v1 = vpop.f32.mrb[4].mxu1 }
 0x532   :  { %v751_v2 = vadd.f32 %v2912_v0, %v750_v1  ;;  %v2232_v4 = vpop.f32.mrb[5].mxu1 }
 0x534   :  { %762 = vrot.lane.b32.xlu0 %v751_v2, %s2617_s2  ;;  %v754_v9 = vadd.f32 %v751_v2, %v671_v8 }
 0x536   :  { %v2055_v16 = vmul.f32 -1.442695, %v754_v9 }
 0x538   :  { %2525 = vpow2.f32 %v2055_v16 }
 0x542   :  { %v2526_v17 = vpop.eup %2525 }
 0x543   :  { %v758_v18 = vadd.f32 1.0, %v2526_v17 }
 0x545   :  { %2527 = vrcp.f32 %v758_v18 }
 0x54f   :  { %v2528_v22 = vpop.eup %2527 }
 0x550   :  { %v772_v35 = vsub.f32 1.0, %v2528_v22 }
 0x5a6   :  { %v763_v23 = vpop.permute.xlu0 %762 }
 0x5a7   :  { %v765_v25 = vmul.f32 %v2528_v22, %v763_v23 }
 0x5a9   :  { %767 = vrot.lane.b32.xlu1 %v765_v25, %s2617_s2 }
 0x5ad   :  { %778 = vrot.lane.b32.xlu1 %v599_v59, %s2618_s11  ;;  %v582_v59 = vld [vmem:[%s3214_s4 + $0x38] sm:$0xff] }
 0x5ae   :  { %v3006_v60 = vpack.c.bf16 %v582_v59, %v581_v12 }
 0x5b0   :  { %2442 = vmatpush3.bf16.msra.mxu1 %v3006_v60 }
 0x5b1   :  { %2458 = vmatprep.subr.bf16.mxu1 %v2614_v51 }
 0x61b   :  { %v768_v26 = vpop.permute.xlu1 %767 }
 0x61c   :  { %v770_v3 = vadd.f32 %v768_v26, %v671_v8 }
 0x61e   :  { %2529 = vtanh.f32 %v770_v3 }
 0x61f   :  { %v779_v34 = vpop.permute.xlu1 %778 }
 0x620   :  { %v781_v37 = vmul.f32 %v2528_v22, %v779_v34 }
 0x628   :  { %v2530_v33 = vpop.eup %2529 }
 0x629   :  { %774 = vrot.lane.b32.xlu0 %v2530_v33, %s2619_s6 }
 0x69b   :  { %v775_v36 = vpop.permute.xlu0 %774 }
 0x69c   :  { %v777_v38 = vmul.f32 %v775_v36, %v772_v35 }
 0x69e   :  { %v2944_v39 = vadd.f32 %v781_v37, %v777_v38 }
 0x6a0   :  { %790 = vrot.lane.b32.xlu0 %v2944_v39, %s2619_s6 }
 0x712   :  { %v2948_v13 = vpop.permute.xlu0 %790 }
 0x713   :  { %2242 = vmatmul.mubr.msk.f32.vlgmr.msra.gmra.mrb[2].mxu0 %vm680_vm13, %v2948_v13 }
 0x714   :  { %2445 = vmatpush3.bf16.msra.mxu0 %v2870_v21  ;;  %2267 = vmatprep.mubr.msk.f32.mxu0 %vm2615_vm10, %v2616_v10 }
 0x715   :  { %2446 = vmatprep.subr.bf16.mxu0 %v2614_v51 }
 0x7e6   :  { %v860_v40 = vpop.f32.mrb[2].mxu0 }
 0x7e7   :  { %v2962_v41 = vadd.f32 %v2959_v11, %v860_v40  ;;  %v2243_v42 = vpop.f32.mrb[3].mxu0 }
 0x7e9   :  { %v864_v43 = vsel %vm471_vm11, %v2962_v41, -inf }
 0x7ea   :  { %865 = vmax.xlane.f32.xlu1 %v864_v43 }
 0x877   :  { %v2966_v44 = vpop.xlane.xlu1 %865 }
 0x878   :  { %vm893_vm14 = vcmp.ge.f32.partialorder %v2962_v41, %v2966_v44 }
 0x879   :  { %v894_v15 = vsel %vm893_vm14, %v2795_v5, 64 }
 0x87a   :  { %v895_v14 = vsel %vm471_vm11, %v894_v15, 2147483647 }
 0x87b   :  { %v897_v45 = vshra.s32 %v895_v14, 16  ;;  %v896_v50 = vand.u32 65535, %v895_v14 }
 0x87d   :  { %v899_v46 = vcvt.s32.f32 %v897_v45  ;;  %v898_v56 = vcvt.s32.f32 %v896_v50 }
 0x87f   :  { %900 = vmin.xlane.f32.xlu0 %v899_v46 }
 0x90c   :  { %v901_v54 = vpop.xlane.xlu0 %900 }
 0x90d   :  { %vm902_vm15 = vcmp.eq.f32.partialorder %v899_v46, %v901_v54  ;;  %v907_v61 = vcvt.f32.s32 %v901_v54 }
 0x90e   :  { %v903_v58 = vsel %vm902_vm15, %v898_v56, inf }
 0x90f   :  { %904 = vmin.xlane.f32.xlu0 %v903_v58  ;;  %v908_v63 = vshll.u32 %v907_v61, 16 }
 0x99c   :  { %v905_v62 = vpop.xlane.xlu0 %904 }
 0x99d   :  { %v906_v1 = vcvt.f32.s32 %v905_v62 }
 0x99f   :  { %v909_v2 = vadd.s32 %v908_v63, %v906_v1 }
 0x9a1   :  { %vm910_vm2 = vcmp.eq.s32.totalorder %v2795_v5, %v909_v2  ;;  %v986_v4 = vcvt.s32.f32 %v909_v2 }
 0x9a2   :  { %v2058_v6 = vsel %vm910_vm2, 1.0, %v2616_v10 }
 0x9a3   :  { %988 = vst.msk [vmem:[#allocation4] sm:$0x3] %vm987_vm1, %v986_v4  ;;  %2261 = vmatmul.mubr.msk.f32.vlgmr.msra.gmra.mrb[6].mxu1 %vm116_vm0, %v2058_v6 }
 0x9a4   :  { %2460 = vmatpush3.bf16.msra.mxu1 %v2982_v20  ;;  %2308 = vmatprep.mubr.msk.f32.mxu1 %vm2615_vm10, %v2616_v10 }
 0x9a5   :  { %2461 = vmatprep.subr.bf16.mxu1 %v2614_v51 }
 0x9a8   :  { %2463 = vmatpush3.bf16.msra.mxu1 %v2985_v49 }
 0x9a9   :  { %2464 = vmatprep.subr.bf16.mxu1 %v2614_v51 }
 0x9ac   :  { %2466 = vmatpush3.bf16.msra.mxu1 %v2995_v53 }
 0x9ad   :  { %2467 = vmatprep.subr.bf16.mxu1 %v2614_v51 }
 0x9b0   :  { %2469 = vmatpush3.bf16.msra.mxu1 %v3006_v60 }
 0x9b1   :  { %2479 = vmatprep.subr.bf16.mxu1 %v2614_v51 }
 0xa76   :  { %v982_v8 = vpop.f32.mrb[6].mxu1 }
 0xa77   :  { %v2262_v9 = vpop.f32.mrb[7].mxu1  ;;  %2268 = vmatmul.mubr.msk.f32.vlgmr.msra.gmra.mrb[4].mxu0 %vm600_vm12, %v982_v8 }
 0xa78   :  { %2448 = vmatpush3.bf16.msra.mxu0 %v2885_v57  ;;  %2278 = vmatprep.mubr.msk.f32.mxu0 %vm2615_vm10, %v2616_v10 }
 0xa79   :  { %2449 = vmatprep.subr.bf16.mxu0 %v2614_v51 }
 0xa7c   :  { %2451 = vmatpush3.bf16.msra.mxu0 %v2896_v55 }
 0xa7d   :  { %2452 = vmatprep.subr.bf16.mxu0 %v2614_v51 }
 0xa7f   :  { %2279 = vmatmul.mubr.msk.f32.vlgmr.msra.gmra.mrb[6].mxu0 %vm680_vm13, %v2948_v13 }
 0xa80   :  { %2454 = vmatpush3.bf16.msra.mxu0 %v2932_v30  ;;  %2289 = vmatprep.mubr.msk.f32.mxu0 %vm2615_vm10, %v2616_v10 }
 0xa81   :  { %2455 = vmatprep.subr.bf16.mxu0 %v2614_v51 }
 0xa84   :  { %2457 = vmatpush3.bf16.msra.mxu0 %v2938_v32 }
 0xa85   :  { %2470 = vmatprep.subr.bf16.mxu0 %v2614_v51 }
 0xb4a   :  { %v1058_v16 = vpop.f32.mrb[4].mxu0 }
 0xb4b   :  { %v2269_v17 = vpop.f32.mrb[5].mxu0  ;;  %v1059_v25 = vadd.f32 %v1058_v16, %v2919_v7 }
 0xb52   :  { %v1128_v18 = vpop.f32.mrb[6].mxu0 }
 0xb53   :  { %v1129_v22 = vadd.f32 %v2912_v0, %v1128_v18  ;;  %v2280_v23 = vpop.f32.mrb[7].mxu0 }
 0xb55   :  { %1140 = vrot.lane.b32.xlu0 %v1129_v22, %s2617_s2  ;;  %v1132_v26 = vadd.f32 %v1129_v22, %v1059_v25 }
 0xb57   :  { %v2062_v3 = vmul.f32 -1.442695, %v1132_v26 }
 0xb59   :  { %2531 = vpow2.f32 %v2062_v3 }
 0xb63   :  { %v2532_v27 = vpop.eup %2531 }
 0xb64   :  { %v1136_v28 = vadd.f32 1.0, %v2532_v27 }
 0xb66   :  { %2533 = vrcp.f32 %v1136_v28 }
 0xb70   :  { %v2534_v29 = vpop.eup %2533 }
 0xb71   :  { %v1150_v37 = vsub.f32 1.0, %v2534_v29  ;;  %v1156_v13 = vmul.f32 %v2534_v29, %v2944_v39 }
 0xbc7   :  { %v1141_v31 = vpop.permute.xlu0 %1140 }
 0xbc8   :  { %v1143_v33 = vmul.f32 %v2534_v29, %v1141_v31 }
 0xbca   :  { %1145 = vrot.lane.b32.xlu1 %v1143_v33, %s2617_s2 }
 0xc3c   :  { %v1146_v34 = vpop.permute.xlu1 %1145 }
 0xc3d   :  { %v1148_v35 = vadd.f32 %v1146_v34, %v1059_v25 }
 0xc3f   :  { %2535 = vtanh.f32 %v1148_v35 }
 0xc49   :  { %v2536_v36 = vpop.eup %2535 }
 0xc4a   :  { %1152 = vrot.lane.b32.xlu1 %v2536_v36, %s2619_s6 }
 0xcbc   :  { %v1153_v38 = vpop.permute.xlu1 %1152 }
 0xcbd   :  { %v1155_v40 = vmul.f32 %v1153_v38, %v1150_v37 }
 0xcbf   :  { %v3044_v42 = vadd.f32 %v1156_v13, %v1155_v40 }
 0xcc1   :  { %1159 = vrot.lane.b32.xlu1 %v3044_v42, %s2619_s6 }
 0xd33   :  { %v1160_v43 = vpop.permute.xlu1 %1159 }
 0xd34   :  { %2290 = vmatmul.mubr.msk.f32.vlgmr.msra.gmra.mrb[8].mxu0 %vm680_vm13, %v1160_v43 }
 0xd35   :  { %2472 = vmatpush3.bf16.msra.mxu0 %v2870_v21  ;;  %2315 = vmatprep.mubr.msk.f32.mxu0 %vm2615_vm10, %v2616_v10 }
 0xd36   :  { %2473 = vmatprep.subr.bf16.mxu0 %v2614_v51 }
 0xe07   :  { %v1229_v15 = vpop.f32.mrb[8].mxu0 }
 0xe08   :  { %v3054_v14 = vadd.f32 %v2959_v11, %v1229_v15  ;;  %v2291_v39 = vpop.f32.mrb[9].mxu0 }
 0xe0a   :  { %v1233_v45 = vsel %vm471_vm11, %v3054_v14, -inf }
 0xe0b   :  { %1234 = vmax.xlane.f32.xlu0 %v1233_v45 }
 0xe98   :  { %v3058_v46 = vpop.xlane.xlu0 %1234 }
 0xe99   :  { %vm1261_vm3 = vcmp.ge.f32.partialorder %v3054_v14, %v3058_v46 }
 0xe9a   :  { %v1262_v47 = vsel %vm1261_vm3, %v2795_v5, 64 }
 0xe9b   :  { %v1263_v48 = vsel %vm471_vm11, %v1262_v47, 2147483647 }
 0xe9c   :  { %v1265_v19 = vshra.s32 %v1263_v48, 16  ;;  %v1264_v52 = vand.u32 65535, %v1263_v48 }
 0xe9e   :  { %v1267_v24 = vcvt.s32.f32 %v1265_v19  ;;  %v1266_v54 = vcvt.s32.f32 %v1264_v52 }
 0xea0   :  { %1268 = vmin.xlane.f32.xlu1 %v1267_v24 }
 0xf2d   :  { %v1269_v50 = vpop.xlane.xlu1 %1268 }
 0xf2e   :  { %vm1270_vm4 = vcmp.eq.f32.partialorder %v1267_v24, %v1269_v50  ;;  %v1275_v58 = vcvt.f32.s32 %v1269_v50 }
 0xf2f   :  { %v1271_v56 = vsel %vm1270_vm4, %v1266_v54, inf }
 0xf30   :  { %1272 = vmin.xlane.f32.xlu0 %v1271_v56  ;;  %v1276_v59 = vshll.u32 %v1275_v58, 16 }
 0xfbd   :  { %v1273_v12 = vpop.xlane.xlu0 %1272 }
 0xfbe   :  { %v1274_v61 = vcvt.f32.s32 %v1273_v12 }
 0xfc0   :  { %v1277_v62 = vadd.s32 %v1276_v59, %v1274_v61 }
 0xfc2   :  { %vm1278_vm6 = vcmp.eq.s32.totalorder %v2795_v5, %v1277_v62  ;;  %v1354_v63 = vcvt.s32.f32 %v1277_v62 }
 0xfc3   :  { %v2065_v1 = vsel %vm1278_vm6, 1.0, %v2616_v10 }
 0xfc4   :  { %2309 = vmatmul.mubr.msk.f32.vlgmr.msra.gmra.mrb[8].mxu1 %vm116_vm0, %v2065_v1  ;;  %1356 = vst.msk [vmem:[#allocation4] sm:$0x3] %vm1355_vm5, %v1354_v63 }
 0xfc5   :  { %2481 = vmatpush3.bf16.msra.mxu1 %v2932_v30  ;;  %2337 = vmatprep.mubr.msk.f32.mxu1 %vm2615_vm10, %v2616_v10 }
 0xfc6   :  { %2482 = vmatprep.subr.bf16.mxu1 %v2614_v51 }
 0xfc9   :  { %2484 = vmatpush3.bf16.msra.mxu1 %v2938_v32 }
 0xfca   :  { %2497 = vmatprep.subr.bf16.mxu1 %v2614_v51 }
0x1097   :  { %v1350_v2 = vpop.f32.mrb[8].mxu1 }
0x1098   :  { %v2310_v4 = vpop.f32.mrb[9].mxu1  ;;  %2316 = vmatmul.mubr.msk.f32.vlgmr.msra.gmra.mrb[10].mxu0 %vm600_vm12, %v1350_v2 }
0x1099   :  { %2475 = vmatpush3.bf16.msra.mxu0 %v2885_v57  ;;  %2326 = vmatprep.mubr.msk.f32.mxu0 %vm2615_vm10, %v2616_v10 }
0x109a   :  { %2476 = vmatprep.subr.bf16.mxu0 %v2614_v51 }
0x109d   :  { %2478 = vmatpush3.bf16.msra.mxu0 %v2896_v55 }
0x109e   :  { %2485 = vmatprep.subr.bf16.mxu0 %v2614_v51 }
0x10a0   :  { %2327 = vmatmul.mubr.msk.f32.vlgmr.msra.gmra.mrb[12].mxu0 %vm680_vm13, %v1160_v43 }
0x10a1   :  { %2487 = vmatpush3.bf16.msra.mxu0 %v2982_v20  ;;  %2356 = vmatprep.mubr.msk.f32.mxu0 %vm2615_vm10, %v2616_v10 }
0x10a2   :  { %2488 = vmatprep.subr.bf16.mxu0 %v2614_v51 }
0x10a5   :  { %2490 = vmatpush3.bf16.msra.mxu0 %v2985_v49 }
0x10a6   :  { %2491 = vmatprep.subr.bf16.mxu0 %v2614_v51 }
0x10a9   :  { %2493 = vmatpush3.bf16.msra.mxu0 %v2995_v53 }
0x10aa   :  { %2494 = vmatprep.subr.bf16.mxu0 %v2614_v51 }
0x10ad   :  { %2496 = vmatpush3.bf16.msra.mxu0 %v3006_v60 }
0x10ae   :  { %2506 = vmatprep.subr.bf16.mxu0 %v2614_v51 }
0x116b   :  { %v1426_v6 = vpop.f32.mrb[10].mxu0 }
0x116c   :  { %v2317_v8 = vpop.f32.mrb[11].mxu0  ;;  %v1427_v49 = vadd.f32 %v1426_v6, %v2919_v7 }
0x1173   :  { %v1496_v20 = vpop.f32.mrb[12].mxu0 }
0x1174   :  { %v1497_v9 = vadd.f32 %v2912_v0, %v1496_v20  ;;  %v2328_v16 = vpop.f32.mrb[13].mxu0 }
0x1176   :  { %1508 = vrot.lane.b32.xlu0 %v1497_v9, %s2617_s2  ;;  %v1500_v17 = vadd.f32 %v1497_v9, %v1427_v49 }
0x1178   :  { %v2069_v18 = vmul.f32 -1.442695, %v1500_v17 }
0x117a   :  { %2537 = vpow2.f32 %v2069_v18  ;;  %v867_v18 = vsub.f32 %v2962_v41, %v2966_v44 }
0x1184   :  { %v2538_v53 = vpop.eup %2537 }
0x1185   :  { %v1504_v22 = vadd.f32 1.0, %v2538_v53  ;;  %v868_v53 = vmul.f32 1.442695, %v867_v18 }
0x1187   :  { %2539 = vrcp.f32 %v1504_v22 }
0x1191   :  { %v2540_v23 = vpop.eup %2539 }
0x1192   :  { %v1518_v28 = vsub.f32 1.0, %v2540_v23  ;;  %v1524_v31 = vmul.f32 %v2540_v23, %v3044_v42 }
0x11e8   :  { %v1509_v60 = vpop.permute.xlu0 %1508 }
0x11e9   :  { %v1511_v25 = vmul.f32 %v2540_v23, %v1509_v60 }
0x11eb   :  { %1513 = vrot.lane.b32.xlu1 %v1511_v25, %s2617_s2  ;;  %v1236_v25 = vsub.f32 %v3054_v14, %v3058_v46 }
0x125d   :  { %v1514_v26 = vpop.permute.xlu1 %1513 }
0x125e   :  { %v1516_v3 = vadd.f32 %v1514_v26, %v1427_v49  ;;  %v1237_v26 = vmul.f32 1.442695, %v1236_v25 }
0x1260   :  { %2541 = vtanh.f32 %v1516_v3 }
0x126a   :  { %v2542_v27 = vpop.eup %2541 }
0x126b   :  { %1520 = vrot.lane.b32.xlu1 %v2542_v27, %s2619_s6 }
0x12dd   :  { %v1521_v29 = vpop.permute.xlu1 %1520 }
0x12de   :  { %v1523_v33 = vmul.f32 %v1521_v29, %v1518_v28 }
0x12e0   :  { %v3097_v34 = vadd.f32 %v1524_v31, %v1523_v33 }
0x12e2   :  { %1527 = vrot.lane.b32.xlu0 %v3097_v34, %s2619_s6 }
0x1354   :  { %v1528_v35 = vpop.permute.xlu0 %1527 }
0x1355   :  { %2338 = vmatmul.mubr.msk.f32.vlgmr.msra.gmra.mrb[10].mxu1 %vm680_vm13, %v1528_v35 }
0x1356   :  { %2499 = vmatpush3.bf16.msra.mxu1 %v2870_v21  ;;  %2363 = vmatprep.mubr.msk.f32.mxu1 %vm2615_vm10, %v2616_v10 }
0x1357   :  { %2500 = vmatprep.subr.bf16.mxu1 %v2614_v51 }
0x1428   :  { %v1597_v36 = vpop.f32.mrb[10].mxu1 }
0x1429   :  { %v3107_v37 = vadd.f32 %v2959_v11, %v1597_v36  ;;  %v2339_v38 = vpop.f32.mrb[11].mxu1 }
0x142b   :  { %v1601_v13 = vsel %vm471_vm11, %v3107_v37, -inf }
0x142c   :  { %1602 = vmax.xlane.f32.xlu1 %v1601_v13 }
0x14b9   :  { %v3111_v40 = vpop.xlane.xlu1 %1602 }
0x14ba   :  { %vm1629_vm7 = vcmp.ge.f32.partialorder %v3107_v37, %v3111_v40  ;;  %v1604_v3 = vsub.f32 %v3107_v37, %v3111_v40 }
0x14bb   :  { %v1630_v21 = vsel %vm1629_vm7, %v2795_v5, 64 }
0x14bc   :  { %v1631_v42 = vsel %vm471_vm11, %v1630_v21, 2147483647  ;;  %v1605_v27 = vmul.f32 1.442695, %v1604_v3 }
0x14bd   :  { %v1633_v43 = vshra.s32 %v1631_v42, 16  ;;  %v1632_v39 = vand.u32 65535, %v1631_v42 }
0x14bf   :  { %v1635_v15 = vcvt.s32.f32 %v1633_v43  ;;  %v1634_v47 = vcvt.s32.f32 %v1632_v39 }
0x14c1   :  { %1636 = vmin.xlane.f32.xlu0 %v1635_v15 }
0x154e   :  { %v1637_v45 = vpop.xlane.xlu0 %1636 }
0x154f   :  { %vm1638_vm8 = vcmp.eq.f32.partialorder %v1635_v15, %v1637_v45  ;;  %v1643_v19 = vcvt.f32.s32 %v1637_v45 }
0x1550   :  { %v1639_v48 = vsel %vm1638_vm8, %v1634_v47, inf }
0x1551   :  { %1640 = vmin.xlane.f32.xlu0 %v1639_v48  ;;  %v1644_v52 = vshll.u32 %v1643_v19, 16 }
0x15de   :  { %v1641_v24 = vpop.xlane.xlu0 %1640 }
0x15df   :  { %v1642_v50 = vcvt.f32.s32 %v1641_v24 }
0x15e1   :  { %v1645_v54 = vadd.s32 %v1644_v52, %v1642_v50 }
0x15e3   :  { %vm1646_vm14 = vcmp.eq.s32.totalorder %v2795_v5, %v1645_v54  ;;  %v1722_v56 = vcvt.s32.f32 %v1645_v54 }
0x15e4   :  { %v2072_v58 = vsel %vm1646_vm14, 1.0, %v2616_v10 }
0x15e5   :  { %2357 = vmatmul.mubr.msk.f32.vlgmr.msra.gmra.mrb[14].mxu0 %vm116_vm0, %v2072_v58  ;;  %1724 = vst.msk [vmem:[#allocation4] sm:$0x3] %vm1723_vm9, %v1722_v56 }
0x15e6   :  { %2508 = vmatpush3.bf16.msra.mxu0 %v2932_v30  ;;  %2385 = vmatprep.mubr.msk.f32.mxu0 %vm2615_vm10, %v2616_v10 }
0x15e7   :  { %2509 = vmatprep.subr.bf16.mxu0 %v2614_v51 }
0x15ea   :  { %2511 = vmatpush3.bf16.msra.mxu0 %v2938_v32 }
0x16b8   :  { %v1718_v12 = vpop.f32.mrb[14].mxu0 }
0x16b9   :  { %v2358_v59 = vpop.f32.mrb[15].mxu0  ;;  %2364 = vmatmul.mubr.msk.f32.vlgmr.msra.gmra.mrb[12].mxu1 %vm600_vm12, %v1718_v12  ;;  %vm882_vm12 = vcmask 1041408  }
0x16ba   :  { %2502 = vmatpush3.bf16.msra.mxu1 %v2885_v57  ;;  %2374 = vmatprep.mubr.msk.f32.mxu1 %vm2615_vm10, %v2616_v10 }
0x16bb   :  { %2503 = vmatprep.subr.bf16.mxu1 %v2614_v51 }
0x16be   :  { %2505 = vmatpush3.bf16.msra.mxu1 %v2896_v55 }
0x16c1   :  { %2375 = vmatmul.mubr.msk.f32.vlgmr.msra.gmra.mrb[14].mxu1 %vm680_vm13, %v1528_v35 }
0x178c   :  { %v1794_v30 = vpop.f32.mrb[12].mxu1 }
0x178d   :  { %v2365_v61 = vpop.f32.mrb[13].mxu1  ;;  %v1795_v1 = vadd.f32 %v1794_v30, %v2919_v7 }
0x1794   :  { %v1864_v62 = vpop.f32.mrb[14].mxu1 }
0x1795   :  { %v1865_v32 = vadd.f32 %v2912_v0, %v1864_v62  ;;  %v2376_v63 = vpop.f32.mrb[15].mxu1 }
0x1797   :  { %1876 = vrot.lane.b32.xlu0 %v1865_v32, %s2617_s2  ;;  %v1868_v57 = vadd.f32 %v1865_v32, %v1795_v1 }
0x1799   :  { %v2076_v2 = vmul.f32 -1.442695, %v1868_v57  ;;  %v2071_v57 = vld [vmem:[%s3213_s3 + $0x4] sm:$0x3] }
0x179b   :  { %2543 = vpow2.f32 %v2076_v2 }
0x17a5   :  { %v2544_v10 = vpop.eup %2543 }
0x17a6   :  { %v1872_v4 = vadd.f32 1.0, %v2544_v10 }
0x17a8   :  { %2545 = vrcp.f32 %v1872_v4 }
0x17b2   :  { %v2546_v51 = vpop.eup %2545 }
0x17b3   :  { %v1886_v9 = vsub.f32 1.0, %v2546_v51  ;;  %v1892_v7 = vmul.f32 %v2546_v51, %v3097_v34 }
0x1809   :  { %v1877_v55 = vpop.permute.xlu0 %1876 }
0x180a   :  { %v1879_v6 = vmul.f32 %v2546_v51, %v1877_v55 }
0x180c   :  { %1881 = vrot.lane.b32.xlu1 %v1879_v6, %s2617_s2 }
0x187e   :  { %v1882_v8 = vpop.permute.xlu1 %1881 }
0x187f   :  { %v1884_v20 = vadd.f32 %v1882_v8, %v1795_v1 }
0x1881   :  { %2547 = vtanh.f32 %v1884_v20 }
0x1882   :  { %2549 = vpow2.f32 %v868_v53 }
0x1883   :  { %2551 = vpow2.f32 %v1237_v26 }
0x1884   :  { %2553 = vpow2.f32 %v1605_v27 }
0x188b   :  { %v2548_v0 = vpop.eup %2547 }
0x188c   :  { %1888 = vrot.lane.b32.xlu1 %v2548_v0, %s2619_s6  ;;  %v2550_v22 = vpop.eup %2549 }
0x188d   :  { %v870_v23 = vsel %vm471_vm11, %v2550_v22, 0.0  ;;  %v2552_v34 = vpop.eup %2551 }
0x188e   :  { %v1239_v35 = vsel %vm471_vm11, %v2552_v34, 0.0  ;;  %v2554_v36 = vpop.eup %2553 }
0x188f   :  { %v1607_v38 = vsel %vm471_vm11, %v2554_v36, 0.0 }
0x18fe   :  { %v1889_v16 = vpop.permute.xlu1 %1888 }
0x18ff   :  { %v1891_v49 = vmul.f32 %v1889_v16, %v1886_v9 }
0x1901   :  { %v1893_v17 = vadd.f32 %v1892_v7, %v1891_v49 }
0x1903   :  { %1895 = vrot.lane.b32.xlu1 %v1893_v17, %s2619_s6 }
0x1927   :  { %871 = vadd.xlane.f32.xlu1 %v870_v23 }
0x1975   :  { %v1896_v60 = vpop.permute.xlu1 %1895 }
0x1976   :  { %2386 = vmatmul.mubr.msk.f32.vlgmr.msra.gmra.mrb[16].mxu0 %vm680_vm13, %v1896_v60  ;;  %vm2015_vm13 = vcmask 25624  }
0x19b4   :  { %v872_v13 = vpop.xlane.xlu1 %871 }
0x19b5   :  { %2555 = vlog2.f32 %v872_v13 }
0x19bf   :  { %v2556_v42 = vpop.eup %2555 }
0x19c0   :  { %v874_v45 = vmul.f32 0.6931472, %v2556_v42 }
0x19c2   :  { %v875_v24 = vadd.f32 %v874_v45, %v2966_v44 }
0x19c4   :  { %v876_v50 = vsub.f32 %v2962_v41, %v875_v24  ;;  %v2064_v41 = vld [vmem:[%s3213_s3 + $0x2] sm:$0x3] }
0x1a49   :  { %v1965_v28 = vpop.f32.mrb[16].mxu0 }
0x1a4a   :  { %v3148_v29 = vadd.f32 %v2959_v11, %v1965_v28  ;;  %v2387_v31 = vpop.f32.mrb[17].mxu0 }
0x1a4c   :  { %v1969_v33 = vsel %vm471_vm11, %v3148_v29, -inf }
0x1a4d   :  { %1970 = vmax.xlane.f32.xlu0 %v1969_v33 }
0x1a51   :  { %1240 = vadd.xlane.f32.xlu0 %v1239_v35 }
0x1a55   :  { %1608 = vadd.xlane.f32.xlu0 %v1607_v38 }
0x1ada   :  { %v1971_v21 = vpop.xlane.xlu0 %1970 }
0x1adb   :  { %v1972_v11 = vsub.f32 %v3148_v29, %v1971_v21  ;;  %vm1997_vm0 = vcmp.ge.f32.partialorder %v3148_v29, %v1971_v21 }
0x1adc   :  { %v1998_v43 = vsel %vm1997_vm0, %v2795_v5, 64  ;;  %v877_v5 = vld [vmem:[%s3213_s3] sm:$0x3] }
0x1add   :  { %v1973_v15 = vmul.f32 1.442695, %v1972_v11  ;;  %v1999_v39 = vsel %vm471_vm11, %v1998_v43, 2147483647  ;;  %v878_v12 = vmul.f32 %v877_v5, %v876_v50 }
0x1ade   :  { %v1241_v47 = vpop.xlane.xlu0 %1240  ;;  %v2001_v48 = vshra.s32 %v1999_v39, 16  ;;  %v2000_v51 = vand.u32 65535, %v1999_v39 }
0x1adf   :  { %2557 = vpow2.f32 %v1973_v15  ;;  %v879_v62 = vsel %vm471_vm11, %v878_v12, 0.0 }
0x1ae0   :  { %2559 = vlog2.f32 %v1241_v47  ;;  %v2003_v19 = vcvt.s32.f32 %v2001_v48  ;;  %v2002_v6 = vcvt.s32.f32 %v2000_v51 }
0x1ae2   :  { %2004 = vmin.xlane.f32.xlu1 %v2003_v19  ;;  %v1609_v52 = vpop.xlane.xlu0 %1608 }
0x1ae3   :  { %2561 = vlog2.f32 %v1609_v52 }
0x1ae9   :  { %v2558_v54 = vpop.eup %2557 }
0x1aea   :  { %v2560_v56 = vpop.eup %2559  ;;  %v1975_v58 = vsel %vm471_vm11, %v2558_v54, 0.0 }
0x1aeb   :  { %v1243_v59 = vmul.f32 0.6931472, %v2560_v56  ;;  %1976 = vadd.xlane.f32.xlu0 %v1975_v58 }
0x1aed   :  { %v2562_v30 = vpop.eup %2561  ;;  %v1244_v61 = vadd.f32 %v1243_v59, %v3058_v46 }
0x1aee   :  { %v1611_v44 = vmul.f32 0.6931472, %v2562_v30 }
0x1aef   :  { %880 = vadd.xlane.f32.xlu0 %v879_v62  ;;  %v1245_v32 = vsub.f32 %v3054_v14, %v1244_v61 }
0x1af0   :  { %v1612_v63 = vadd.f32 %v1611_v44, %v3111_v40 }
0x1af1   :  { %v1248_v1 = vmul.f32 %v2064_v41, %v1245_v32 }
0x1af2   :  { %v1613_v2 = vsub.f32 %v3107_v37, %v1612_v63  ;;  %v2078_v37 = vld [vmem:[%s3213_s3 + $0x6] sm:$0x3]  ;;  %s2565_s3 = scalar_lea.vmem %s2036_s21, 32 }
0x1af3   :  { %v1249_v46 = vsel %vm471_vm11, %v1248_v1, 0.0  ;;  %p2566_p0 = scmp.ne.s32.totalorder %s2036_s21, %s2565_s3  ;;  %p2571_p2 = scmp.lt.s32.totalorder %s2565_s3, %s2565_s3 }
0x1af4   :  { %1250 = vadd.xlane.f32.xlu1 %v1249_v46  ;;  %v1616_v10 = vmul.f32 %v2071_v57, %v1613_v2 }
0x1af5   :  { %p2572_p3 = por %p2571_p2, %p2570_p1 }
0x1af6   :  { %v1617_v4 = vsel %vm471_vm11, %v1616_v10, 0.0 }
0x1af7   :  { %1618 = vadd.xlane.f32.xlu0 %v1617_v4  ;;  %p2573_p4 = pnand %p2572_p3, %p2566_p0 }
0x1b6f   :  { %v2005_v55 = vpop.xlane.xlu1 %2004 }
0x1b70   :  { %vm2006_vm10 = vcmp.eq.f32.partialorder %v2003_v19, %v2005_v55  ;;  %v2011_v18 = vcvt.f32.s32 %v2005_v55 }
0x1b71   :  { %v2007_v14 = vsel %vm2006_vm10, %v2002_v6, inf }
0x1b72   :  { %2008 = vmin.xlane.f32.xlu0 %v2007_v14  ;;  %v2012_v22 = vshll.u32 %v2011_v18, 16 }
0x1b78   :  { %v1977_v40 = vpop.xlane.xlu0 %1976 }
0x1b79   :  { %2563 = vlog2.f32 %v1977_v40 }
0x1b7c   :  { %v881_v49 = vpop.xlane.xlu0 %880 }
0x1b7d   :  { %v883_v3 = vsel %vm882_vm12, %v881_v49, 0.0 }
0x1b81   :  { %v1251_v25 = vpop.xlane.xlu1 %1250 }
0x1b82   :  { %v1252_v27 = vsel %vm882_vm12, %v1251_v25, 0.0 }
0x1b83   :  { %v2564_v8 = vpop.eup %2563 }
0x1b84   :  { %v1979_v20 = vmul.f32 0.6931472, %v2564_v8  ;;  %v1619_v17 = vpop.xlane.xlu0 %1618 }
0x1b86   :  { %v1980_v0 = vadd.f32 %v1979_v20, %v1971_v21 }
0x1b88   :  { %v1981_v9 = vsub.f32 %v3148_v29, %v1980_v0 }
0x1b8a   :  { %v1984_v16 = vmul.f32 %v2078_v37, %v1981_v9 }
0x1b8c   :  { %v1985_v7 = vsel %vm471_vm11, %v1984_v16, 0.0 }
0x1b8d   :  { %1986 = vadd.xlane.f32.xlu1 %v1985_v7 }
0x1bff   :  { %v2009_v53 = vpop.xlane.xlu0 %2008 }
0x1c00   :  { %v2010_v23 = vcvt.f32.s32 %v2009_v53 }
0x1c02   :  { %v2013_v60 = vadd.s32 %v2012_v22, %v2010_v23 }
0x1c04   :  { %v2014_v26 = vcvt.s32.f32 %v2013_v60 }
0x1c06   :  { %2016 = vst.msk [vmem:[#allocation4] sm:$0x3] %vm2015_vm13, %v2014_v26 }
0x1c07   :  { %2576 = shalt.err (!%p2573_p4)
}
0x1c08   :  { %s2577_s12 = scalar_lea.hbm %s3225_s15, 32 }
0x1c09   :  { %p2578_p5 = scmp.ne.s32.totalorder %s3225_s15, %s2577_s12  ;;  %p2581_p6 = scmp.lt.u32.totalorder %s2577_s12, %s3225_s15 }
0x1c0b   :  { %p2583_p7 = pnand %p2581_p6, %p2578_p5 }
0x1c0d   :  { %2586 = shalt.err (!%p2583_p7)
}
0x1c0e   :  { %2038 = dma.vmem_to_hbm [thread:$0]  %s2036_s21, 32, %s3225_s15, [#allocation5]   ;;  %v884_v28 = vrot.slane %v883_v3, 4  ;;  %v1620_v29 = vsel %vm882_vm12, %v1619_v17, 0.0  ;;  %v1253_v31 = vrot.slane %v1252_v27, 4  ;;  %vm2017_vm11 = vcmask 0  }
0x1c0f   :  { %v1621_v34 = vrot.slane %v1620_v29, 4  ;;  %s2621_s15 = smov [#allocation2]  }
0x1c10   :  { %v885_v33 = vadd.f32 %v884_v28, %v883_v3  ;;  %v1254_v35 = vadd.f32 %v1253_v31, %v1252_v27  ;;  %s2025_s26 = sshll.u32 %s2621_s15, 4  ;;  %s2026_s26 = int_to_ptr.vmem [resolvable:$true] %s2025_s26 }
0x1c11   :  { %v1622_v38 = vadd.f32 %v1621_v34, %v1620_v29  ;;  %s2587_s27 = scalar_lea.vmem %s2026_s26, 16  ;;  %s2591_s28 = scalar_lea.vmem %s2026_s26, 32 }
0x1c12   :  { %v886_v36 = vrot.slane %v885_v33, 2  ;;  %v1255_v13 = vrot.slane %v1254_v35, 2  ;;  %p2588_p8 = scmp.ne.s32.totalorder %s2026_s26, %s2587_s27  ;;  %p2592_p9 = scmp.lt.s32.totalorder %s2026_s26, %s2026_s26 }
0x1c13   :  { %v1623_v42 = vrot.slane %v1622_v38, 2  ;;  %p2593_p10 = scmp.lt.s32.totalorder %s2591_s28, %s2587_s27 }
0x1c14   :  { %v887_v21 = vadd.f32 %v886_v36, %v885_v33  ;;  %v1256_v11 = vadd.f32 %v1255_v13, %v1254_v35 }
0x1c15   :  { %v1624_v15 = vadd.f32 %v1623_v42, %v1622_v38  ;;  %p2594_p11 = por %p2593_p10, %p2592_p9 }
0x1c16   :  { %v888_v43 = vrot.slane %v887_v21, 1  ;;  %v1257_v39 = vrot.slane %v1256_v11, 1 }
0x1c17   :  { %v1625_v19 = vrot.slane %v1624_v15, 1  ;;  %p2595_p12 = pnand %p2594_p11, %p2588_p8 }
0x1c18   :  { %v889_v48 = vadd.f32 %v888_v43, %v887_v21  ;;  %v1258_v52 = vadd.f32 %v1257_v39, %v1256_v11 }
0x1c19   :  { %v1626_v54 = vadd.f32 %v1625_v19, %v1624_v15 }
0x1c1a   :  { %v1987_v45 = vpop.xlane.xlu1 %1986  ;;  %v891_v5 = vmul.f32 0.5, %v889_v48  ;;  %v1259_v58 = vmul.f32 0.5, %v1258_v52 }
0x1c1b   :  { %v1988_v47 = vsel %vm882_vm12, %v1987_v45, 0.0  ;;  %v1627_v30 = vmul.f32 0.5, %v1626_v54 }
0x1c1c   :  { %v1989_v24 = vrot.slane %v1988_v47, 4  ;;  %v892_v59 = vsub.f32 0.0, %v891_v5 }
0x1c1e   :  { %v1990_v50 = vadd.f32 %v1989_v24, %v1988_v47  ;;  %v1260_v44 = vsub.f32 %v892_v59, %v1259_v58 }
0x1c20   :  { %v1991_v56 = vrot.slane %v1990_v50, 2  ;;  %v1628_v41 = vsub.f32 %v1260_v44, %v1627_v30 }
0x1c22   :  { %v1992_v12 = vadd.f32 %v1991_v56, %v1990_v50 }
0x1c24   :  { %v1993_v61 = vrot.slane %v1992_v12, 1 }
0x1c26   :  { %v1994_v62 = vadd.f32 %v1993_v61, %v1992_v12 }
0x1c28   :  { %v1995_v32 = vmul.f32 0.5, %v1994_v62 }
0x1c2a   :  { %v1996_v63 = vsub.f32 %v1628_v41, %v1995_v32 }
0x1c2c   :  { %2018 = vst.msk [vmem:[#allocation2] sm:$0x1] %vm2017_vm11, %v1996_v63 }
0x1c2d   :  { %2598 = shalt.err (!%p2595_p12)
}
0x1c2e   :  { %s2599_s9 = scalar_lea.hbm %s3224_s14, 16 }
0x1c2f   :  { %p2600_p13 = scmp.ne.s32.totalorder %s3224_s14, %s2599_s9  ;;  %p2603_p0 = scmp.lt.u32.totalorder %s2599_s9, %s3224_s14 }
0x1c31   :  { %p2605_p1 = pnand %p2603_p0, %p2600_p13 }
0x1c33   :  { %2608 = shalt.err (!%p2605_p1)
}
0x1c34   :  { %2028 = dma.vmem_to_hbm [thread:$0]  %s2026_s26, 16, %s3224_s14, [#allocation3]  }
0x1c35   :  { %2609 = dma.done.wait [#allocation3], 16  }
0x1c36   :  { %2610 = vsyncadd [#allocation3], 4294967280 }
0x1c37   :  { %2611 = dma.done.wait [#allocation5], 32  }
0x1c38   :  { %2612 = vsyncadd [#allocation5], 4294967264 }
0x1c39   :  { %2045 = vsyncpa [#allocation3], 1 }
0x1c3a   :  { %2046 = vsyncpa [#allocation5], 1 }

// kernel: s2s_forward.2
= control target key start
LH: loop header
LB: loop body
LE: loop exit
PB: predicated region body
PF: predicated region fallthrough
CT: control target
= control target key end

     0   :  { %v71_v0 = vlaneseq  ;;  %v2577_v4 = vmov 1983009808   ;;  %v2578_v25 = vmov 0.0|0.0   ;;  %vm100_vm0 = vcmask 130048   ;;  %s3128_s3 = inlined_call_operand.vmem [shape: f32[16,96], index: 3, kind: input, shape index: {}]   ;;  %s3129_s7 = inlined_call_operand.vmem [shape: f32[16,96], index: 7, kind: input, shape index: {}]   ;;  %s3130_s0 = inlined_call_operand.vmem [shape: f32[8,2,16], index: 0, kind: input, shape index: {}]   ;;  %s3131_s4 = inlined_call_operand.vmem [shape: f32[32,96], index: 4, kind: input, shape index: {}]   ;;  %s3132_s8 = inlined_call_operand.vmem [shape: f32[32,96], index: 8, kind: input, shape index: {}]   ;;  %s3133_s1 = inlined_call_operand.vmem [shape: f32[2,32], index: 1, kind: input, shape index: {}]   ;;  %s3134_s2 = inlined_call_operand.vmem [shape: f32[2,32], index: 2, kind: input, shape index: {}]   ;;  %s3135_s5 = inlined_call_operand.vmem [shape: f32[1,96], index: 5, kind: input, shape index: {}]   ;;  %s3136_s9 = inlined_call_operand.vmem [shape: f32[1,96], index: 9, kind: input, shape index: {}]   ;;  %s3137_s6 = inlined_call_operand.vmem [shape: f32[1,96], index: 6, kind: input, shape index: {}]   ;;  %s3138_s10 = inlined_call_operand.vmem [shape: f32[1,96], index: 10, kind: input, shape index: {}]   ;;  %s3139_s11 = inlined_call_operand.vmem [shape: f32[8,2,64], index: 11, kind: output, shape index: {0}]   ;;  %s3140_s12 = inlined_call_operand.vmem [shape: f32[2,32], index: 12, kind: output, shape index: {1}]   ;;  %s3141_s13 = inlined_call_operand.vmem [shape: f32[2,32], index: 13, kind: output, shape index: {2}]  }
   0x1   :  { %v49_v1 = vld [vmem:[%s3128_s3] sm:$0xff]  ;;  %v50_v2 = vld [vmem:[%s3128_s3 + $0x8] sm:$0xff]  ;;  %v69_v5 = vunpack.c.l.s4 %v2577_v4  ;;  %v266_v37 = vld [vmem:[%s3131_s4 + $0x10] sm:$0xff]  ;;  %vm2579_vm1 = vmmov 0   ;;  %v2580_v43 = vmov 0.0   ;;  %vm282_vm2 = vcmask 261120  }
   0x2   :  { %v180_v3 = vld [vmem:[%s3129_s7] sm:$0xff]  ;;  %v2370_v6 = vpack.c.bf16 %v50_v2, %v49_v1  ;;  %v181_v7 = vld [vmem:[%s3129_s7 + $0x8] sm:$0xff]  ;;  %v72_v10 = vshrl.u32 %v71_v0, 7  ;;  %v267_v38 = vld [vmem:[%s3131_s4 + $0x18] sm:$0xff]  ;;  %vm503_vm3 = vcmask 523526   ;;  %vm500_vm4 = vcmask 254976  }
   0x3   :  { %v41_v8 = vld [vmem:[%s3130_s0] sm:$0x3]  ;;  %v42_v9 = vld [vmem:[%s3130_s0 + $0x2] sm:$0x3]  ;;  %v2374_v11 = vpack.c.bf16 %v181_v7, %v180_v3  ;;  %v43_v12 = vld [vmem:[%s3130_s0 + $0x4] sm:$0x3]  ;;  %v70_v15 = vunpack.c.0.s8 %v69_v5  ;;  %v2722_v41 = vpack.c.bf16 %v267_v38, %v266_v37 }
   0x4   :  { %v44_v13 = vld [vmem:[%s3130_s0 + $0x6] sm:$0x3]  ;;  %v66_v14 = vcombine.low %v41_v8, %v42_v9  ;;  %v45_v16 = vld [vmem:[%s3130_s0 + $0x8] sm:$0x3]  ;;  %2371 = vmatprep.subr.bf16.mxu0 %v2370_v6  ;;  %v46_v18 = vld [vmem:[%s3130_s0 + $0xa] sm:$0x3] }
   0x5   :  { %v67_v17 = vcombine.low %v43_v12, %v44_v13  ;;  %v47_v19 = vld [vmem:[%s3130_s0 + $0xc] sm:$0x3]  ;;  %v48_v20 = vld [vmem:[%s3130_s0 + $0xe] sm:$0x3]  ;;  %2375 = vmatprep.subr.bf16.mxu1 %v2374_v11  ;;  %2373 = vmatpush3.bf16.msra.mxu0 %v2370_v6  ;;  %v73_v21 = vsub.s32 %v70_v15, %v72_v10  ;;  %v83_v22 = vcombine.low %v45_v16, %v46_v18  ;;  %v264_v24 = vld [vmem:[%s3131_s4] sm:$0xff]  ;;  %vm721_vm5 = vcmask 521476  }
   0x6   :  { %v84_v23 = vcombine.low %v47_v19, %v48_v20  ;;  %2377 = vmatpush3.bf16.msra.mxu1 %v2374_v11  ;;  %2378 = vmatprep.subr.bf16.mxu0 %v2578_v25  ;;  %v265_v26 = vld [vmem:[%s3131_s4 + $0x8] sm:$0xff]  ;;  %v269_v27 = vld [vmem:[%s3132_s8] sm:$0xff]  ;;  %v271_v39 = vld [vmem:[%s3132_s8 + $0x10] sm:$0xff]  ;;  %vm942_vm6 = vcmask 519426   ;;  %vm1160_vm7 = vcmask 517376   ;;  %vm718_vm8 = vcmask 257026  }
   0x7   :  { %v270_v28 = vld [vmem:[%s3132_s8 + $0x8] sm:$0xff]  ;;  %v74_v29 = vrot.slane %v66_v14, %v73_v21  ;;  %v81_v30 = vrot.slane %v67_v17, %v73_v21  ;;  %2384 = vmatprep.subr.bf16.mxu1 %v2578_v25  ;;  %v91_v31 = vrot.slane %v83_v22, %v73_v21  ;;  %v2704_v35 = vpack.c.bf16 %v265_v26, %v264_v24  ;;  %v272_v40 = vld [vmem:[%s3132_s8 + $0x18] sm:$0xff]  ;;  %v2737_v44 = vld [vmem:[%s3133_s1] sm:$0x3] }
   0x8   :  { %v98_v32 = vrot.slane %v84_v23, %v73_v21  ;;  %v2706_v36 = vpack.c.bf16 %v270_v28, %v269_v27  ;;  %v2724_v42 = vpack.c.bf16 %v272_v40, %v271_v39  ;;  %v2742_v45 = vld [vmem:[%s3134_s2] sm:$0x3]  ;;  %vm1157_vm9 = vcmask 261126  }
   0x9   :  { %v82_v33 = vcombine.low %v74_v29, %v81_v30  ;;  %v2038_v46 = vld [vmem:[%s3135_s5] ss:$0 sm:$0xff]  ;;  %s2581_s5 = smov 64   ;;  %v490_v15 = vrot.slane %v2742_v45, 2  ;;  %vm939_vm10 = vcmask 259076  }
   0xa   :  { %v99_v34 = vcombine.low %v91_v31, %v98_v32  ;;  %v2041_v47 = vld [vmem:[%s3136_s9] ss:$0 sm:$0xff]  ;;  %s2583_s9 = smov 96  }
   0xb   :  { %2184 = vmatprep.mubr.msk.f32.mxu0 %vm100_vm0, %v82_v33  ;;  %2191 = vmatprep.mubr.msk.f32.mxu1 %vm100_vm0, %v82_v33  ;;  %v2775_v54 = vld [vmem:[%s3137_s6] ss:$0 sm:$0xff]  ;;  %s2582_s6 = smov 32  }
   0xc   :  { %2185 = vmatmul.mubr.msk.f32.vlgmr.msra.gmra.mrb[0].mxu0 %vm100_vm0, %v99_v34  ;;  %2192 = vmatmul.mubr.msk.f32.vlgmr.msra.gmra.mrb[0].mxu1 %vm100_vm0, %v99_v34  ;;  %v2780_v55 = vld [vmem:[%s3138_s10] ss:$0 sm:$0xff] }
   0xd   :  { %2380 = vmatpush3.bf16.msra.mxu0 %v2704_v35  ;;  %2386 = vmatpush3.bf16.msra.mxu1 %v2706_v36 }
   0xe   :  { %2381 = vmatprep.subr.bf16.mxu0 %v2578_v25  ;;  %2387 = vmatprep.subr.bf16.mxu1 %v2578_v25 }
   0xf   :  { %2202 = vmatprep.mubr.msk.f32.mxu0 %vm2579_vm1, %v2580_v43  ;;  %2213 = vmatprep.mubr.msk.f32.mxu1 %vm2579_vm1, %v2580_v43 }
  0x11   :  { %2383 = vmatpush3.bf16.msra.mxu0 %v2722_v41  ;;  %2389 = vmatpush3.bf16.msra.mxu1 %v2724_v42 }
  0x12   :  { %2390 = vmatprep.subr.bf16.mxu0 %v2578_v25  ;;  %2396 = vmatprep.subr.bf16.mxu1 %v2578_v25 }
  0x14   :  { %2203 = vmatmul.mubr.msk.f32.vlgmr.msra.gmra.mrb[2].mxu0 %vm282_vm2, %v2737_v44  ;;  %2214 = vmatmul.mubr.msk.f32.vlgmr.msra.gmra.mrb[2].mxu1 %vm282_vm2, %v2742_v45 }
  0x15   :  { %2392 = vmatpush3.bf16.msra.mxu0 %v2704_v35  ;;  %2224 = vmatprep.mubr.msk.f32.mxu0 %vm2579_vm1, %v2580_v43 }
  0x16   :  { %2393 = vmatprep.subr.bf16.mxu0 %v2578_v25  ;;  %2398 = vmatpush3.bf16.msra.mxu1 %v2706_v36 }
  0x17   :  { %2399 = vmatprep.subr.bf16.mxu1 %v2578_v25  ;;  %2235 = vmatprep.mubr.msk.f32.mxu1 %vm2579_vm1, %v2580_v43 }
  0x19   :  { %2395 = vmatpush3.bf16.msra.mxu0 %v2722_v41 }
  0x1a   :  { %2401 = vmatpush3.bf16.msra.mxu1 %v2724_v42  ;;  %2402 = vmatprep.subr.bf16.mxu0 %v2578_v25 }
  0x1b   :  { %2408 = vmatprep.subr.bf16.mxu1 %v2578_v25 }
  0xdf   :  { %v2186_v48 = vpop.f32.mrb[0].mxu0  ;;  %v2193_v49 = vpop.f32.mrb[0].mxu1 }
  0xe0   :  { %v2768_v50 = vadd.f32 %v2186_v48, %v2038_v46  ;;  %v171_v51 = vpop.f32.mrb[1].mxu0  ;;  %v255_v52 = vpop.f32.mrb[1].mxu1  ;;  %v2789_v1 = vadd.f32 %v2193_v49, %v2041_v47 }
  0xe1   :  { %v2770_v53 = vadd.f32 %v2041_v47, %v255_v52  ;;  %v2786_v63 = vadd.f32 %v2038_v46, %v171_v51 }
  0xe7   :  { %v352_v56 = vpop.f32.mrb[2].mxu0  ;;  %v431_v57 = vpop.f32.mrb[2].mxu1 }
  0xe8   :  { %v353_v58 = vadd.f32 %v2775_v54, %v352_v56  ;;  %v432_v59 = vadd.f32 %v2780_v55, %v431_v57  ;;  %v2204_v60 = vpop.f32.mrb[3].mxu0  ;;  %v2215_v61 = vpop.f32.mrb[3].mxu1 }
  0xea   :  { %443 = vrot.lane.b32.xlu0 %v353_v58, %s2581_s5  ;;  %v465_v62 = vrot.slane %v432_v59, 2  ;;  %v435_v0 = vadd.f32 %v353_v58, %v2786_v63 }
  0xec   :  { %v2048_v2 = vmul.f32 -1.442695, %v435_v0  ;;  %v467_v3 = vadd.f32 %v465_v62, %v2789_v1 }
  0xee   :  { %474 = vrot.lane.b32.xlu0 %v465_v62, %s2581_s5  ;;  %2481 = vpow2.f32 %v2048_v2  ;;  %v2049_v4 = vmul.f32 -1.442695, %v467_v3 }
  0xf0   :  { %2483 = vpow2.f32 %v2049_v4 }
  0xf8   :  { %v2482_v5 = vpop.eup %2481 }
  0xf9   :  { %v439_v6 = vadd.f32 1.0, %v2482_v5 }
  0xfa   :  { %v2484_v7 = vpop.eup %2483 }
  0xfb   :  { %2485 = vrcp.f32 %v439_v6  ;;  %v471_v8 = vadd.f32 1.0, %v2484_v7 }
  0xfd   :  { %2487 = vrcp.f32 %v471_v8 }
 0x105   :  { %v2486_v9 = vpop.eup %2485 }
 0x106   :  { %v453_v23 = vsub.f32 1.0, %v2486_v9 }
 0x107   :  { %v2488_v12 = vpop.eup %2487 }
 0x108   :  { %v484_v30 = vsub.f32 1.0, %v2488_v12 }
 0x15c   :  { %v444_v10 = vpop.permute.xlu0 %443 }
 0x15d   :  { %v446_v11 = vmul.f32 %v2486_v9, %v444_v10 }
 0x15f   :  { %448 = vrot.lane.b32.xlu1 %v446_v11, %s2581_s5 }
 0x160   :  { %v475_v13 = vpop.permute.xlu0 %474 }
 0x161   :  { %v477_v14 = vmul.f32 %v2488_v12, %v475_v13 }
 0x163   :  { %479 = vrot.lane.b32.xlu1 %v477_v14, %s2581_s5 }
 0x167   :  { %459 = vrot.lane.b32.xlu1 %v2737_v44, %s2582_s6 }
 0x16b   :  { %491 = vrot.lane.b32.xlu1 %v490_v15, %s2582_s6 }
 0x1d1   :  { %v449_v16 = vpop.permute.xlu1 %448 }
 0x1d2   :  { %v451_v17 = vadd.f32 %v449_v16, %v2786_v63 }
 0x1d4   :  { %2489 = vtanh.f32 %v451_v17 }
 0x1d5   :  { %v480_v18 = vpop.permute.xlu1 %479 }
 0x1d6   :  { %v482_v19 = vadd.f32 %v480_v18, %v2789_v1 }
 0x1d8   :  { %2491 = vtanh.f32 %v482_v19 }
 0x1d9   :  { %v460_v22 = vpop.permute.xlu1 %459 }
 0x1da   :  { %v462_v26 = vmul.f32 %v2486_v9, %v460_v22 }
 0x1dd   :  { %v492_v28 = vpop.permute.xlu1 %491 }
 0x1de   :  { %v2490_v20 = vpop.eup %2489  ;;  %v494_v32 = vmul.f32 %v2488_v12, %v492_v28 }
 0x1df   :  { %455 = vrot.lane.b32.xlu0 %v2490_v20, %s2583_s9 }
 0x1e2   :  { %v2492_v21 = vpop.eup %2491 }
 0x1e3   :  { %486 = vrot.lane.b32.xlu0 %v2492_v21, %s2583_s9 }
 0x251   :  { %v456_v24 = vpop.permute.xlu0 %455 }
 0x252   :  { %v458_v27 = vmul.f32 %v456_v24, %v453_v23 }
 0x254   :  { %v2800_v29 = vadd.f32 %v462_v26, %v458_v27 }
 0x255   :  { %v487_v31 = vpop.permute.xlu0 %486 }
 0x256   :  { %v489_v33 = vmul.f32 %v487_v31, %v484_v30  ;;  %497 = vrot.lane.b32.xlu0 %v2800_v29, %s2583_s9  ;;  %v679_v13 = vrot.slane %v2800_v29, 6 }
 0x258   :  { %v2804_v34 = vadd.f32 %v494_v32, %v489_v33 }
 0x25a   :  { %2050 = vst.msk [vmem:[%s3139_s11 + $0x8] sm:$0xc0] %vm503_vm3, %v2804_v34  ;;  %v578_v37 = vrot.slane %v2804_v34, 6  ;;  %v709_v20 = vrot.slane %v2804_v34, 2 }
 0x25c   :  { %579 = vrot.lane.b32.xlu1 %v578_v37, %s2583_s9 }
 0x2c8   :  { %v498_v38 = vpop.permute.xlu0 %497 }
 0x2c9   :  { %501 = vst.msk [vmem:[%s3139_s11] sm:$0x3] %vm500_vm4, %v498_v38  ;;  %2225 = vmatmul.mubr.msk.f32.vlgmr.msra.gmra.mrb[4].mxu0 %vm282_vm2, %v498_v38 }
 0x2ca   :  { %2404 = vmatpush3.bf16.msra.mxu0 %v2704_v35  ;;  %2246 = vmatprep.mubr.msk.f32.mxu0 %vm2579_vm1, %v2580_v43 }
 0x2cb   :  { %2405 = vmatprep.subr.bf16.mxu0 %v2578_v25 }
 0x2ce   :  { %v580_v39 = vpop.permute.xlu1 %579  ;;  %2407 = vmatpush3.bf16.msra.mxu0 %v2722_v41 }
 0x2cf   :  { %2236 = vmatmul.mubr.msk.f32.vlgmr.msra.gmra.mrb[4].mxu1 %vm282_vm2, %v580_v39  ;;  %2414 = vmatprep.subr.bf16.mxu0 %v2578_v25 }
 0x2d0   :  { %2410 = vmatpush3.bf16.msra.mxu1 %v2706_v36  ;;  %2257 = vmatprep.mubr.msk.f32.mxu1 %vm2579_vm1, %v2580_v43 }
 0x2d1   :  { %2411 = vmatprep.subr.bf16.mxu1 %v2578_v25 }
 0x2d4   :  { %2413 = vmatpush3.bf16.msra.mxu1 %v2724_v42 }
 0x2d5   :  { %2420 = vmatprep.subr.bf16.mxu1 %v2578_v25 }
 0x39c   :  { %v573_v40 = vpop.f32.mrb[4].mxu0 }
 0x39d   :  { %v574_v44 = vadd.f32 %v2775_v54, %v573_v40  ;;  %v2226_v45 = vpop.f32.mrb[5].mxu0 }
 0x39f   :  { %v654_v46 = vrot.slane %v574_v44, 6 }
 0x3a1   :  { %663 = vrot.lane.b32.xlu0 %v654_v46, %s2581_s5  ;;  %v656_v52 = vadd.f32 %v654_v46, %v2786_v63 }
 0x3a2   :  { %v649_v47 = vpop.f32.mrb[4].mxu1 }
 0x3a3   :  { %v650_v48 = vadd.f32 %v2780_v55, %v649_v47  ;;  %v2237_v49 = vpop.f32.mrb[5].mxu1  ;;  %v2053_v56 = vmul.f32 -1.442695, %v656_v52 }
 0x3a5   :  { %v684_v51 = vrot.slane %v650_v48, 4  ;;  %2493 = vpow2.f32 %v2053_v56 }
 0x3a7   :  { %693 = vrot.lane.b32.xlu1 %v684_v51, %s2581_s5  ;;  %v686_v57 = vadd.f32 %v684_v51, %v2789_v1 }
 0x3a9   :  { %v2054_v58 = vmul.f32 -1.442695, %v686_v57 }
 0x3ab   :  { %2495 = vpow2.f32 %v2054_v58 }
 0x3af   :  { %v2494_v59 = vpop.eup %2493 }
 0x3b0   :  { %v660_v60 = vadd.f32 1.0, %v2494_v59 }
 0x3b2   :  { %2497 = vrcp.f32 %v660_v60 }
 0x3b5   :  { %v2496_v61 = vpop.eup %2495 }
 0x3b6   :  { %v690_v62 = vadd.f32 1.0, %v2496_v61 }
 0x3b8   :  { %2499 = vrcp.f32 %v690_v62 }
 0x3bc   :  { %v2498_v0 = vpop.eup %2497 }
 0x3bd   :  { %v673_v14 = vsub.f32 1.0, %v2498_v0  ;;  %v681_v17 = vmul.f32 %v2498_v0, %v679_v13 }
 0x3c2   :  { %v2500_v4 = vpop.eup %2499 }
 0x3c3   :  { %v703_v19 = vsub.f32 1.0, %v2500_v4  ;;  %v711_v23 = vmul.f32 %v2500_v4, %v709_v20 }
 0x413   :  { %v664_v2 = vpop.permute.xlu0 %663 }
 0x414   :  { %v666_v3 = vmul.f32 %v2498_v0, %v664_v2 }
 0x416   :  { %668 = vrot.lane.b32.xlu0 %v666_v3, %s2581_s5 }
 0x419   :  { %v694_v5 = vpop.permute.xlu1 %693 }
 0x41a   :  { %v696_v6 = vmul.f32 %v2500_v4, %v694_v5 }
 0x41c   :  { %698 = vrot.lane.b32.xlu1 %v696_v6, %s2581_s5 }
 0x488   :  { %v669_v7 = vpop.permute.xlu0 %668 }
 0x489   :  { %v671_v8 = vadd.f32 %v669_v7, %v2786_v63 }
 0x48b   :  { %2501 = vtanh.f32 %v671_v8 }
 0x48e   :  { %v699_v9 = vpop.permute.xlu1 %698 }
 0x48f   :  { %v701_v10 = vadd.f32 %v699_v9, %v2789_v1 }
 0x491   :  { %2503 = vtanh.f32 %v701_v10 }
 0x495   :  { %v2502_v11 = vpop.eup %2501 }
 0x496   :  { %675 = vrot.lane.b32.xlu0 %v2502_v11, %s2583_s9 }
 0x49b   :  { %v2504_v12 = vpop.eup %2503 }
 0x49c   :  { %705 = vrot.lane.b32.xlu1 %v2504_v12, %s2583_s9 }
 0x508   :  { %v676_v15 = vpop.permute.xlu0 %675 }
 0x509   :  { %v678_v16 = vmul.f32 %v676_v15, %v673_v14 }
 0x50b   :  { %v2844_v18 = vadd.f32 %v681_v17, %v678_v16 }
 0x50d   :  { %v723_v21 = vrot.slane %v2844_v18, 2  ;;  %v900_v6 = vrot.slane %v2844_v18, 6 }
 0x50e   :  { %v706_v22 = vpop.permute.xlu1 %705 }
 0x50f   :  { %v708_v24 = vmul.f32 %v706_v22, %v703_v19  ;;  %724 = vrot.lane.b32.xlu0 %v723_v21, %s2583_s9 }
 0x511   :  { %v2849_v26 = vadd.f32 %v711_v23, %v708_v24 }
 0x513   :  { %2056 = vst.msk [vmem:[%s3139_s11 + $0x8] sm:$0x30] %vm721_vm5, %v2849_v26  ;;  %v799_v27 = vrot.slane %v2849_v26, 4  ;;  %v930_v12 = vrot.slane %v2849_v26, 2 }
 0x515   :  { %800 = vrot.lane.b32.xlu1 %v799_v27, %s2583_s9 }
 0x581   :  { %v725_v28 = vpop.permute.xlu0 %724 }
 0x582   :  { %2247 = vmatmul.mubr.msk.f32.vlgmr.msra.gmra.mrb[6].mxu0 %vm282_vm2, %v725_v28 }
 0x583   :  { %2416 = vmatpush3.bf16.msra.mxu0 %v2704_v35  ;;  %2268 = vmatprep.mubr.msk.f32.mxu0 %vm2579_vm1, %v2580_v43 }
 0x584   :  { %2417 = vmatprep.subr.bf16.mxu0 %v2578_v25 }
 0x587   :  { %v801_v29 = vpop.permute.xlu1 %800  ;;  %2419 = vmatpush3.bf16.msra.mxu0 %v2722_v41 }
 0x588   :  { %2258 = vmatmul.mubr.msk.f32.vlgmr.msra.gmra.mrb[6].mxu1 %vm282_vm2, %v801_v29  ;;  %2426 = vmatprep.subr.bf16.mxu0 %v2578_v25 }
 0x589   :  { %2422 = vmatpush3.bf16.msra.mxu1 %v2706_v36  ;;  %2279 = vmatprep.mubr.msk.f32.mxu1 %vm2579_vm1, %v2580_v43 }
 0x58a   :  { %2423 = vmatprep.subr.bf16.mxu1 %v2578_v25 }
 0x58d   :  { %2425 = vmatpush3.bf16.msra.mxu1 %v2724_v42 }
 0x58e   :  { %2432 = vmatprep.subr.bf16.mxu1 %v2578_v25 }
 0x655   :  { %v794_v30 = vpop.f32.mrb[6].mxu0 }
 0x656   :  { %v795_v31 = vadd.f32 %v2775_v54, %v794_v30  ;;  %v2248_v32 = vpop.f32.mrb[7].mxu0 }
 0x658   :  { %v875_v33 = vrot.slane %v795_v31, 4 }
 0x65a   :  { %884 = vrot.lane.b32.xlu0 %v875_v33, %s2581_s5  ;;  %v877_v40 = vadd.f32 %v875_v33, %v2786_v63 }
 0x65b   :  { %v870_v34 = vpop.f32.mrb[6].mxu1 }
 0x65c   :  { %v871_v37 = vadd.f32 %v2780_v55, %v870_v34  ;;  %v2259_v38 = vpop.f32.mrb[7].mxu1  ;;  %v2059_v44 = vmul.f32 -1.442695, %v877_v40 }
 0x65e   :  { %v905_v39 = vrot.slane %v871_v37, 6  ;;  %2505 = vpow2.f32 %v2059_v44 }
 0x660   :  { %914 = vrot.lane.b32.xlu1 %v905_v39, %s2581_s5  ;;  %v907_v45 = vadd.f32 %v905_v39, %v2789_v1 }
 0x662   :  { %v2060_v46 = vmul.f32 -1.442695, %v907_v45 }
 0x664   :  { %2507 = vpow2.f32 %v2060_v46 }
 0x668   :  { %v2506_v47 = vpop.eup %2505 }
 0x669   :  { %v881_v48 = vadd.f32 1.0, %v2506_v47 }
 0x66b   :  { %2509 = vrcp.f32 %v881_v48 }
 0x66e   :  { %v2508_v49 = vpop.eup %2507 }
 0x66f   :  { %v911_v51 = vadd.f32 1.0, %v2508_v49 }
 0x671   :  { %2511 = vrcp.f32 %v911_v51 }
 0x675   :  { %v2510_v52 = vpop.eup %2509 }
 0x676   :  { %v894_v5 = vsub.f32 1.0, %v2510_v52  ;;  %v902_v8 = vmul.f32 %v2510_v52, %v900_v6 }
 0x67b   :  { %v2512_v58 = vpop.eup %2511 }
 0x67c   :  { %v924_v11 = vsub.f32 1.0, %v2512_v58  ;;  %v932_v15 = vmul.f32 %v2512_v58, %v930_v12 }
 0x6cc   :  { %v885_v56 = vpop.permute.xlu0 %884 }
 0x6cd   :  { %v887_v57 = vmul.f32 %v2510_v52, %v885_v56 }
 0x6cf   :  { %889 = vrot.lane.b32.xlu0 %v887_v57, %s2581_s5 }
 0x6d2   :  { %v915_v59 = vpop.permute.xlu1 %914 }
 0x6d3   :  { %v917_v60 = vmul.f32 %v2512_v58, %v915_v59 }
 0x6d5   :  { %919 = vrot.lane.b32.xlu1 %v917_v60, %s2581_s5 }
 0x741   :  { %v890_v61 = vpop.permute.xlu0 %889 }
 0x742   :  { %v892_v62 = vadd.f32 %v890_v61, %v2786_v63 }
 0x744   :  { %2513 = vtanh.f32 %v892_v62 }
 0x747   :  { %v920_v0 = vpop.permute.xlu1 %919 }
 0x748   :  { %v922_v2 = vadd.f32 %v920_v0, %v2789_v1 }
 0x74a   :  { %2515 = vtanh.f32 %v922_v2 }
 0x74e   :  { %v2514_v3 = vpop.eup %2513 }
 0x74f   :  { %896 = vrot.lane.b32.xlu0 %v2514_v3, %s2583_s9 }
 0x754   :  { %v2516_v4 = vpop.eup %2515 }
 0x755   :  { %926 = vrot.lane.b32.xlu1 %v2516_v4, %s2583_s9 }
 0x7c1   :  { %v897_v7 = vpop.permute.xlu0 %896 }
 0x7c2   :  { %v899_v9 = vmul.f32 %v897_v7, %v894_v5 }
 0x7c4   :  { %v2885_v10 = vadd.f32 %v902_v8, %v899_v9 }
 0x7c6   :  { %v944_v13 = vrot.slane %v2885_v10, 4  ;;  %v1121_v60 = vrot.slane %v2885_v10, 6 }
 0x7c7   :  { %v927_v14 = vpop.permute.xlu1 %926 }
 0x7c8   :  { %v929_v16 = vmul.f32 %v927_v14, %v924_v11  ;;  %945 = vrot.lane.b32.xlu0 %v944_v13, %s2583_s9 }
 0x7ca   :  { %v2890_v17 = vadd.f32 %v932_v15, %v929_v16 }
 0x7cc   :  { %2062 = vst.msk [vmem:[%s3139_s11 + $0x8] sm:$0xc] %vm942_vm6, %v2890_v17  ;;  %v1020_v19 = vrot.slane %v2890_v17, 2 }
 0x7ce   :  { %1021 = vrot.lane.b32.xlu1 %v1020_v19, %s2583_s9 }
 0x83a   :  { %v946_v20 = vpop.permute.xlu0 %945 }
 0x83b   :  { %2269 = vmatmul.mubr.msk.f32.vlgmr.msra.gmra.mrb[8].mxu0 %vm282_vm2, %v946_v20 }
 0x83c   :  { %2428 = vmatpush3.bf16.msra.mxu0 %v2704_v35  ;;  %2290 = vmatprep.mubr.msk.f32.mxu0 %vm2579_vm1, %v2580_v43 }
 0x83d   :  { %2429 = vmatprep.subr.bf16.mxu0 %v2578_v25 }
 0x840   :  { %v1022_v21 = vpop.permute.xlu1 %1021  ;;  %2431 = vmatpush3.bf16.msra.mxu0 %v2722_v41 }
 0x841   :  { %2280 = vmatmul.mubr.msk.f32.vlgmr.msra.gmra.mrb[8].mxu1 %vm282_vm2, %v1022_v21  ;;  %2438 = vmatprep.subr.bf16.mxu0 %v2578_v25 }
 0x842   :  { %2434 = vmatpush3.bf16.msra.mxu1 %v2706_v36  ;;  %2301 = vmatprep.mubr.msk.f32.mxu1 %vm2579_vm1, %v2580_v43 }
 0x843   :  { %2435 = vmatprep.subr.bf16.mxu1 %v2578_v25 }
 0x846   :  { %2437 = vmatpush3.bf16.msra.mxu1 %v2724_v42 }
 0x847   :  { %2444 = vmatprep.subr.bf16.mxu1 %v2578_v25 }
 0x90e   :  { %v1015_v22 = vpop.f32.mrb[8].mxu0 }
 0x90f   :  { %v1016_v23 = vadd.f32 %v2775_v54, %v1015_v22  ;;  %v2270_v24 = vpop.f32.mrb[9].mxu0 }
 0x911   :  { %v1096_v26 = vrot.slane %v1016_v23, 2 }
 0x913   :  { %1105 = vrot.lane.b32.xlu0 %v1096_v26, %s2581_s5  ;;  %v1098_v30 = vadd.f32 %v1096_v26, %v2786_v63 }
 0x914   :  { %v1091_v27 = vpop.f32.mrb[8].mxu1 }
 0x915   :  { %v1092_v28 = vadd.f32 %v2780_v55, %v1091_v27  ;;  %v2281_v29 = vpop.f32.mrb[9].mxu1  ;;  %v2065_v31 = vmul.f32 -1.442695, %v1098_v30 }
 0x917   :  { %1133 = vrot.lane.b32.xlu1 %v1092_v28, %s2581_s5  ;;  %v1125_v32 = vadd.f32 %v1092_v28, %v2789_v1  ;;  %2517 = vpow2.f32 %v2065_v31 }
 0x919   :  { %v2066_v33 = vmul.f32 -1.442695, %v1125_v32 }
 0x91b   :  { %2519 = vpow2.f32 %v2066_v33 }
 0x921   :  { %v2518_v34 = vpop.eup %2517 }
 0x922   :  { %v1102_v37 = vadd.f32 1.0, %v2518_v34 }
 0x924   :  { %2521 = vrcp.f32 %v1102_v37 }
 0x925   :  { %v2520_v38 = vpop.eup %2519 }
 0x926   :  { %v1129_v39 = vadd.f32 1.0, %v2520_v38 }
 0x928   :  { %2523 = vrcp.f32 %v1129_v39 }
 0x92e   :  { %v2522_v40 = vpop.eup %2521 }
 0x92f   :  { %v1115_v59 = vsub.f32 1.0, %v2522_v40  ;;  %v1123_v62 = vmul.f32 %v2522_v40, %v1121_v60 }
 0x932   :  { %v2524_v46 = vpop.eup %2523 }
 0x985   :  { %v1106_v44 = vpop.permute.xlu0 %1105 }
 0x986   :  { %v1108_v45 = vmul.f32 %v2522_v40, %v1106_v44 }
 0x988   :  { %1110 = vrot.lane.b32.xlu0 %v1108_v45, %s2581_s5 }
 0x989   :  { %v1134_v47 = vpop.permute.xlu1 %1133 }
 0x98a   :  { %v1136_v48 = vmul.f32 %v2524_v46, %v1134_v47 }
 0x98c   :  { %1138 = vrot.lane.b32.xlu1 %v1136_v48, %s2581_s5 }
 0x9fa   :  { %v1111_v49 = vpop.permute.xlu0 %1110 }
 0x9fb   :  { %v1113_v51 = vadd.f32 %v1111_v49, %v2786_v63  ;;  %v1143_v63 = vsub.f32 1.0, %v2524_v46 }
 0x9fd   :  { %2525 = vtanh.f32 %v1113_v51 }
 0x9fe   :  { %v1139_v52 = vpop.permute.xlu1 %1138 }
 0x9ff   :  { %v1141_v56 = vadd.f32 %v1139_v52, %v2789_v1  ;;  %v1150_v1 = vmul.f32 %v2524_v46, %v1020_v19 }
 0xa01   :  { %2527 = vtanh.f32 %v1141_v56 }
 0xa07   :  { %v2526_v57 = vpop.eup %2525 }
 0xa08   :  { %1117 = vrot.lane.b32.xlu0 %v2526_v57, %s2583_s9 }
 0xa0b   :  { %v2528_v58 = vpop.eup %2527 }
 0xa0c   :  { %1145 = vrot.lane.b32.xlu1 %v2528_v58, %s2583_s9 }
 0xa7a   :  { %v1118_v61 = vpop.permute.xlu0 %1117 }
 0xa7b   :  { %v1120_v0 = vmul.f32 %v1118_v61, %v1115_v59 }
 0xa7d   :  { %v2928_v2 = vadd.f32 %v1123_v62, %v1120_v0 }
 0xa7e   :  { %v1146_v3 = vpop.permute.xlu1 %1145 }
 0xa7f   :  { %v1148_v4 = vmul.f32 %v1146_v3, %v1143_v63  ;;  %v1162_v5 = vrot.slane %v2928_v2, 6 }
 0xa81   :  { %v2933_v6 = vadd.f32 %v1150_v1, %v1148_v4  ;;  %1163 = vrot.lane.b32.xlu1 %v1162_v5, %s2583_s9 }
 0xa83   :  { %2068 = vst.msk [vmem:[%s3139_s11 + $0x8] sm:$0x3] %vm1160_vm7, %v2933_v6  ;;  %1238 = vrot.lane.b32.xlu0 %v2933_v6, %s2583_s9  ;;  %v1365_v51 = vrot.slane %v2933_v6, 2 }
 0xaf3   :  { %v1164_v7 = vpop.permute.xlu1 %1163 }
 0xaf4   :  { %2291 = vmatmul.mubr.msk.f32.vlgmr.msra.gmra.mrb[10].mxu0 %vm282_vm2, %v1164_v7 }
 0xaf5   :  { %v1239_v8 = vpop.permute.xlu0 %1238  ;;  %2440 = vmatpush3.bf16.msra.mxu0 %v2704_v35  ;;  %2312 = vmatprep.mubr.msk.f32.mxu0 %vm2579_vm1, %v2580_v43 }
 0xaf6   :  { %2302 = vmatmul.mubr.msk.f32.vlgmr.msra.gmra.mrb[10].mxu1 %vm282_vm2, %v1239_v8  ;;  %2441 = vmatprep.subr.bf16.mxu0 %v2578_v25 }
 0xaf7   :  { %2446 = vmatpush3.bf16.msra.mxu1 %v2706_v36  ;;  %2323 = vmatprep.mubr.msk.f32.mxu1 %vm2579_vm1, %v2580_v43 }
 0xaf8   :  { %2447 = vmatprep.subr.bf16.mxu1 %v2578_v25 }
 0xaf9   :  { %2443 = vmatpush3.bf16.msra.mxu0 %v2722_v41 }
 0xafa   :  { %2450 = vmatprep.subr.bf16.mxu0 %v2578_v25 }
 0xafb   :  { %2449 = vmatpush3.bf16.msra.mxu1 %v2724_v42 }
 0xafc   :  { %2456 = vmatprep.subr.bf16.mxu1 %v2578_v25 }
 0xbc7   :  { %v1233_v9 = vpop.f32.mrb[10].mxu0 }
 0xbc8   :  { %v1234_v11 = vadd.f32 %v2775_v54, %v1233_v9  ;;  %v2292_v12 = vpop.f32.mrb[11].mxu0 }
 0xbc9   :  { %v1308_v13 = vpop.f32.mrb[10].mxu1 }
 0xbca   :  { %v1309_v14 = vadd.f32 %v2780_v55, %v1308_v13  ;;  %1320 = vrot.lane.b32.xlu0 %v1234_v11, %s2581_s5  ;;  %v2303_v15 = vpop.f32.mrb[11].mxu1  ;;  %v1312_v17 = vadd.f32 %v1234_v11, %v2768_v50 }
 0xbcc   :  { %v1340_v16 = vrot.slane %v1309_v14, 2  ;;  %v2071_v19 = vmul.f32 -1.442695, %v1312_v17 }
 0xbce   :  { %1349 = vrot.lane.b32.xlu1 %v1340_v16, %s2581_s5  ;;  %v1342_v20 = vadd.f32 %v1340_v16, %v2770_v53  ;;  %2529 = vpow2.f32 %v2071_v19 }
 0xbd0   :  { %v2072_v21 = vmul.f32 -1.442695, %v1342_v20 }
 0xbd2   :  { %2531 = vpow2.f32 %v2072_v21 }
 0xbd8   :  { %v2530_v22 = vpop.eup %2529 }
 0xbd9   :  { %v1316_v23 = vadd.f32 1.0, %v2530_v22 }
 0xbdb   :  { %2533 = vrcp.f32 %v1316_v23 }
 0xbdc   :  { %v2532_v24 = vpop.eup %2531 }
 0xbdd   :  { %v1346_v26 = vadd.f32 1.0, %v2532_v24 }
 0xbdf   :  { %2535 = vrcp.f32 %v1346_v26 }
 0xbe5   :  { %v2534_v27 = vpop.eup %2533 }
 0xbe6   :  { %v1330_v44 = vsub.f32 1.0, %v2534_v27  ;;  %v1337_v46 = vmul.f32 %v2534_v27, %v1162_v5 }
 0xbe9   :  { %v2536_v30 = vpop.eup %2535 }
 0xbea   :  { %v1359_v49 = vsub.f32 1.0, %v2536_v30  ;;  %v1367_v56 = vmul.f32 %v2536_v30, %v1365_v51 }
 0xc3c   :  { %v1321_v28 = vpop.permute.xlu0 %1320 }
 0xc3d   :  { %v1323_v29 = vmul.f32 %v2534_v27, %v1321_v28 }
 0xc3f   :  { %1325 = vrot.lane.b32.xlu0 %v1323_v29, %s2581_s5 }
 0xc40   :  { %v1350_v31 = vpop.permute.xlu1 %1349 }
 0xc41   :  { %v1352_v32 = vmul.f32 %v2536_v30, %v1350_v31 }
 0xc43   :  { %1354 = vrot.lane.b32.xlu1 %v1352_v32, %s2581_s5 }
 0xcb1   :  { %v1326_v33 = vpop.permute.xlu0 %1325 }
 0xcb2   :  { %v1328_v34 = vadd.f32 %v1326_v33, %v2768_v50 }
 0xcb4   :  { %2537 = vtanh.f32 %v1328_v34 }
 0xcb5   :  { %v1355_v37 = vpop.permute.xlu1 %1354 }
 0xcb6   :  { %v1357_v38 = vadd.f32 %v1355_v37, %v2770_v53 }
 0xcb8   :  { %2539 = vtanh.f32 %v1357_v38 }
 0xcbe   :  { %v2538_v39 = vpop.eup %2537 }
 0xcbf   :  { %1332 = vrot.lane.b32.xlu0 %v2538_v39, %s2583_s9 }
 0xcc2   :  { %v2540_v40 = vpop.eup %2539 }
 0xcc3   :  { %1361 = vrot.lane.b32.xlu1 %v2540_v40, %s2583_s9 }
 0xd31   :  { %v1333_v45 = vpop.permute.xlu0 %1332 }
 0xd32   :  { %v1335_v47 = vmul.f32 %v1333_v45, %v1330_v44 }
 0xd34   :  { %v2969_v48 = vadd.f32 %v1337_v46, %v1335_v47 }
 0xd35   :  { %v1362_v52 = vpop.permute.xlu1 %1361 }
 0xd36   :  { %v1364_v57 = vmul.f32 %v1362_v52, %v1359_v49  ;;  %1370 = vrot.lane.b32.xlu0 %v2969_v48, %s2583_s9  ;;  %v1549_v30 = vrot.slane %v2969_v48, 6 }
 0xd38   :  { %v2974_v58 = vadd.f32 %v1367_v56, %v1364_v57 }
 0xd3a   :  { %v1448_v59 = vrot.slane %v2974_v58, 6  ;;  %v1579_v39 = vrot.slane %v2974_v58, 2 }
 0xd3c   :  { %1449 = vrot.lane.b32.xlu1 %v1448_v59, %s2583_s9 }
 0xda8   :  { %v1371_v60 = vpop.permute.xlu0 %1370 }
 0xda9   :  { %2073 = vst.msk [vmem:[%s3139_s11 + $0x8] sm:$0x3] %vm500_vm4, %v1371_v60  ;;  %2313 = vmatmul.mubr.msk.f32.vlgmr.msra.gmra.mrb[12].mxu0 %vm282_vm2, %v1371_v60 }
 0xdaa   :  { %2452 = vmatpush3.bf16.msra.mxu0 %v2704_v35  ;;  %2334 = vmatprep.mubr.msk.f32.mxu0 %vm2579_vm1, %v2580_v43 }
 0xdab   :  { %2453 = vmatprep.subr.bf16.mxu0 %v2578_v25 }
 0xdae   :  { %v1450_v61 = vpop.permute.xlu1 %1449  ;;  %2455 = vmatpush3.bf16.msra.mxu0 %v2722_v41 }
 0xdaf   :  { %2324 = vmatmul.mubr.msk.f32.vlgmr.msra.gmra.mrb[12].mxu1 %vm282_vm2, %v1450_v61  ;;  %2462 = vmatprep.subr.bf16.mxu0 %v2578_v25 }
 0xdb0   :  { %2458 = vmatpush3.bf16.msra.mxu1 %v2706_v36  ;;  %2345 = vmatprep.mubr.msk.f32.mxu1 %vm2579_vm1, %v2580_v43 }
 0xdb1   :  { %2459 = vmatprep.subr.bf16.mxu1 %v2578_v25 }
 0xdb4   :  { %2461 = vmatpush3.bf16.msra.mxu1 %v2724_v42 }
 0xdb5   :  { %2468 = vmatprep.subr.bf16.mxu1 %v2578_v25 }
 0xe7c   :  { %v1443_v62 = vpop.f32.mrb[12].mxu0 }
 0xe7d   :  { %v1444_v0 = vadd.f32 %v2775_v54, %v1443_v62  ;;  %v2314_v63 = vpop.f32.mrb[13].mxu0 }
 0xe7f   :  { %v1524_v3 = vrot.slane %v1444_v0, 6 }
 0xe81   :  { %1533 = vrot.lane.b32.xlu0 %v1524_v3, %s2581_s5  ;;  %v1526_v7 = vadd.f32 %v1524_v3, %v2768_v50 }
 0xe82   :  { %v1519_v1 = vpop.f32.mrb[12].mxu1 }
 0xe83   :  { %v1520_v4 = vadd.f32 %v2780_v55, %v1519_v1  ;;  %v2325_v5 = vpop.f32.mrb[13].mxu1  ;;  %v2077_v8 = vmul.f32 -1.442695, %v1526_v7 }
 0xe85   :  { %v1554_v6 = vrot.slane %v1520_v4, 4  ;;  %2541 = vpow2.f32 %v2077_v8 }
 0xe87   :  { %1563 = vrot.lane.b32.xlu1 %v1554_v6, %s2581_s5  ;;  %v1556_v9 = vadd.f32 %v1554_v6, %v2770_v53 }
 0xe89   :  { %v2078_v11 = vmul.f32 -1.442695, %v1556_v9 }
 0xe8b   :  { %2543 = vpow2.f32 %v2078_v11 }
 0xe8f   :  { %v2542_v12 = vpop.eup %2541 }
 0xe90   :  { %v1530_v13 = vadd.f32 1.0, %v2542_v12 }
 0xe92   :  { %2545 = vrcp.f32 %v1530_v13 }
 0xe95   :  { %v2544_v14 = vpop.eup %2543 }
 0xe96   :  { %v1560_v15 = vadd.f32 1.0, %v2544_v14 }
 0xe98   :  { %2547 = vrcp.f32 %v1560_v15 }
 0xe9c   :  { %v2546_v16 = vpop.eup %2545 }
 0xe9d   :  { %v1543_v31 = vsub.f32 1.0, %v2546_v16  ;;  %v1551_v33 = vmul.f32 %v2546_v16, %v1549_v30 }
 0xea2   :  { %v2548_v20 = vpop.eup %2547 }
 0xea3   :  { %v1573_v38 = vsub.f32 1.0, %v2548_v20  ;;  %v1581_v45 = vmul.f32 %v2548_v20, %v1579_v39 }
 0xef3   :  { %v1534_v17 = vpop.permute.xlu0 %1533 }
 0xef4   :  { %v1536_v19 = vmul.f32 %v2546_v16, %v1534_v17 }
 0xef6   :  { %1538 = vrot.lane.b32.xlu0 %v1536_v19, %s2581_s5 }
 0xef9   :  { %v1564_v21 = vpop.permute.xlu1 %1563 }
 0xefa   :  { %v1566_v22 = vmul.f32 %v2548_v20, %v1564_v21 }
 0xefc   :  { %1568 = vrot.lane.b32.xlu1 %v1566_v22, %s2581_s5 }
 0xf68   :  { %v1539_v23 = vpop.permute.xlu0 %1538 }
 0xf69   :  { %v1541_v24 = vadd.f32 %v1539_v23, %v2768_v50 }
 0xf6b   :  { %2549 = vtanh.f32 %v1541_v24 }
 0xf6e   :  { %v1569_v26 = vpop.permute.xlu1 %1568 }
 0xf6f   :  { %v1571_v27 = vadd.f32 %v1569_v26, %v2770_v53 }
 0xf71   :  { %2551 = vtanh.f32 %v1571_v27 }
 0xf75   :  { %v2550_v28 = vpop.eup %2549 }
 0xf76   :  { %1545 = vrot.lane.b32.xlu0 %v2550_v28, %s2583_s9 }
 0xf7b   :  { %v2552_v29 = vpop.eup %2551 }
 0xf7c   :  { %1575 = vrot.lane.b32.xlu1 %v2552_v29, %s2583_s9 }
 0xfe8   :  { %v1546_v32 = vpop.permute.xlu0 %1545 }
 0xfe9   :  { %v1548_v34 = vmul.f32 %v1546_v32, %v1543_v31 }
 0xfeb   :  { %v3009_v37 = vadd.f32 %v1551_v33, %v1548_v34 }
 0xfed   :  { %v1589_v40 = vrot.slane %v3009_v37, 2  ;;  %v1766_v17 = vrot.slane %v3009_v37, 6 }
 0xfee   :  { %v1576_v44 = vpop.permute.xlu1 %1575 }
 0xfef   :  { %v1578_v46 = vmul.f32 %v1576_v44, %v1573_v38  ;;  %1590 = vrot.lane.b32.xlu0 %v1589_v40, %s2583_s9 }
 0xff1   :  { %v3014_v47 = vadd.f32 %v1581_v45, %v1578_v46 }
 0xff3   :  { %v1665_v48 = vrot.slane %v3014_v47, 4  ;;  %v1796_v24 = vrot.slane %v3014_v47, 2 }
 0xff5   :  { %1666 = vrot.lane.b32.xlu1 %v1665_v48, %s2583_s9 }
0x1061   :  { %v1591_v49 = vpop.permute.xlu0 %1590 }
0x1062   :  { %2335 = vmatmul.mubr.msk.f32.vlgmr.msra.gmra.mrb[14].mxu0 %vm282_vm2, %v1591_v49 }
0x1063   :  { %2464 = vmatpush3.bf16.msra.mxu0 %v2704_v35  ;;  %2356 = vmatprep.mubr.msk.f32.mxu0 %vm2579_vm1, %v2580_v43 }
0x1064   :  { %2465 = vmatprep.subr.bf16.mxu0 %v2578_v25 }
0x1067   :  { %v1667_v51 = vpop.permute.xlu1 %1666  ;;  %2467 = vmatpush3.bf16.msra.mxu0 %v2722_v41 }
0x1068   :  { %2346 = vmatmul.mubr.msk.f32.vlgmr.msra.gmra.mrb[14].mxu1 %vm282_vm2, %v1667_v51 }
0x1069   :  { %2470 = vmatpush3.bf16.msra.mxu1 %v2706_v36  ;;  %2367 = vmatprep.mubr.msk.f32.mxu1 %vm2579_vm1, %v2580_v43 }
0x106a   :  { %2471 = vmatprep.subr.bf16.mxu1 %v2578_v25 }
0x106d   :  { %2473 = vmatpush3.bf16.msra.mxu1 %v2724_v42 }
0x1135   :  { %v1660_v35 = vpop.f32.mrb[14].mxu0 }
0x1136   :  { %v1661_v52 = vadd.f32 %v2775_v54, %v1660_v35  ;;  %v2336_v56 = vpop.f32.mrb[15].mxu0 }
0x1138   :  { %v1741_v57 = vrot.slane %v1661_v52, 4 }
0x113a   :  { %1750 = vrot.lane.b32.xlu0 %v1741_v57, %s2581_s5  ;;  %v1743_v36 = vadd.f32 %v1741_v57, %v2768_v50 }
0x113b   :  { %v1736_v59 = vpop.f32.mrb[14].mxu1 }
0x113c   :  { %v1737_v41 = vadd.f32 %v2780_v55, %v1736_v59  ;;  %v2347_v60 = vpop.f32.mrb[15].mxu1  ;;  %v2083_v43 = vmul.f32 -1.442695, %v1743_v36 }
0x113e   :  { %v1771_v61 = vrot.slane %v1737_v41, 6  ;;  %2553 = vpow2.f32 %v2083_v43 }
0x1140   :  { %1780 = vrot.lane.b32.xlu1 %v1771_v61, %s2581_s5  ;;  %v1773_v25 = vadd.f32 %v1771_v61, %v2770_v53 }
0x1142   :  { %v2084_v42 = vmul.f32 -1.442695, %v1773_v25 }
0x1144   :  { %2555 = vpow2.f32 %v2084_v42 }
0x1148   :  { %v2554_v62 = vpop.eup %2553 }
0x1149   :  { %v1747_v0 = vadd.f32 1.0, %v2554_v62 }
0x114b   :  { %2557 = vrcp.f32 %v1747_v0 }
0x114e   :  { %v2556_v63 = vpop.eup %2555 }
0x114f   :  { %v1777_v3 = vadd.f32 1.0, %v2556_v63 }
0x1151   :  { %2559 = vrcp.f32 %v1777_v3 }
0x1155   :  { %v2558_v1 = vpop.eup %2557 }
0x1156   :  { %v1760_v16 = vsub.f32 1.0, %v2558_v1  ;;  %v1768_v20 = vmul.f32 %v2558_v1, %v1766_v17 }
0x115b   :  { %v2560_v6 = vpop.eup %2559 }
0x115c   :  { %v1790_v23 = vsub.f32 1.0, %v2560_v6  ;;  %v1798_v28 = vmul.f32 %v2560_v6, %v1796_v24 }
0x11ac   :  { %v1751_v4 = vpop.permute.xlu0 %1750 }
0x11ad   :  { %v1753_v5 = vmul.f32 %v2558_v1, %v1751_v4 }
0x11af   :  { %1755 = vrot.lane.b32.xlu0 %v1753_v5, %s2581_s5 }
0x11b2   :  { %v1781_v7 = vpop.permute.xlu1 %1780 }
0x11b3   :  { %v1783_v8 = vmul.f32 %v2560_v6, %v1781_v7 }
0x11b5   :  { %1785 = vrot.lane.b32.xlu1 %v1783_v8, %s2581_s5 }
0x1221   :  { %v1756_v9 = vpop.permute.xlu0 %1755 }
0x1222   :  { %v1758_v11 = vadd.f32 %v1756_v9, %v2768_v50 }
0x1224   :  { %2561 = vtanh.f32 %v1758_v11 }
0x1227   :  { %v1786_v12 = vpop.permute.xlu1 %1785 }
0x1228   :  { %v1788_v13 = vadd.f32 %v1786_v12, %v2770_v53 }
0x122a   :  { %2563 = vtanh.f32 %v1788_v13 }
0x122e   :  { %v2562_v14 = vpop.eup %2561 }
0x122f   :  { %1762 = vrot.lane.b32.xlu0 %v2562_v14, %s2583_s9 }
0x1234   :  { %v2564_v15 = vpop.eup %2563 }
0x1235   :  { %1792 = vrot.lane.b32.xlu1 %v2564_v15, %s2583_s9 }
0x12a1   :  { %v1763_v19 = vpop.permute.xlu0 %1762 }
0x12a2   :  { %v1765_v21 = vmul.f32 %v1763_v19, %v1760_v16 }
0x12a4   :  { %v3043_v22 = vadd.f32 %v1768_v20, %v1765_v21 }
0x12a6   :  { %v1806_v26 = vrot.slane %v3043_v22, 4 }
0x12a7   :  { %v1793_v27 = vpop.permute.xlu1 %1792 }
0x12a8   :  { %v1795_v29 = vmul.f32 %v1793_v27, %v1790_v23  ;;  %1807 = vrot.lane.b32.xlu0 %v1806_v26, %s2583_s9 }
0x12aa   :  { %v3048_v30 = vadd.f32 %v1798_v28, %v1795_v29 }
0x12ac   :  { %v1882_v31 = vrot.slane %v3048_v30, 2 }
0x12ae   :  { %1883 = vrot.lane.b32.xlu1 %v1882_v31, %s2583_s9 }
0x131a   :  { %v1808_v32 = vpop.permute.xlu0 %1807 }
0x131b   :  { %2357 = vmatmul.mubr.msk.f32.vlgmr.msra.gmra.mrb[16].mxu0 %vm282_vm2, %v1808_v32 }
0x1320   :  { %v1884_v33 = vpop.permute.xlu1 %1883 }
0x1321   :  { %2368 = vmatmul.mubr.msk.f32.vlgmr.msra.gmra.mrb[16].mxu1 %vm282_vm2, %v1884_v33 }
0x13ee   :  { %v1877_v34 = vpop.f32.mrb[16].mxu0 }
0x13ef   :  { %v1878_v38 = vadd.f32 %v2775_v54, %v1877_v34  ;;  %v2358_v39 = vpop.f32.mrb[17].mxu0 }
0x13f1   :  { %v1958_v40 = vrot.slane %v1878_v38, 2 }
0x13f3   :  { %1967 = vrot.lane.b32.xlu0 %v1958_v40, %s2581_s5  ;;  %v1960_v48 = vadd.f32 %v1958_v40, %v2768_v50 }
0x13f4   :  { %v1953_v44 = vpop.f32.mrb[16].mxu1 }
0x13f5   :  { %v1954_v45 = vadd.f32 %v2780_v55, %v1953_v44  ;;  %v2369_v46 = vpop.f32.mrb[17].mxu1  ;;  %v2089_v49 = vmul.f32 -1.442695, %v1960_v48 }
0x13f7   :  { %1995 = vrot.lane.b32.xlu1 %v1954_v45, %s2581_s5  ;;  %v1987_v51 = vadd.f32 %v1954_v45, %v2770_v53  ;;  %2565 = vpow2.f32 %v2089_v49 }
0x13f9   :  { %v2090_v35 = vmul.f32 -1.442695, %v1987_v51 }
0x13fb   :  { %2567 = vpow2.f32 %v2090_v35 }
0x1401   :  { %v2566_v52 = vpop.eup %2565 }
0x1402   :  { %v1964_v54 = vadd.f32 1.0, %v2566_v52 }
0x1404   :  { %2569 = vrcp.f32 %v1964_v54 }
0x1405   :  { %v2568_v56 = vpop.eup %2567 }
0x1406   :  { %v1991_v57 = vadd.f32 1.0, %v2568_v56 }
0x1408   :  { %2571 = vrcp.f32 %v1991_v57 }
0x140e   :  { %v2570_v59 = vpop.eup %2569 }
0x1412   :  { %v2572_v60 = vpop.eup %2571 }
0x1413   :  { %v2005_v5 = vsub.f32 1.0, %v2572_v60 }
0x1465   :  { %v1968_v41 = vpop.permute.xlu0 %1967 }
0x1466   :  { %v1970_v55 = vmul.f32 %v2570_v59, %v1968_v41 }
0x1468   :  { %1972 = vrot.lane.b32.xlu0 %v1970_v55, %s2581_s5 }
0x1469   :  { %v1996_v61 = vpop.permute.xlu1 %1995 }
0x146a   :  { %v1998_v36 = vmul.f32 %v2572_v60, %v1996_v61 }
0x146c   :  { %2000 = vrot.lane.b32.xlu1 %v1998_v36, %s2581_s5 }
0x14da   :  { %v1973_v43 = vpop.permute.xlu0 %1972 }
0x14db   :  { %v1975_v25 = vadd.f32 %v1973_v43, %v2768_v50  ;;  %v1977_v50 = vsub.f32 1.0, %v2570_v59 }
0x14dd   :  { %2573 = vtanh.f32 %v1975_v25 }
0x14de   :  { %v2001_v42 = vpop.permute.xlu1 %2000 }
0x14df   :  { %v2003_v62 = vadd.f32 %v2001_v42, %v2770_v53  ;;  %v1983_v53 = vrot.slane %v3043_v22, 6 }
0x14e1   :  { %2575 = vtanh.f32 %v2003_v62  ;;  %v1985_v1 = vmul.f32 %v2570_v59, %v1983_v53 }
0x14e7   :  { %v2574_v0 = vpop.eup %2573 }
0x14e8   :  { %1979 = vrot.lane.b32.xlu0 %v2574_v0, %s2583_s9 }
0x14eb   :  { %v2576_v63 = vpop.eup %2575 }
0x14ec   :  { %714 = vrot.lane.b32.xlu0 %v2844_v18, %s2583_s9  ;;  %2007 = vrot.lane.b32.xlu1 %v2576_v63, %s2583_s9 }
0x14f0   :  { %1153 = vrot.lane.b32.xlu0 %v2928_v2, %s2583_s9  ;;  %935 = vrot.lane.b32.xlu1 %v2885_v10, %s2583_s9  ;;  %v2012_v10 = vmul.f32 %v2572_v60, %v1882_v31 }
0x14f4   :  { %1801 = vrot.lane.b32.xlu0 %v3043_v22, %s2583_s9  ;;  %1584 = vrot.lane.b32.xlu1 %v3009_v37, %s2583_s9 }
0x155a   :  { %v1980_v3 = vpop.permute.xlu0 %1979 }
0x155b   :  { %v1982_v18 = vmul.f32 %v1980_v3, %v1977_v50 }
0x155d   :  { %v1986_v4 = vadd.f32 %v1985_v1, %v1982_v18 }
0x155e   :  { %v715_v6 = vpop.permute.xlu0 %714  ;;  %v2008_v2 = vpop.permute.xlu1 %2007 }
0x155f   :  { %2055 = vst.msk [vmem:[%s3139_s11] sm:$0xc] %vm718_vm8, %v715_v6  ;;  %v2010_v7 = vmul.f32 %v2008_v2, %v2005_v5  ;;  %2015 = vrot.lane.b32.xlu1 %v1986_v4, %s2583_s9 }
0x1560   :  { %2086 = vst.msk [vmem:[%s3139_s11] sm:$0xc] %vm942_vm6, %v3048_v30 }
0x1561   :  { %v2013_v37 = vadd.f32 %v2012_v10, %v2010_v7 }
0x1562   :  { %v1154_v8 = vpop.permute.xlu0 %1153  ;;  %v936_v9 = vpop.permute.xlu1 %935 }
0x1563   :  { %2019 = vst.msk [vmem:[%s3139_s11] sm:$0x3] %vm1160_vm7, %v2013_v37  ;;  %2022 = vrot.lane.b32.xlu0 %v2013_v37, %s2583_s9 }
0x1564   :  { %2067 = vst.msk [vmem:[%s3139_s11] sm:$0xc0] %vm1157_vm9, %v1154_v8 }
0x1565   :  { %2061 = vst.msk [vmem:[%s3139_s11] sm:$0x30] %vm939_vm10, %v936_v9 }
0x1566   :  { %2074 = vst.msk [vmem:[%s3139_s11] sm:$0xc0] %vm503_vm3, %v2974_v58  ;;  %v1802_v11 = vpop.permute.xlu0 %1801  ;;  %v1585_v12 = vpop.permute.xlu1 %1584 }
0x1567   :  { %2080 = vst.msk [vmem:[%s3139_s11] sm:$0x30] %vm721_vm5, %v3014_v47 }
0x1568   :  { %2085 = vst.msk [vmem:[%s3139_s11 + $0x8] sm:$0x30] %vm939_vm10, %v1802_v11 }
0x1569   :  { %2079 = vst.msk [vmem:[%s3139_s11 + $0x8] sm:$0xc] %vm718_vm8, %v1585_v12 }
0x15d1   :  { %v2016_v13 = vpop.permute.xlu1 %2015 }
0x15d2   :  { %2091 = vst.msk [vmem:[%s3139_s11 + $0x8] sm:$0xc0] %vm1157_vm9, %v2016_v13  ;;  %2020 = vst.msk [vmem:[%s3140_s12 - $0x6] sm:$0xc0] %vm1157_vm9, %v2016_v13 }
0x15d5   :  { %v2023_v58 = vpop.permute.xlu0 %2022 }
0x15d6   :  { %2025 = vst.msk [vmem:[%s3141_s13] sm:$0x3] %vm500_vm4, %v2023_v58 }

</bundles_post_ra>
